<compile_context>
chip_gen: v6e
topology: v6e:2x2x1
jax: 0.10.0
libtpu: 0.0.40
codegen_flags: <defaults>
</compile_context>

<pallas_src>
import functools

import numpy as np
import jax
import jax.numpy as jnp
from jax.experimental import pallas as pl
from jax.experimental.pallas import tpu as pltpu

_LANE = 128
_NEG_BIG = -1e30            # bias for padded softmax columns (exp underflows to 0)
_MAX_CLASS_TILE = 4096      # cap on the class-block width (bounds f32 temporaries)


def _round_up(x, m):
    return ((x + m - 1) // m) * m


def _cdiv(a, b):
    return -(-a // b)


def _vmem_target():
    """Per-core VMEM working-set target in bytes (conservative across v5e/v6e/v7x)."""
    try:
        cap = int(pltpu.get_tpu_info().vmem_capacity_bytes)
    except Exception:
        cap = 64 * 1024 * 1024
    return max(24 * 1024 * 1024, min(48 * 1024 * 1024, cap // 3))


def _footprint_bytes(tb, Dp, TCb):
    """Estimated VMEM footprint of one pipelined kernel instance."""
    emb = 2 * tb * Dp * 2            # bf16 embeddings, double-buffered
    wgt = 2 * Dp * TCb * 2           # bf16 weight (counted double-buffered)
    bias = 2 * 8 * TCb * 4           # (1, TCb) f32 pads to 8 sublanes
    tgt = 2 * tb * _LANE * 4         # (tb, 1) i32 pads to 128 lanes
    outb = 2 * 8 * _LANE * 4
    scr = 3 * tb * _LANE * 4         # three (tb, 1) f32 scratch accumulators
    temps = 4 * tb * TCb * 4         # f32 logits / exp / iota / mask working set
    return emb + wgt + bias + tgt + outb + scr + temps


def _choose_tiles(B, D, C, class_tile):
    """Pick (batch tile, padded D, class tile, #class blocks, padded C)."""
    Dp = _round_up(max(D, 1), _LANE)
    Cp_full = _round_up(max(C, 1), _LANE)
    target = _vmem_target()

    if class_tile is not None:
        cap = _round_up(min(max(int(class_tile), _LANE), Cp_full), _LANE)
    elif 2 * Dp * Cp_full * 2 <= target // 2 and Cp_full <= _MAX_CLASS_TILE:
        cap = Cp_full                 # weight stays resident in VMEM (training mode)
    else:                             # stream class blocks (eval-mode large C)
        by_budget = ((target // 3) // (2 * Dp * 2)) // _LANE * _LANE
        cap = max(_LANE, min(Cp_full, _MAX_CLASS_TILE, by_budget))

    CB = _cdiv(Cp_full, cap)
    TCb = _round_up(_cdiv(Cp_full, CB), _LANE)   # balanced class blocks, 128-aligned
    Cp = CB * TCb                                # every block keeps >=1 valid column

    tb = min(512, _round_up(max(B, 1), _LANE))   # big batch tile (step overhead)
    while tb > _LANE and _footprint_bytes(tb, Dp, TCb) > target:
        tb //= 2
    return tb, Dp, TCb, CB, Cp


# ---------------------------------------------------------------------------
# Probe (once) whether pipeline_mode=pl.Buffered(1) lowers on this backend; if it
# does, the resident weight block is single-buffered (v7x VMEM headroom).
# ---------------------------------------------------------------------------
_SINGLE_BUF_OK = None


def _single_buffer_supported():
    global _SINGLE_BUF_OK
    if _SINGLE_BUF_OK is None:
        try:
            def _probe(x_ref, o_ref):
                o_ref[...] = x_ref[...] + 1.0

            out = pl.pallas_call(
                _probe,
                out_shape=jax.ShapeDtypeStruct((8, _LANE), jnp.float32),
                grid=(1,),
                in_specs=[pl.BlockSpec((8, _LANE), lambda i: (0, 0),
                                       pipeline_mode=pl.Buffered(1))],
                out_specs=pl.BlockSpec((8, _LANE), lambda i: (0, 0)),
            )(jnp.zeros((8, _LANE), jnp.float32))
            jax.block_until_ready(out)
            _SINGLE_BUF_OK = True
        except Exception:
            _SINGLE_BUF_OK = False
    return _SINGLE_BUF_OK


# ---------------------------------------------------------------------------
# Kernel: one (batch tile, class block) step of sum-reduced cross-entropy with an
# online softmax over the class axis.
# ---------------------------------------------------------------------------
def _wss_loss_kernel(emb_ref, w_ref, bias_ref, tgt_ref, out_ref, m_sc, l_sc, t_sc):
    """
    emb_ref : (TB, Dp)  bf16   batch tile of embeddings
    w_ref   : (Dp, TCb) bf16   class block of the sampled weight matrix
    bias_ref: (1, TCb)  f32    bias for this class block; padded columns = -1e30
    tgt_ref : (TB, 1)   int32  remapped target column (-1 marks a padded batch row)
    out_ref : (1, 128)  f32    lane-dense per-batch-tile partial loss
    m_sc/l_sc/t_sc: (TB, 1) f32 running max / denom / target-logit accumulators
    """
    ci = pl.program_id(1)

    @pl.when(ci == 0)
    def _init():
        m_sc[...] = jnp.full_like(m_sc, -jnp.inf)
        l_sc[...] = jnp.zeros_like(l_sc)
        t_sc[...] = jnp.zeros_like(t_sc)

    logits = jnp.dot(emb_ref[...], w_ref[...],
                     preferred_element_type=jnp.float32)          # (TB, TCb) f32
    logits = logits + bias_ref[...]                               # bias + pad mask

    tgt = tgt_ref[...]                                            # (TB, 1) i32
    tcb = logits.shape[1]
    # NOTE: iota is regenerated per step rather than staged in scratch under
    # pl.when(program_id(0)==0): under megacore "parallel" the second core never
    # runs batch tile 0, so that staging pattern would be incorrect.
    col_ids = jax.lax.broadcasted_iota(jnp.int32, logits.shape, 1) + ci * tcb
    t_sc[...] = t_sc[...] + jnp.sum(jnp.where(col_ids == tgt, logits, 0.0),
                                    axis=-1, keepdims=True)       # raw target logit

    m_prev = m_sc[...]
    m_new = jnp.maximum(m_prev, jnp.max(logits, axis=-1, keepdims=True))
    l_sc[...] = (l_sc[...] * jnp.exp(m_prev - m_new)
                 + jnp.sum(jnp.exp(logits - m_new), axis=-1, keepdims=True))
    m_sc[...] = m_new

    @pl.when(ci == pl.num_programs(1) - 1)
    def _finalize():
        # per-sample CE = logsumexp(logits) - logits[target]
        per = m_sc[...] + jnp.log(l_sc[...]) - t_sc[...]
        per = jnp.where(tgt >= 0, per, 0.0)                       # drop padded rows
        out_ref[...] = jnp.zeros((1, _LANE), jnp.float32) + jnp.sum(per)


def _wss_loss_impl(embeddings, w_cols, bias_cols, target_cols, *,
                   class_tile, single_buf_w):
    B, D = embeddings.shape
    C = w_cols.shape[1]

    tb, Dp, TCb, CB, Cp = _choose_tiles(B, D, C, class_tile)
    Bp = _round_up(max(B, 1), tb)
    G = Bp // tb

    # Single fused padding pass, bf16 matmul operands (review item: no f32
    # zeros + .at[].set + astype double materialization in HBM).
    emb_p = jnp.pad(embeddings.astype(jnp.bfloat16), ((0, Bp - B), (0, Dp - D)))
    w_p = jnp.pad(w_cols.astype(jnp.bfloat16), ((0, Dp - D), (0, Cp - C)))
    # Bias stays f32 and is added after the dot; padded columns carry -1e30 so
    # they vanish from the logsumexp.
    bias_p = jnp.pad(bias_cols.astype(jnp.float32).reshape(1, C),
                     ((0, 0), (0, Cp - C)), constant_values=_NEG_BIG)
    tgt_p = jnp.pad(target_cols.astype(jnp.int32).reshape(B, 1),
                    ((0, Bp - B), (0, 0)), constant_values=-1)

    footprint = _footprint_bytes(tb, Dp, TCb)
    vmem_limit = int(min(100 * 2**20, max(32 * 2**20, footprint + 16 * 2**20)))

    w_spec_kwargs = {}
    if CB == 1 and single_buf_w:
        # Resident weight, never re-fetched -> single-buffer it (v7x headroom).
        w_spec_kwargs["pipeline_mode"] = pl.Buffered(1)

    cost = pl.CostEstimate(
        flops=2 * Bp * Dp * Cp,
        transcendentals=Bp * Cp,
        bytes_accessed=(emb_p.size * 2
                        + w_p.size * 2 * (1 if CB == 1 else G)
                        + bias_p.size * 4 + tgt_p.size * 4 + G * _LANE * 4),
    )

    partials = pl.pallas_call(
        _wss_loss_kernel,
        out_shape=jax.ShapeDtypeStruct((1, _LANE * G), jnp.float32),
        grid=(G, CB),
        in_specs=[
            pl.BlockSpec((tb, Dp), lambda i, c: (i, 0)),            # embeddings
            pl.BlockSpec((Dp, TCb), lambda i, c: (0, c), **w_spec_kwargs),  # weight
            pl.BlockSpec((1, TCb), lambda i, c: (0, c)),            # bias / pad mask
            pl.BlockSpec((tb, 1), lambda i, c: (i, 0)),             # targets
        ],
        out_specs=pl.BlockSpec((1, _LANE), lambda i, c: (0, i)),    # lane-dense partials
        scratch_shapes=[pltpu.VMEM((tb, 1), jnp.float32)] * 3,
        compiler_params=pltpu.CompilerParams(
            dimension_semantics=("parallel", "arbitrary"),          # batch ∥, class red.
            vmem_limit_bytes=vmem_limit,
        ),
        cost_estimate=cost,
    )(emb_p, w_p, bias_p, tgt_p)

    # lane 0 of each batch tile's block carries that tile's partial loss
    return jnp.sum(partials.reshape(G, _LANE)[:, 0])


_wss_loss_jit = jax.jit(_wss_loss_impl, static_argnames=("class_tile", "single_buf_w"))


def window_sampled_softmax_loss(embeddings, w_cols, bias_cols, target_cols,
                                class_tile=None):
    """embeddings (B, D) f32, w_cols (D, C) f32, bias_cols (C,) f32,
    target_cols (B,) int32 sampled-column ids -> scalar summed cross-entropy."""
    return _wss_loss_jit(embeddings, w_cols, bias_cols, target_cols,
                         class_tile=class_tile,
                         single_buf_w=bool(_single_buffer_supported()))


class WindowSampledSoftmaxLayerJAX:
    """Host-side port of the module; matmul + bias + sum-CE runs in the kernel."""

    def __init__(self, embedding_dim, n_class, n_samples, key):
        self.embedding_dim = embedding_dim
        self.n_class = n_class
        self.n_samples = n_samples
        self.training = True
        self.negative_samples = []
        self.word_to_column = {0: 0}
        self.all_word = []
        self.all_word_to_column = {0: 0}
        # mirrors normal_(0, 1/sqrt(D)) and zero bias
        self.softmax_w = (jax.random.normal(key, (n_class, embedding_dim),
                                            dtype=jnp.float32)
                          / np.sqrt(embedding_dim))
        self.softmax_b = jnp.zeros((n_class, 1), dtype=jnp.float32)
        self.current_embed_matrix = None

    # TODO(synk): dict-based negative-sample window bookkeeping is host-side
    # Python by nature (no Pallas equivalent); only the forward math runs on TPU.
    def update_negative_samples(self, word_inp, mask):
        batch_size, seq_len = mask.shape
        words_in_batch = set()
        for i in range(batch_size):
            for j in range(seq_len):
                if mask[i][j] == 0:
                    continue
                words_in_batch.add(int(word_inp[i][j]))
        for word in words_in_batch:
            if word not in self.all_word_to_column:
                self.all_word.append(word)
                self.all_word_to_column[word] = len(self.all_word_to_column)
            if word not in self.word_to_column:
                if len(self.negative_samples) < self.n_samples:
                    self.negative_samples.append(word)
                    self.word_to_column[word] = len(self.word_to_column)
                else:
                    # guard: the original rotation spins forever when every current
                    # sample occurs in this batch; fail loudly instead of hanging.
                    if all(s in words_in_batch for s in self.negative_samples):
                        raise RuntimeError(
                            "window-sampled softmax: cannot evict a negative "
                            "sample (all current samples occur in this batch); "
                            "increase n_samples")
                    while self.negative_samples[0] in words_in_batch:
                        self.negative_samples = (self.negative_samples[1:]
                                                 + [self.negative_samples[0]])
                    self.word_to_column[word] = self.word_to_column.pop(
                        self.negative_samples[0])
                    self.negative_samples = self.negative_samples[1:] + [word]

    def update_embedding_matrix(self):
        if self.training:
            words = self.negative_samples
            word_to_column = self.word_to_column
        else:
            words = self.all_word
            word_to_column = self.all_word_to_column
        columns = np.zeros(len(words) + 1, dtype=np.int32)
        for word in words:
            columns[word_to_column[word]] = word
        columns[0] = 0
        # glue gather + transpose in plain JAX: (D, C)
        self.current_embed_matrix = jnp.take(self.softmax_w,
                                             jnp.asarray(columns), axis=0).T

    def forward(self, embeddings, targets):
        targets = np.asarray(targets)
        if self.training:
            word_to_column = self.word_to_column
            words = self.negative_samples
        else:
            word_to_column = self.all_word_to_column
            words = self.all_word

        # vectorized word -> sampled-column remap (no per-element dict loop)
        lut = np.zeros(self.n_class, dtype=np.int32)
        known = np.zeros(self.n_class, dtype=bool)
        for w, c in word_to_column.items():
            lut[w] = c
            known[w] = True
        if self.training and not known[targets].all():
            raise KeyError("window-sampled softmax: target word not in the "
                           "current negative-sample window")
        remapped = lut[targets].astype(np.int32)   # eval: unseen words map to col 0

        samples = np.zeros(len(word_to_column), dtype=np.int32)
        for word in words:
            samples[word_to_column[word]] = word
        bias_cols = jnp.take(self.softmax_b[:, 0], jnp.asarray(samples))   # (C,)

        return window_sampled_softmax_loss(
            jnp.asarray(embeddings, dtype=jnp.float32),
            self.current_embed_matrix, bias_cols, jnp.asarray(remapped))


def _reference_loss(embeddings, w_cols, bias_cols, target_cols):
    """Pure-JAX reference with the same bf16-matmul / f32-softmax numerics."""
    logits = jnp.dot(embeddings.astype(jnp.bfloat16), w_cols.astype(jnp.bfloat16),
                     preferred_element_type=jnp.float32)
    logits = logits + bias_cols.astype(jnp.float32)[None, :]
    lse = jax.scipy.special.logsumexp(logits, axis=-1)
    tgt = logits[jnp.arange(logits.shape[0]), target_cols]
    return jnp.sum(lse - tgt)


if __name__ == "__main__":
    key = jax.random.PRNGKey(0)
    (k_w, k_emb, k_words, k_tgt,
     k_w2, k_b2, k_e2, k_t2) = jax.random.split(key, 8)

    embedding_dim = 32
    n_class = 64
    n_samples = 31
    win_batch, win_seq = 8, 8
    n_targets = 600            # > one 512-row batch tile -> exercises the tiled grid

    layer = WindowSampledSoftmaxLayerJAX(embedding_dim, n_class, n_samples, k_w)

    # word ids drawn from a small range so the single synthetic batch never needs
    # to evict (the original rotation is only well-defined across many batches)
    word_inp = np.asarray(jax.random.randint(k_words, (win_batch, win_seq), 1, 17),
                          dtype=np.int32)
    mask = np.ones((win_batch, win_seq), dtype=np.int32)
    layer.update_negative_samples(word_inp, mask)
    layer.update_embedding_matrix()

    flat_words = word_inp.reshape(-1)
    pick = np.asarray(jax.random.randint(k_tgt, (n_targets,), 0,
                                         flat_words.shape[0]))
    targets = flat_words[pick]                 # every target is in the window

    embeddings = jax.random.normal(k_emb, (n_targets, embedding_dim),
                                   dtype=jnp.float32)

    loss = jax.block_until_ready(layer.forward(embeddings, targets))

    # sanity check against a pure-JAX reference of the same math
    remapped = np.asarray([layer.word_to_column[int(t)] for t in targets],
                          dtype=np.int32)
    samples = np.zeros(len(layer.word_to_column), dtype=np.int32)
    for w in layer.negative_samples:
        samples[layer.word_to_column[w]] = w
    bias_cols = jnp.take(layer.softmax_b[:, 0], jnp.asarray(samples))
    ref = _reference_loss(embeddings, layer.current_embed_matrix, bias_cols,
                          jnp.asarray(remapped))
    np.testing.assert_allclose(np.asarray(loss), np.asarray(ref),
                               rtol=2e-3, atol=5e-2)

    # also exercise the class-tiled online-softmax path (mirrors eval mode where
    # C approaches n_class / vocab) with a forced small class tile
    B2, D2, C2 = 96, 32, 300
    w2 = jax.random.normal(k_w2, (D2, C2), dtype=jnp.float32) * 0.2
    b2 = jax.random.normal(k_b2, (C2,), dtype=jnp.float32) * 0.1
    e2 = jax.random.normal(k_e2, (B2, D2), dtype=jnp.float32)
    t2 = jax.random.randint(k_t2, (B2,), 0, C2)
    loss2 = jax.block_until_ready(
        window_sampled_softmax_loss(e2, w2, b2, t2, class_tile=128))
    ref2 = _reference_loss(e2, w2, b2, t2)
    np.testing.assert_allclose(np.asarray(loss2), np.asarray(ref2),
                               rtol=2e-3, atol=5e-2)

    print("KERNEL_OK")
</pallas_src>

<mosaic_0001>
module attributes {stable_mosaic.version = 11 : i64} {
  func.func @_probe(%arg0: i32, %arg1: memref<8x128xf32, #tpu.memory_space<vmem>>, %arg2: memref<8x128xf32, #tpu.memory_space<vmem>>) attributes {dimension_semantics = [#tpu.dimension_semantics<arbitrary>], iteration_bounds = array<i64: 1>, scalar_prefetch = 0 : i64, scratch_operands = 0 : i64, tpu.core_type = #tpu.core_type<tc>, window_params = [{pipeline_mode = #tpu.pipeline_mode<synchronous>, transform_indices = @transform_0, window_bounds = array<i64: 8, 128>}, {pipeline_mode = #tpu.pipeline_mode<synchronous>, transform_indices = @transform_1, window_bounds = array<i64: 8, 128>}]} {
    %c0 = arith.constant 0 : index
    %c0_0 = arith.constant 0 : index
    %0 = vector.load %arg1[%c0, %c0_0] : memref<8x128xf32, #tpu.memory_space<vmem>>, vector<8x128xf32>
    %cst = arith.constant 1.000000e+00 : f32
    %1 = vector.broadcast %cst : f32 to vector<8x128xf32>
    %2 = arith.addf %0, %1 : vector<8x128xf32>
    %c0_1 = arith.constant 0 : index
    %c0_2 = arith.constant 0 : index
    %3 = vector.load %arg2[%c0_1, %c0_2] : memref<8x128xf32, #tpu.memory_space<vmem>>, vector<8x128xf32>
    tpu.vector_store %arg2[%c0_1, %c0_2], %2 {strides = array<i32>} : memref<8x128xf32, #tpu.memory_space<vmem>>, vector<8x128xf32>,
    return
  }
  func.func @transform_0(%arg0: i32) -> (i32, i32) {
    %c0_i32 = arith.constant 0 : i32
    %c0_i32_0 = arith.constant 0 : i32
    %c0_i32_1 = arith.constant 0 : i32
    return %c0_i32, %c0_i32_0 : i32, i32
  }
  func.func @transform_1(%arg0: i32) -> (i32, i32) {
    %c0_i32 = arith.constant 0 : i32
    %c0_i32_0 = arith.constant 0 : i32
    %c0_i32_1 = arith.constant 0 : i32
    return %c0_i32, %c0_i32_0 : i32, i32
  }
}

module attributes {stable_mosaic.version = 11 : i64} {
  func.func @_wss_loss_kernel(%arg0: i32, %arg1: i32, %arg2: memref<512x128xbf16, #tpu.memory_space<vmem>>, %arg3: memref<128x128xbf16, #tpu.memory_space<vmem>>, %arg4: memref<1x128xf32, #tpu.memory_space<vmem>>, %arg5: memref<512x1xi32, #tpu.memory_space<vmem>>, %arg6: memref<1x128xf32, #tpu.memory_space<vmem>>, %arg7: memref<512x1xf32, #tpu.memory_space<vmem>>, %arg8: memref<512x1xf32, #tpu.memory_space<vmem>>, %arg9: memref<512x1xf32, #tpu.memory_space<vmem>>) attributes {dimension_semantics = [#tpu.dimension_semantics<parallel>, #tpu.dimension_semantics<arbitrary>], iteration_bounds = array<i64: 2, 1>, scalar_prefetch = 0 : i64, scratch_operands = 3 : i64, tpu.core_type = #tpu.core_type<tc>, window_params = [{transform_indices = @transform_0, window_bounds = array<i64: 512, 128>}, {transform_indices = @transform_1, window_bounds = array<i64: 128, 128>}, {transform_indices = @transform_2, window_bounds = array<i64: 1, 128>}, {transform_indices = @transform_3, window_bounds = array<i64: 512, 1>}, {transform_indices = @transform_4, window_bounds = array<i64: 1, 128>}]} {
    %c0_i32 = arith.constant 0 : i32
    %0 = arith.cmpi eq, %arg1, %c0_i32 : i32
    %1 = arith.extui %0 : i1 to i32
    %c0_i32_0 = arith.constant 0 : i32
    %2 = arith.cmpi ne, %1, %c0_i32_0 : i32
    scf.if %2 {
      %cst_26 = arith.constant 0xFF800000 : f32
      %42 = vector.broadcast %cst_26 : f32 to vector<512x1xf32>
      %c0_27 = arith.constant 0 : index
      %c0_28 = arith.constant 0 : index
      %43 = vector.load %arg7[%c0_27, %c0_28] : memref<512x1xf32, #tpu.memory_space<vmem>>, vector<512x1xf32>
      tpu.vector_store %arg7[%c0_27, %c0_28], %42 {strides = array<i32>} : memref<512x1xf32, #tpu.memory_space<vmem>>, vector<512x1xf32>,
      %cst_29 = arith.constant 0.000000e+00 : f32
      %44 = vector.broadcast %cst_29 : f32 to vector<512x1xf32>
      %c0_30 = arith.constant 0 : index
      %c0_31 = arith.constant 0 : index
      %45 = vector.load %arg8[%c0_30, %c0_31] : memref<512x1xf32, #tpu.memory_space<vmem>>, vector<512x1xf32>
      tpu.vector_store %arg8[%c0_30, %c0_31], %44 {strides = array<i32>} : memref<512x1xf32, #tpu.memory_space<vmem>>, vector<512x1xf32>,
      %cst_32 = arith.constant 0.000000e+00 : f32
      %46 = vector.broadcast %cst_32 : f32 to vector<512x1xf32>
      %c0_33 = arith.constant 0 : index
      %c0_34 = arith.constant 0 : index
      %47 = vector.load %arg9[%c0_33, %c0_34] : memref<512x1xf32, #tpu.memory_space<vmem>>, vector<512x1xf32>
      tpu.vector_store %arg9[%c0_33, %c0_34], %46 {strides = array<i32>} : memref<512x1xf32, #tpu.memory_space<vmem>>, vector<512x1xf32>,
    } else {
    }
    %c0 = arith.constant 0 : index
    %c0_1 = arith.constant 0 : index
    %3 = vector.load %arg2[%c0, %c0_1] : memref<512x128xbf16, #tpu.memory_space<vmem>>, vector<512x128xbf16>
    %c0_2 = arith.constant 0 : index
    %c0_3 = arith.constant 0 : index
    %4 = vector.load %arg3[%c0_2, %c0_3] : memref<128x128xbf16, #tpu.memory_space<vmem>>, vector<128x128xbf16>
    %cst = arith.constant dense<0.000000e+00> : vector<512x128xf32>
    %5 = tpu.matmul %3, %4, %cst {dimension_numbers = #tpu.dot_dimension_numbers<[1], [0], [0], [1], [0, 0, 1, 1], [], []>} : vector<512x128xbf16>, vector<128x128xbf16>, vector<512x128xf32> -> vector<512x128xf32>
    %c0_4 = arith.constant 0 : index
    %c0_5 = arith.constant 0 : index
    %6 = vector.load %arg4[%c0_4, %c0_5] : memref<1x128xf32, #tpu.memory_space<vmem>>, vector<1x128xf32>
    %7 = vector.broadcast %6 : vector<1x128xf32> to vector<512x128xf32>
    %8 = arith.addf %5, %7 : vector<512x128xf32>
    %c0_6 = arith.constant 0 : index
    %c0_7 = arith.constant 0 : index
    %9 = vector.load %arg5[%c0_6, %c0_7] : memref<512x1xi32, #tpu.memory_space<vmem>>, vector<512x1xi32>
    %10 = tpu.iota {dimensions = array<i32: 1>} : vector<512x128xi32>
    %c128_i32 = arith.constant 128 : i32
    %11 = arith.muli %arg1, %c128_i32 : i32
    %12 = vector.broadcast %11 : i32 to vector<512x128xi32>
    %13 = arith.addi %10, %12 : vector<512x128xi32>
    %c0_8 = arith.constant 0 : index
    %c0_9 = arith.constant 0 : index
    %14 = vector.load %arg9[%c0_8, %c0_9] : memref<512x1xf32, #tpu.memory_space<vmem>>, vector<512x1xf32>
    %15 = vector.broadcast %9 : vector<512x1xi32> to vector<512x128xi32>
    %16 = arith.cmpi eq, %13, %15 : vector<512x128xi32>
    %cst_10 = arith.constant 0.000000e+00 : f32
    %17 = vector.broadcast %cst_10 : f32 to vector<512x128xf32>
    %18 = arith.select %16, %8, %17 : vector<512x128xi1>, vector<512x128xf32>
    %cst_11 = arith.constant dense<0.000000e+00> : vector<512xf32>
    %19 = vector.multi_reduction <add>, %18, %cst_11 [1] : vector<512x128xf32> to vector<512xf32>
    %20 = vector.shape_cast %19 : vector<512xf32> to vector<512x1xf32>
    %21 = arith.addf %14, %20 : vector<512x1xf32>
    %c0_12 = arith.constant 0 : index
    %c0_13 = arith.constant 0 : index
    %22 = vector.load %arg9[%c0_12, %c0_13] : memref<512x1xf32, #tpu.memory_space<vmem>>, vector<512x1xf32>
    tpu.vector_store %arg9[%c0_12, %c0_13], %21 {strides = array<i32>} : memref<512x1xf32, #tpu.memory_space<vmem>>, vector<512x1xf32>,
    %c0_14 = arith.constant 0 : index
    %c0_15 = arith.constant 0 : index
    %23 = vector.load %arg7[%c0_14, %c0_15] : memref<512x1xf32, #tpu.memory_space<vmem>>, vector<512x1xf32>
    %cst_16 = arith.constant dense<0xFF800000> : vector<512xf32>
    %24 = vector.multi_reduction <maximumf>, %8, %cst_16 [1] : vector<512x128xf32> to vector<512xf32>
    %25 = vector.shape_cast %24 : vector<512xf32> to vector<512x1xf32>
    %26 = arith.maximumf %23, %25 : vector<512x1xf32>
    %c0_17 = arith.constant 0 : index
    %c0_18 = arith.constant 0 : index
    %27 = vector.load %arg8[%c0_17, %c0_18] : memref<512x1xf32, #tpu.memory_space<vmem>>, vector<512x1xf32>
    %28 = arith.subf %23, %26 : vector<512x1xf32>
    %29 = math.exp %28 : vector<512x1xf32>
    %30 = arith.mulf %27, %29 : vector<512x1xf32>
    %31 = vector.broadcast %26 : vector<512x1xf32> to vector<512x128xf32>
    %32 = arith.subf %8, %31 : vector<512x128xf32>
    %33 = math.exp %32 : vector<512x128xf32>
    %cst_19 = arith.constant dense<0.000000e+00> : vector<512xf32>
    %34 = vector.multi_reduction <add>, %33, %cst_19 [1] : vector<512x128xf32> to vector<512xf32>
    %35 = vector.shape_cast %34 : vector<512xf32> to vector<512x1xf32>
    %36 = arith.addf %30, %35 : vector<512x1xf32>
    %c0_20 = arith.constant 0 : index
    %c0_21 = arith.constant 0 : index
    %37 = vector.load %arg8[%c0_20, %c0_21] : memref<512x1xf32, #tpu.memory_space<vmem>>, vector<512x1xf32>
    tpu.vector_store %arg8[%c0_20, %c0_21], %36 {strides = array<i32>} : memref<512x1xf32, #tpu.memory_space<vmem>>, vector<512x1xf32>,
    %c0_22 = arith.constant 0 : index
    %c0_23 = arith.constant 0 : index
    %38 = vector.load %arg7[%c0_22, %c0_23] : memref<512x1xf32, #tpu.memory_space<vmem>>, vector<512x1xf32>
    tpu.vector_store %arg7[%c0_22, %c0_23], %26 {strides = array<i32>} : memref<512x1xf32, #tpu.memory_space<vmem>>, vector<512x1xf32>,
    %c0_i32_24 = arith.constant 0 : i32
    %39 = arith.cmpi eq, %arg1, %c0_i32_24 : i32
    %40 = arith.extui %39 : i1 to i32
    %c0_i32_25 = arith.constant 0 : i32
    %41 = arith.cmpi ne, %40, %c0_i32_25 : i32
    scf.if %41 {
      %c0_26 = arith.constant 0 : index
      %c0_27 = arith.constant 0 : index
      %42 = vector.load %arg7[%c0_26, %c0_27] : memref<512x1xf32, #tpu.memory_space<vmem>>, vector<512x1xf32>
      %c0_28 = arith.constant 0 : index
      %c0_29 = arith.constant 0 : index
      %43 = vector.load %arg8[%c0_28, %c0_29] : memref<512x1xf32, #tpu.memory_space<vmem>>, vector<512x1xf32>
      %44 = math.log %43 : vector<512x1xf32>
      %45 = arith.addf %42, %44 : vector<512x1xf32>
      %c0_30 = arith.constant 0 : index
      %c0_31 = arith.constant 0 : index
      %46 = vector.load %arg9[%c0_30, %c0_31] : memref<512x1xf32, #tpu.memory_space<vmem>>, vector<512x1xf32>
      %47 = arith.subf %45, %46 : vector<512x1xf32>
      %c0_i32_32 = arith.constant 0 : i32
      %48 = vector.broadcast %c0_i32_32 : i32 to vector<512x1xi32>
      %49 = arith.cmpi sge, %9, %48 : vector<512x1xi32>
      %cst_33 = arith.constant 0.000000e+00 : f32
      %50 = vector.broadcast %cst_33 : f32 to vector<512x1xf32>
      %51 = arith.select %49, %47, %50 : vector<512x1xi1>, vector<512x1xf32>
      %cst_34 = arith.constant 0.000000e+00 : f32
      %52 = vector.broadcast %cst_34 : f32 to vector<1x128xf32>
      %53 = vector.shape_cast %51 : vector<512x1xf32> to vector<1x512x1xf32>
      %cst_35 = arith.constant dense<0.000000e+00> : vector<1xf32>
      %54 = vector.multi_reduction <add>, %53, %cst_35 [1, 2] : vector<1x512x1xf32> to vector<1xf32>
      %55 = vector.shape_cast %54 : vector<1xf32> to vector<1x1x1xf32>
      %56 = vector.extract %55[0, 0, 0] : f32 from vector<1x1x1xf32>
      %57 = vector.broadcast %56 : f32 to vector<1x128xf32>
      %58 = arith.addf %52, %57 : vector<1x128xf32>
      %c0_36 = arith.constant 0 : index
      %c0_37 = arith.constant 0 : index
      %59 = vector.load %arg6[%c0_36, %c0_37] : memref<1x128xf32, #tpu.memory_space<vmem>>, vector<1x128xf32>
      tpu.vector_store %arg6[%c0_36, %c0_37], %58 {strides = array<i32>} : memref<1x128xf32, #tpu.memory_space<vmem>>, vector<1x128xf32>,
    } else {
    }
    return
  }
  func.func @transform_0(%arg0: i32, %arg1: i32) -> (i32, i32) {
    %c0_i32 = arith.constant 0 : i32
    %c0_i32_0 = arith.constant 0 : i32
    return %arg0, %c0_i32 : i32, i32
  }
  func.func @transform_1(%arg0: i32, %arg1: i32) -> (i32, i32) {
    %c0_i32 = arith.constant 0 : i32
    %c0_i32_0 = arith.constant 0 : i32
    return %c0_i32, %arg1 : i32, i32
  }
  func.func @transform_2(%arg0: i32, %arg1: i32) -> (i32, i32) {
    %c0_i32 = arith.constant 0 : i32
    %c0_i32_0 = arith.constant 0 : i32
    return %c0_i32, %arg1 : i32, i32
  }
  func.func @transform_3(%arg0: i32, %arg1: i32) -> (i32, i32) {
    %c0_i32 = arith.constant 0 : i32
    %c0_i32_0 = arith.constant 0 : i32
    return %arg0, %c0_i32 : i32, i32
  }
  func.func @transform_4(%arg0: i32, %arg1: i32) -> (i32, i32) {
    %c0_i32 = arith.constant 0 : i32
    %c0_i32_0 = arith.constant 0 : i32
    return %c0_i32, %arg0 : i32, i32
  }
}

</mosaic_0001>

<bundles_post_ra>
// kernel: tpu_custom_call.1
= control target key start
LH: loop header
LB: loop body
LE: loop exit
PB: predicated region body
PF: predicated region fallthrough
CT: control target
= control target key end

     0   :  { %6 = vsyncpa [#allocation3], 0  ;;  %s103_s0 = inlined_call_operand.hbm [shape: f32[8,128], index: 0, kind: input, shape index: {}]   ;;  %s104_s1 = inlined_call_operand.hbm [shape: f32[8,128], index: 1, kind: output, shape index: {}]  }
   0x1   :  { %7 = vsyncpa [#allocation4], 0  ;;  %s85_s6 = smov [#allocation2]  }
   0x2   :  { %s14_s7 = sshll.u32 %s85_s6, 4  ;;  %s15_s7 = int_to_ptr.vmem [resolvable:$true] %s14_s7 }
   0x3   :  { %s49_s8 = scalar_lea.vmem %s15_s7, 128  ;;  %p54_p1 = scmp.lt.s32.totalorder %s15_s7, %s15_s7 }
   0x4   :  { %p50_p0 = scmp.ne.s32.totalorder %s15_s7, %s49_s8  ;;  %p55_p2 = scmp.lt.s32.totalorder %s49_s8, %s49_s8 }
   0x6   :  { %p56_p3 = por %p55_p2, %p54_p1 }
   0x8   :  { %p57_p4 = pnand %p56_p3, %p50_p0 }
   0xa   :  { %60 = shalt.err (!%p57_p4)
}
   0xb   :  { %17 = dma.hbm_to_vmem [thread:$0]  %s103_s0, 128, %s15_s7, [#allocation3]  }
   0xc   :  { %81 = dma.done.wait [#allocation3], 128  }
   0xd   :  { %82 = vsyncadd [#allocation3], 4294967168  ;;  %s86_s11 = smov [#allocation5]   ;;  %v21_v0 = vld [vmem:[#allocation2] sm:$0xff] }
   0xe   :  { %s30_s12 = sshll.u32 %s86_s11, 4  ;;  %v22_v1 = vadd.f32 1.0, %v21_v0  ;;  %s31_s12 = int_to_ptr.vmem [resolvable:$true] %s30_s12 }
   0xf   :  { %s61_s13 = scalar_lea.vmem %s31_s12, 128  ;;  %p66_p6 = scmp.lt.s32.totalorder %s31_s12, %s31_s12 }
  0x10   :  { %23 = vst [vmem:[#allocation5] sm:$0xff] %v22_v1  ;;  %p62_p5 = scmp.ne.s32.totalorder %s31_s12, %s61_s13  ;;  %p67_p7 = scmp.lt.s32.totalorder %s61_s13, %s61_s13 }
  0x12   :  { %p68_p8 = por %p67_p7, %p66_p6 }
  0x14   :  { %p69_p9 = pnand %p68_p8, %p62_p5 }
  0x16   :  { %72 = shalt.err (!%p69_p9)
}
  0x17   :  { %33 = dma.vmem_to_hbm [thread:$0]  %s31_s12, 128, %s104_s1, [#allocation4]  }
  0x18   :  { %83 = dma.done.wait [#allocation4], 128  }
  0x19   :  { %84 = vsyncadd [#allocation4], 4294967168 }
  0x1a   :  { %37 = vsyncpa [#allocation3], 1 }
  0x1b   :  { %38 = vsyncpa [#allocation4], 1 }

// kernel: _wss_loss_impl.1
= control target key start
LH: loop header
LB: loop body
LE: loop exit
PB: predicated region body
PF: predicated region fallthrough
CT: control target
= control target key end

     0   :  { %s4768_s15 = smov 0   ;;  %s4770_s16 = smov 0   ;;  %s7207_s0 = inlined_call_operand.vmem [shape: bf16[1024,128], index: 0, kind: input, shape index: {}]   ;;  %s7208_s1 = inlined_call_operand.vmem [shape: bf16[128,128], index: 1, kind: input, shape index: {}]   ;;  %s7209_s2 = inlined_call_operand.vmem [shape: f32[1,128], index: 2, kind: input, shape index: {}]   ;;  %s7210_s3 = inlined_call_operand.vmem [shape: s32[1024,1], index: 3, kind: input, shape index: {}]   ;;  %s7211_s4 = inlined_call_operand.vmem [shape: f32[1,256], index: 4, kind: output, shape index: {}]  }
   0x1   :  { %s4772_s17 = smov 0  }
   0x2 LB: > { %s26_s18 = sadd.s32 1, %s4734_s16  ;;  %p4012_p0 = scmp.ge.s32.totalorder %s4738_s17, 1  ;;  %s4738_s17 = sphi %s4772_s17, %s14_s17   ;;  %s4734_s16 = sphi %s4770_s16, %s7697_s16   ;;  %s4730_s15 = sphi %s4768_s15, %s7696_s15  }
   0x3   : > { %p28_p1 = scmp.ge.s32.totalorder %s26_s18, 2  ;;  %p203_p2 = scmp.lt.s32.totalorder %s4738_s17, 3 }
   0x5   : > { %s7699_s18 = smov (%p28_p1, %s26_s18), 0  ;;  %p204_p3 = pnand %p4012_p0, %p203_p2 }
   0x7   : > { %207 = sbr.rel (%p204_p3) target bundleno = 1360 (0x550), region = 36 }
   0xc   : > { %v4227_v0 = vld [vmem:[%s7208_s1 + $0x38] sm:$0xff]   ;;  %v4740_v1 = vmov 0   ;;  %v4228_v2 = vld [vmem:[%s7208_s1 + $0x30] sm:$0xff]   ;;  %s4013_s23 = sshll.u32 %s4730_s15, 6  ;;  %v4229_v3 = vld [vmem:[%s7208_s1 + $0x28] sm:$0xff]   ;;  %vm266_vm2 = vcmask 7168  }
   0xd   : > { %4226 = vset.pattern.permute.xlu1 %v4740_v1  ;;  %4225 = vset.pattern.permute.xlu0 %v4740_v1  ;;  %p240_p4 = scmp.lt.s32.totalorder %s4013_s23, 127  ;;  %v4230_v6 = vld [vmem:[%s7208_s1 + $0x20] sm:$0xff]   ;;  %v4231_v10 = vld [vmem:[%s7208_s1 + $0x18] sm:$0xff]   ;;  %v4232_v14 = vld [vmem:[%s7208_s1 + $0x10] sm:$0xff]   ;;  %p258_p5 = scmp.lt.s32.totalorder %s4730_s15, 1 }
   0xe   : > { %4100 = vmatprep.subr.bf16.mxu0 %v4227_v0  ;;  %4180 = vmatprep.subr.bf16.mxu1 %v4227_v0  ;;  %v4233_v17 = vld [vmem:[%s7208_s1 + $0x8] sm:$0xff]   ;;  %v4234_v21 = vld [vmem:[%s7208_s1] sm:$0xff]  }
   0xf   : > { %4101 = vmatpush3.bf16.msra.mxu0 %v4227_v0  ;;  %4188 = vmatpush3.bf16.msra.mxu1 %v4227_v0  ;;  %s7701_s23 = smov (!%p240_p4, %s4013_s23), 127  ;;  %s7703_s15 = smov (!%p258_p5, %s4730_s15), 1 }
  0x10   : > { %4102 = vmatprep.subr.bf16.mxu0 %v4228_v2  ;;  %4181 = vmatprep.subr.bf16.mxu1 %v4228_v2  ;;  %s4016_s26 = sshll.u32 %s7701_s23, 3  ;;  %s4014_s30 = sshll.u32 %s7701_s23, 2 }
  0x11   : > { %s4801_s29 = scalar_lea.vmem %s7210_s3, %s4016_s26  ;;  %s4811_s9 = scalar_lea.vmem %s7207_s0, %s4014_s30 }
  0x12   : > { %v1077_v4 = vld [vmem:[%s4801_s29 + $0x10] sm:$0xff]  ;;  %v1075_v5 = vld [vmem:[%s4801_s29] sm:$0xff]  ;;  %v1078_v7 = vld [vmem:[%s4801_s29 + $0x18] sm:$0xff]  ;;  %s260_s28 = scalar_lea.vmem %s7211_s4, %s7703_s15 }
  0x13   : > { %4103 = vmatpush3.bf16.msra.mxu0 %v4228_v2  ;;  %4189 = vmatpush3.bf16.msra.mxu1 %v4228_v2  ;;  %v1076_v8 = vld [vmem:[%s4801_s29 + $0x8] sm:$0xff]  ;;  %v4235_v11 = vld [vmem:[%s4811_s9] sm:$0xff]   ;;  %v1082_v15 = vld [vmem:[%s4801_s29 + $0x38] sm:$0xff] }
  0x14   : > { %4104 = vmatprep.subr.bf16.mxu0 %v4229_v3  ;;  %4182 = vmatprep.subr.bf16.mxu1 %v4229_v3  ;;  %v1080_v9 = vld [vmem:[%s4801_s29 + $0x28] sm:$0xff]  ;;  %v1079_v12 = vld [vmem:[%s4801_s29 + $0x20] sm:$0xff]  ;;  %v1081_v16 = vld [vmem:[%s4801_s29 + $0x30] sm:$0xff] }
  0x15   : > { %1215 = vperm.xlu1 %4226, %v1077_v4   ;;  %1209 = vperm.xlu0 %4225, %v1075_v5   ;;  %v4236_v13 = vld [vmem:[%s4811_s9 + $0x80] sm:$0xff]   ;;  %v1084_v18 = vld [vmem:[%s4801_s29 + $0x48] sm:$0xff]  ;;  %v1086_v20 = vld [vmem:[%s4801_s29 + $0x58] sm:$0xff] }
  0x16   : > { %4116 = vmatprep.mubr.bf16.mxu0 %v4235_v11  ;;  %4148 = vmatprep.mubr.bf16.mxu1 %v4236_v13  ;;  %v1083_v19 = vld [vmem:[%s4801_s29 + $0x40] sm:$0xff]  ;;  %v1085_v22 = vld [vmem:[%s4801_s29 + $0x50] sm:$0xff]  ;;  %v1088_v23 = vld [vmem:[%s4801_s29 + $0x68] sm:$0xff] }
  0x17   : > { %4105 = vmatpush3.bf16.msra.mxu0 %v4229_v3  ;;  %4190 = vmatpush3.bf16.msra.mxu1 %v4229_v3  ;;  %v1087_v24 = vld [vmem:[%s4801_s29 + $0x60] sm:$0xff]  ;;  %v4237_v25 = vld [vmem:[%s4811_s9 + $0x8] sm:$0xff]   ;;  %v4239_v27 = vld [vmem:[%s4811_s9 + $0x10] sm:$0xff]  }
  0x18   : > { %4106 = vmatprep.subr.bf16.mxu0 %v4230_v6  ;;  %4183 = vmatprep.subr.bf16.mxu1 %v4230_v6  ;;  %v4238_v26 = vld [vmem:[%s4811_s9 + $0x88] sm:$0xff]   ;;  %v4240_v28 = vld [vmem:[%s4811_s9 + $0x90] sm:$0xff]   ;;  %v1090_v29 = vld [vmem:[%s4801_s29 + $0x78] sm:$0xff] }
  0x19   : > { %1218 = vperm.xlu1 %4226, %v1078_v7   ;;  %1212 = vperm.xlu0 %4225, %v1076_v8   ;;  %v1089_v30 = vld [vmem:[%s4801_s29 + $0x70] sm:$0xff]  ;;  %v1092_v31 = vld [vmem:[%s4801_s29 + $0x88] sm:$0xff]  ;;  %v1091_v32 = vld [vmem:[%s4801_s29 + $0x80] sm:$0xff] }
  0x1a   : > { %v4241_v33 = vld [vmem:[%s4811_s9 + $0x18] sm:$0xff]   ;;  %v4243_v35 = vld [vmem:[%s4811_s9 + $0x20] sm:$0xff]   ;;  %v1093_v38 = vld [vmem:[%s4801_s29 + $0x90] sm:$0xff] }
  0x1b   : > { %4107 = vmatpush3.bf16.msra.mxu0 %v4230_v6  ;;  %4191 = vmatpush3.bf16.msra.mxu1 %v4230_v6  ;;  %v4242_v34 = vld [vmem:[%s4811_s9 + $0x98] sm:$0xff]   ;;  %v4244_v36 = vld [vmem:[%s4811_s9 + $0xa0] sm:$0xff]   ;;  %v1096_v39 = vld [vmem:[%s4801_s29 + $0xa8] sm:$0xff] }
  0x1c   : > { %4108 = vmatprep.subr.bf16.mxu0 %v4231_v10  ;;  %4184 = vmatprep.subr.bf16.mxu1 %v4231_v10  ;;  %v1094_v37 = vld [vmem:[%s4801_s29 + $0x98] sm:$0xff]  ;;  %v1095_v40 = vld [vmem:[%s4801_s29 + $0xa0] sm:$0xff]  ;;  %v4245_v41 = vld [vmem:[%s4811_s9 + $0x28] sm:$0xff]  }
  0x1d   : > { %1224 = vperm.xlu1 %4226, %v1080_v9   ;;  %1221 = vperm.xlu0 %4225, %v1079_v12   ;;  %v4246_v42 = vld [vmem:[%s4811_s9 + $0xa8] sm:$0xff]   ;;  %v4247_v43 = vld [vmem:[%s4811_s9 + $0x30] sm:$0xff]   ;;  %v1098_v45 = vld [vmem:[%s4801_s29 + $0xb8] sm:$0xff] }
  0x1e   : > { %v4248_v44 = vld [vmem:[%s4811_s9 + $0xb0] sm:$0xff]   ;;  %v1100_v47 = vld [vmem:[%s4801_s29 + $0xc8] sm:$0xff]  ;;  %v1099_v48 = vld [vmem:[%s4801_s29 + $0xc0] sm:$0xff] }
  0x1f   : > { %4109 = vmatpush3.bf16.msra.mxu0 %v4231_v10  ;;  %4192 = vmatpush3.bf16.msra.mxu1 %v4231_v10  ;;  %v1097_v46 = vld [vmem:[%s4801_s29 + $0xb0] sm:$0xff]  ;;  %v4249_v49 = vld [vmem:[%s4811_s9 + $0x38] sm:$0xff]   ;;  %v4251_v51 = vld [vmem:[%s4811_s9 + $0x40] sm:$0xff]  }
  0x20   : > { %4110 = vmatprep.subr.bf16.mxu0 %v4232_v14  ;;  %4185 = vmatprep.subr.bf16.mxu1 %v4232_v14  ;;  %v4250_v50 = vld [vmem:[%s4811_s9 + $0xb8] sm:$0xff]   ;;  %v4252_v52 = vld [vmem:[%s4811_s9 + $0xc0] sm:$0xff]   ;;  %v1101_v54 = vld [vmem:[%s4801_s29 + $0xd0] sm:$0xff] }
  0x21   : > { %1230 = vperm.xlu1 %4226, %v1082_v15   ;;  %1227 = vperm.xlu0 %4225, %v1081_v16   ;;  %v1102_v53 = vld [vmem:[%s4801_s29 + $0xd8] sm:$0xff]  ;;  %v1104_v55 = vld [vmem:[%s4801_s29 + $0xe8] sm:$0xff]  ;;  %v1103_v56 = vld [vmem:[%s4801_s29 + $0xe0] sm:$0xff] }
  0x22   : > { %v4253_v57 = vld [vmem:[%s4811_s9 + $0x48] sm:$0xff]   ;;  %v4255_v59 = vld [vmem:[%s4811_s9 + $0x50] sm:$0xff]   ;;  %v1106_v61 = vld [vmem:[%s4801_s29 + $0xf8] sm:$0xff] }
  0x23   : > { %4111 = vmatpush3.bf16.msra.mxu0 %v4232_v14  ;;  %4193 = vmatpush3.bf16.msra.mxu1 %v4232_v14  ;;  %v4254_v58 = vld [vmem:[%s4811_s9 + $0xc8] sm:$0xff]   ;;  %v4256_v60 = vld [vmem:[%s4811_s9 + $0xd0] sm:$0xff]   ;;  %v1107_v0 = vld [vmem:[%s4801_s29 + $0x100] sm:$0xff] }
  0x24   : > { %4112 = vmatprep.subr.bf16.mxu0 %v4233_v17  ;;  %4186 = vmatprep.subr.bf16.mxu1 %v4233_v17  ;;  %v1105_v62 = vld [vmem:[%s4801_s29 + $0xf0] sm:$0xff]  ;;  %v1108_v63 = vld [vmem:[%s4801_s29 + $0x108] sm:$0xff]  ;;  %v4257_v1 = vld [vmem:[%s4811_s9 + $0x58] sm:$0xff]  }
  0x25   : > { %1236 = vperm.xlu1 %4226, %v1084_v18   ;;  %1233 = vperm.xlu0 %4225, %v1083_v19   ;;  %v4258_v2 = vld [vmem:[%s4811_s9 + $0xd8] sm:$0xff]   ;;  %v4259_v3 = vld [vmem:[%s4811_s9 + $0x60] sm:$0xff]   ;;  %v1109_v6 = vld [vmem:[%s4801_s29 + $0x110] sm:$0xff] }
  0x26   : > { %v4260_v4 = vld [vmem:[%s4811_s9 + $0xe0] sm:$0xff]   ;;  %v1110_v5 = vld [vmem:[%s4801_s29 + $0x118] sm:$0xff]  ;;  %v1112_v7 = vld [vmem:[%s4801_s29 + $0x128] sm:$0xff] }
  0x27   : > { %4113 = vmatpush3.bf16.msra.mxu0 %v4233_v17  ;;  %4194 = vmatpush3.bf16.msra.mxu1 %v4233_v17  ;;  %v1111_v8 = vld [vmem:[%s4801_s29 + $0x120] sm:$0xff]  ;;  %v4261_v9 = vld [vmem:[%s4811_s9 + $0x68] sm:$0xff]   ;;  %v4263_v11 = vld [vmem:[%s4811_s9 + $0x70] sm:$0xff]  }
  0x28   : > { %4114 = vmatprep.subr.bf16.mxu0 %v4234_v21  ;;  %4187 = vmatprep.subr.bf16.mxu1 %v4234_v21  ;;  %v4262_v10 = vld [vmem:[%s4811_s9 + $0xe8] sm:$0xff]   ;;  %v4264_v12 = vld [vmem:[%s4811_s9 + $0xf0] sm:$0xff]   ;;  %v1114_v13 = vld [vmem:[%s4801_s29 + $0x138] sm:$0xff] }
  0x29   : > { %1242 = vperm.xlu1 %4226, %v1086_v20   ;;  %1239 = vperm.xlu0 %4225, %v1085_v22   ;;  %v1113_v14 = vld [vmem:[%s4801_s29 + $0x130] sm:$0xff]  ;;  %v1116_v15 = vld [vmem:[%s4801_s29 + $0x148] sm:$0xff]  ;;  %v1115_v16 = vld [vmem:[%s4801_s29 + $0x140] sm:$0xff] }
  0x2a   : > { %v4265_v17 = vld [vmem:[%s4811_s9 + $0x78] sm:$0xff]   ;;  %v1117_v20 = vld [vmem:[%s4801_s29 + $0x150] sm:$0xff]  ;;  %v1119_v22 = vld [vmem:[%s4801_s29 + $0x160] sm:$0xff] }
  0x2b   : > { %4115 = vmatpush3.bf16.msra.mxu0 %v4234_v21  ;;  %4195 = vmatpush3.bf16.msra.mxu1 %v4234_v21  ;;  %v4266_v18 = vld [vmem:[%s4811_s9 + $0xf8] sm:$0xff]   ;;  %v1120_v21 = vld [vmem:[%s4801_s29 + $0x168] sm:$0xff] }
  0x2c   : > { %v1118_v19 = vld [vmem:[%s4801_s29 + $0x158] sm:$0xff] }
  0x2d   : > { %1248 = vperm.xlu1 %4226, %v1088_v23   ;;  %1245 = vperm.xlu0 %4225, %v1087_v24   ;;  %v1122_v23 = vld [vmem:[%s4801_s29 + $0x178] sm:$0xff]  ;;  %v1121_v24 = vld [vmem:[%s4801_s29 + $0x170] sm:$0xff] }
  0x2e   : > { %4117 = vmatmul.mubr.bf16.vlgmr.msra.gmra.mxu0 %v4237_v25  ;;  %4149 = vmatmul.mubr.bf16.vlgmr.msra.gmra.mxu1 %v4238_v26  ;;  %v1124_v25 = vld [vmem:[%s4801_s29 + $0x188] sm:$0xff]  ;;  %v1123_v26 = vld [vmem:[%s4801_s29 + $0x180] sm:$0xff] }
  0x2f   : > { %4120 = vmatprep.mubr.bf16.mxu0 %v4239_v27  ;;  %4152 = vmatprep.mubr.bf16.mxu1 %v4240_v28  ;;  %v1126_v27 = vld [vmem:[%s4801_s29 + $0x198] sm:$0xff]  ;;  %v1125_v28 = vld [vmem:[%s4801_s29 + $0x190] sm:$0xff] }
  0x31   : > { %1254 = vperm.xlu1 %4226, %v1090_v29   ;;  %1251 = vperm.xlu0 %4225, %v1089_v30   ;;  %v1128_v29 = vld [vmem:[%s4801_s29 + $0x1a8] sm:$0xff]  ;;  %v1127_v30 = vld [vmem:[%s4801_s29 + $0x1a0] sm:$0xff] }
  0x35   : > { %1260 = vperm.xlu1 %4226, %v1092_v31   ;;  %1257 = vperm.xlu0 %4225, %v1091_v32   ;;  %v1130_v31 = vld [vmem:[%s4801_s29 + $0x1b8] sm:$0xff]  ;;  %v1129_v32 = vld [vmem:[%s4801_s29 + $0x1b0] sm:$0xff] }
  0x36   : > { %4121 = vmatmul.mubr.bf16.gmra.mxu0 %v4241_v33  ;;  %4153 = vmatmul.mubr.bf16.gmra.mxu1 %v4242_v34  ;;  %v1132_v33 = vld [vmem:[%s4801_s29 + $0x1c8] sm:$0xff]  ;;  %v1131_v34 = vld [vmem:[%s4801_s29 + $0x1c0] sm:$0xff] }
  0x37   : > { %4124 = vmatprep.mubr.bf16.mxu0 %v4243_v35  ;;  %4156 = vmatprep.mubr.bf16.mxu1 %v4244_v36  ;;  %v1134_v35 = vld [vmem:[%s4801_s29 + $0x1d8] sm:$0xff]  ;;  %v1133_v36 = vld [vmem:[%s4801_s29 + $0x1d0] sm:$0xff] }
  0x39   : > { %1266 = vperm.xlu1 %4226, %v1094_v37   ;;  %1263 = vperm.xlu0 %4225, %v1093_v38   ;;  %v1136_v37 = vld [vmem:[%s4801_s29 + $0x1e8] sm:$0xff]  ;;  %v1135_v38 = vld [vmem:[%s4801_s29 + $0x1e0] sm:$0xff] }
  0x3d   : > { %1272 = vperm.xlu1 %4226, %v1096_v39   ;;  %1269 = vperm.xlu0 %4225, %v1095_v40   ;;  %v1138_v39 = vld [vmem:[%s4801_s29 + $0x1f8] sm:$0xff]  ;;  %v1137_v40 = vld [vmem:[%s4801_s29 + $0x1f0] sm:$0xff] }
  0x3e   : > { %4125 = vmatmul.mubr.bf16.gmra.mxu0 %v4245_v41  ;;  %4157 = vmatmul.mubr.bf16.gmra.mxu1 %v4246_v42 }
  0x3f   : > { %4128 = vmatprep.mubr.bf16.mxu0 %v4247_v43  ;;  %4160 = vmatprep.mubr.bf16.mxu1 %v4248_v44 }
  0x41   : > { %1278 = vperm.xlu1 %4226, %v1098_v45   ;;  %1275 = vperm.xlu0 %4225, %v1097_v46  }
  0x45   : > { %1284 = vperm.xlu1 %4226, %v1100_v47   ;;  %1281 = vperm.xlu0 %4225, %v1099_v48  }
  0x46   : > { %4129 = vmatmul.mubr.bf16.gmra.mxu0 %v4249_v49  ;;  %4161 = vmatmul.mubr.bf16.gmra.mxu1 %v4250_v50 }
  0x47   : > { %4132 = vmatprep.mubr.bf16.mxu0 %v4251_v51  ;;  %4164 = vmatprep.mubr.bf16.mxu1 %v4252_v52 }
  0x49   : > { %1290 = vperm.xlu1 %4226, %v1102_v53   ;;  %1287 = vperm.xlu0 %4225, %v1101_v54  }
  0x4d   : > { %1296 = vperm.xlu1 %4226, %v1104_v55   ;;  %1293 = vperm.xlu0 %4225, %v1103_v56  }
  0x4e   : > { %4133 = vmatmul.mubr.bf16.gmra.mxu0 %v4253_v57  ;;  %4165 = vmatmul.mubr.bf16.gmra.mxu1 %v4254_v58 }
  0x4f   : > { %4136 = vmatprep.mubr.bf16.mxu0 %v4255_v59  ;;  %4168 = vmatprep.mubr.bf16.mxu1 %v4256_v60 }
  0x51   : > { %1302 = vperm.xlu1 %4226, %v1106_v61   ;;  %1299 = vperm.xlu0 %4225, %v1105_v62  }
  0x55   : > { %1308 = vperm.xlu1 %4226, %v1108_v63   ;;  %1305 = vperm.xlu0 %4225, %v1107_v0  }
  0x56   : > { %4137 = vmatmul.mubr.bf16.gmra.mxu0 %v4257_v1  ;;  %4169 = vmatmul.mubr.bf16.gmra.mxu1 %v4258_v2 }
  0x57   : > { %4140 = vmatprep.mubr.bf16.mxu0 %v4259_v3  ;;  %4172 = vmatprep.mubr.bf16.mxu1 %v4260_v4 }
  0x59   : > { %1314 = vperm.xlu1 %4226, %v1110_v5   ;;  %1311 = vperm.xlu0 %4225, %v1109_v6  }
  0x5d   : > { %1320 = vperm.xlu1 %4226, %v1112_v7   ;;  %1317 = vperm.xlu0 %4225, %v1111_v8   ;;  %v1139_v7 = vlaneseq }
  0x5e   : > { %4141 = vmatmul.mubr.bf16.gmra.mxu0 %v4261_v9  ;;  %4173 = vmatmul.mubr.bf16.gmra.mxu1 %v4262_v10  ;;  %v4984_v10 = vld [vmem:[%s7209_s2] ss:$0 sm:$0xff] }
  0x5f   : > { %4144 = vmatprep.mubr.bf16.mxu0 %v4263_v11  ;;  %4176 = vmatprep.mubr.bf16.mxu1 %v4264_v12  ;;  %v4986_v11 = vand.u32 127, %v1139_v7 }
  0x61   : > { %1326 = vperm.xlu1 %4226, %v1114_v13   ;;  %1323 = vperm.xlu0 %4225, %v1113_v14  }
  0x65   : > { %1332 = vperm.xlu1 %4226, %v1116_v15   ;;  %1329 = vperm.xlu0 %4225, %v1115_v16  }
  0x66   : > { %4145 = vmatmul.mubr.bf16.gmra.mxu0 %v4265_v17  ;;  %4177 = vmatmul.mubr.bf16.gmra.mxu1 %v4266_v18 }
  0x69   : > { %1338 = vperm.xlu1 %4226, %v1118_v19   ;;  %1335 = vperm.xlu0 %4225, %v1117_v20  }
  0x6d   : > { %1344 = vperm.xlu1 %4226, %v1120_v21   ;;  %1341 = vperm.xlu0 %4225, %v1119_v22   ;;  %v4741_v22 = vmov -inf  }
  0x6e   : > { %269 = vst.msk [vmem:[#allocation2 + $0x10] sm:$0xff] %vm266_vm2, %v4741_v22  ;;  %267 = vst.msk [vmem:[#allocation2] sm:$0xff] %vm266_vm2, %v4741_v22 }
  0x6f   : > { %268 = vst.msk [vmem:[#allocation2 + $0x8] sm:$0xff] %vm266_vm2, %v4741_v22  ;;  %270 = vst.msk [vmem:[#allocation2 + $0x18] sm:$0xff] %vm266_vm2, %v4741_v22 }
  0x70   : > { %271 = vst.msk [vmem:[#allocation2 + $0x20] sm:$0xff] %vm266_vm2, %v4741_v22  ;;  %272 = vst.msk [vmem:[#allocation2 + $0x28] sm:$0xff] %vm266_vm2, %v4741_v22 }
  0x71   : > { %1350 = vperm.xlu1 %4226, %v1122_v23   ;;  %1347 = vperm.xlu0 %4225, %v1121_v24   ;;  %273 = vst.msk [vmem:[#allocation2 + $0x30] sm:$0xff] %vm266_vm2, %v4741_v22  ;;  %274 = vst.msk [vmem:[#allocation2 + $0x38] sm:$0xff] %vm266_vm2, %v4741_v22 }
  0x72   : > { %275 = vst.msk [vmem:[#allocation2 + $0x40] sm:$0xff] %vm266_vm2, %v4741_v22  ;;  %276 = vst.msk [vmem:[#allocation2 + $0x48] sm:$0xff] %vm266_vm2, %v4741_v22 }
  0x73   : > { %277 = vst.msk [vmem:[#allocation2 + $0x50] sm:$0xff] %vm266_vm2, %v4741_v22  ;;  %278 = vst.msk [vmem:[#allocation2 + $0x58] sm:$0xff] %vm266_vm2, %v4741_v22 }
  0x74   : > { %279 = vst.msk [vmem:[#allocation2 + $0x60] sm:$0xff] %vm266_vm2, %v4741_v22  ;;  %280 = vst.msk [vmem:[#allocation2 + $0x68] sm:$0xff] %vm266_vm2, %v4741_v22 }
  0x75   : > { %1356 = vperm.xlu1 %4226, %v1124_v25   ;;  %1353 = vperm.xlu0 %4225, %v1123_v26   ;;  %281 = vst.msk [vmem:[#allocation2 + $0x70] sm:$0xff] %vm266_vm2, %v4741_v22  ;;  %282 = vst.msk [vmem:[#allocation2 + $0x78] sm:$0xff] %vm266_vm2, %v4741_v22 }
  0x76   : > { %283 = vst.msk [vmem:[#allocation2 + $0x80] sm:$0xff] %vm266_vm2, %v4741_v22  ;;  %284 = vst.msk [vmem:[#allocation2 + $0x88] sm:$0xff] %vm266_vm2, %v4741_v22 }
  0x77   : > { %285 = vst.msk [vmem:[#allocation2 + $0x90] sm:$0xff] %vm266_vm2, %v4741_v22  ;;  %286 = vst.msk [vmem:[#allocation2 + $0x98] sm:$0xff] %vm266_vm2, %v4741_v22 }
  0x78   : > { %287 = vst.msk [vmem:[#allocation2 + $0xa0] sm:$0xff] %vm266_vm2, %v4741_v22  ;;  %288 = vst.msk [vmem:[#allocation2 + $0xa8] sm:$0xff] %vm266_vm2, %v4741_v22 }
  0x79   : > { %1362 = vperm.xlu1 %4226, %v1126_v27   ;;  %1359 = vperm.xlu0 %4225, %v1125_v28   ;;  %289 = vst.msk [vmem:[#allocation2 + $0xb0] sm:$0xff] %vm266_vm2, %v4741_v22  ;;  %290 = vst.msk [vmem:[#allocation2 + $0xb8] sm:$0xff] %vm266_vm2, %v4741_v22  ;;  %v4742_v27 = vmov 0.0  }
  0x7a   : > { %291 = vst.msk [vmem:[#allocation2 + $0xc0] sm:$0xff] %vm266_vm2, %v4741_v22  ;;  %292 = vst.msk [vmem:[#allocation2 + $0xc8] sm:$0xff] %vm266_vm2, %v4741_v22 }
  0x7b   : > { %293 = vst.msk [vmem:[#allocation2 + $0xd0] sm:$0xff] %vm266_vm2, %v4741_v22  ;;  %294 = vst.msk [vmem:[#allocation2 + $0xd8] sm:$0xff] %vm266_vm2, %v4741_v22 }
  0x7c   : > { %295 = vst.msk [vmem:[#allocation2 + $0xe0] sm:$0xff] %vm266_vm2, %v4741_v22  ;;  %296 = vst.msk [vmem:[#allocation2 + $0xe8] sm:$0xff] %vm266_vm2, %v4741_v22 }
  0x7d   : > { %1368 = vperm.xlu1 %4226, %v1128_v29   ;;  %1365 = vperm.xlu0 %4225, %v1127_v30   ;;  %297 = vst.msk [vmem:[#allocation2 + $0xf0] sm:$0xff] %vm266_vm2, %v4741_v22  ;;  %298 = vst.msk [vmem:[#allocation2 + $0xf8] sm:$0xff] %vm266_vm2, %v4741_v22 }
  0x7e   : > { %299 = vst.msk [vmem:[#allocation2 + $0x100] sm:$0xff] %vm266_vm2, %v4741_v22  ;;  %300 = vst.msk [vmem:[#allocation2 + $0x108] sm:$0xff] %vm266_vm2, %v4741_v22 }
  0x7f   : > { %301 = vst.msk [vmem:[#allocation2 + $0x110] sm:$0xff] %vm266_vm2, %v4741_v22  ;;  %302 = vst.msk [vmem:[#allocation2 + $0x118] sm:$0xff] %vm266_vm2, %v4741_v22 }
  0x80   : > { %303 = vst.msk [vmem:[#allocation2 + $0x120] sm:$0xff] %vm266_vm2, %v4741_v22  ;;  %304 = vst.msk [vmem:[#allocation2 + $0x128] sm:$0xff] %vm266_vm2, %v4741_v22 }
  0x81   : > { %1374 = vperm.xlu1 %4226, %v1130_v31   ;;  %1371 = vperm.xlu0 %4225, %v1129_v32   ;;  %305 = vst.msk [vmem:[#allocation2 + $0x130] sm:$0xff] %vm266_vm2, %v4741_v22  ;;  %306 = vst.msk [vmem:[#allocation2 + $0x138] sm:$0xff] %vm266_vm2, %v4741_v22 }
  0x82   : > { %307 = vst.msk [vmem:[#allocation2 + $0x140] sm:$0xff] %vm266_vm2, %v4741_v22  ;;  %308 = vst.msk [vmem:[#allocation2 + $0x148] sm:$0xff] %vm266_vm2, %v4741_v22 }
  0x83   : > { %309 = vst.msk [vmem:[#allocation2 + $0x150] sm:$0xff] %vm266_vm2, %v4741_v22  ;;  %310 = vst.msk [vmem:[#allocation2 + $0x158] sm:$0xff] %vm266_vm2, %v4741_v22 }
  0x84   : > { %311 = vst.msk [vmem:[#allocation2 + $0x160] sm:$0xff] %vm266_vm2, %v4741_v22  ;;  %312 = vst.msk [vmem:[#allocation2 + $0x168] sm:$0xff] %vm266_vm2, %v4741_v22 }
  0x85   : > { %1380 = vperm.xlu1 %4226, %v1132_v33   ;;  %1377 = vperm.xlu0 %4225, %v1131_v34   ;;  %313 = vst.msk [vmem:[#allocation2 + $0x170] sm:$0xff] %vm266_vm2, %v4741_v22  ;;  %314 = vst.msk [vmem:[#allocation2 + $0x178] sm:$0xff] %vm266_vm2, %v4741_v22 }
  0x86   : > { %315 = vst.msk [vmem:[#allocation2 + $0x180] sm:$0xff] %vm266_vm2, %v4741_v22  ;;  %316 = vst.msk [vmem:[#allocation2 + $0x188] sm:$0xff] %vm266_vm2, %v4741_v22 }
  0x87   : > { %317 = vst.msk [vmem:[#allocation2 + $0x190] sm:$0xff] %vm266_vm2, %v4741_v22  ;;  %318 = vst.msk [vmem:[#allocation2 + $0x198] sm:$0xff] %vm266_vm2, %v4741_v22 }
  0x88   : > { %319 = vst.msk [vmem:[#allocation2 + $0x1a0] sm:$0xff] %vm266_vm2, %v4741_v22  ;;  %320 = vst.msk [vmem:[#allocation2 + $0x1a8] sm:$0xff] %vm266_vm2, %v4741_v22 }
  0x89   : > { %1386 = vperm.xlu1 %4226, %v1134_v35   ;;  %1383 = vperm.xlu0 %4225, %v1133_v36   ;;  %321 = vst.msk [vmem:[#allocation2 + $0x1b0] sm:$0xff] %vm266_vm2, %v4741_v22  ;;  %322 = vst.msk [vmem:[#allocation2 + $0x1b8] sm:$0xff] %vm266_vm2, %v4741_v22 }
  0x8a   : > { %323 = vst.msk [vmem:[#allocation2 + $0x1c0] sm:$0xff] %vm266_vm2, %v4741_v22  ;;  %324 = vst.msk [vmem:[#allocation2 + $0x1c8] sm:$0xff] %vm266_vm2, %v4741_v22 }
  0x8b   : > { %325 = vst.msk [vmem:[#allocation2 + $0x1d0] sm:$0xff] %vm266_vm2, %v4741_v22  ;;  %326 = vst.msk [vmem:[#allocation2 + $0x1d8] sm:$0xff] %vm266_vm2, %v4741_v22 }
  0x8c   : > { %327 = vst.msk [vmem:[#allocation2 + $0x1e0] sm:$0xff] %vm266_vm2, %v4741_v22  ;;  %328 = vst.msk [vmem:[#allocation2 + $0x1e8] sm:$0xff] %vm266_vm2, %v4741_v22 }
  0x8d   : > { %1392 = vperm.xlu1 %4226, %v1136_v37   ;;  %1389 = vperm.xlu0 %4225, %v1135_v38   ;;  %329 = vst.msk [vmem:[#allocation2 + $0x1f0] sm:$0xff] %vm266_vm2, %v4741_v22  ;;  %330 = vst.msk [vmem:[#allocation2 + $0x1f8] sm:$0xff] %vm266_vm2, %v4741_v22 }
  0x8e   : > { %397 = vst.msk [vmem:[#allocation4 + $0x10] sm:$0xff] %vm266_vm2, %v4742_v27  ;;  %331 = vst.msk [vmem:[#allocation3] sm:$0xff] %vm266_vm2, %v4742_v27 }
  0x8f   : > { %332 = vst.msk [vmem:[#allocation3 + $0x8] sm:$0xff] %vm266_vm2, %v4742_v27  ;;  %333 = vst.msk [vmem:[#allocation3 + $0x10] sm:$0xff] %vm266_vm2, %v4742_v27 }
  0x90   : > { %v4919_v41 = vpop.permute.xlu0 %1209  ;;  %v1216_v43 = vpop.permute.xlu1 %1215  ;;  %334 = vst.msk [vmem:[#allocation3 + $0x18] sm:$0xff] %vm266_vm2, %v4742_v27  ;;  %335 = vst.msk [vmem:[#allocation3 + $0x20] sm:$0xff] %vm266_vm2, %v4742_v27 }
  0x91   : > { %1398 = vperm.xlu1 %4226, %v1138_v39   ;;  %1395 = vperm.xlu0 %4225, %v1137_v40   ;;  %vm1402_vm0 = vcmp.eq.s32.totalorder %v4986_v11, %v1216_v43  ;;  %vm1400_vm3 = vcmp.eq.s32.totalorder %v4986_v11, %v4919_v41  ;;  %336 = vst.msk [vmem:[#allocation3 + $0x28] sm:$0xff] %vm266_vm2, %v4742_v27  ;;  %337 = vst.msk [vmem:[#allocation3 + $0x30] sm:$0xff] %vm266_vm2, %v4742_v27 }
  0x92   : > { %338 = vst.msk [vmem:[#allocation3 + $0x38] sm:$0xff] %vm266_vm2, %v4742_v27  ;;  %339 = vst.msk [vmem:[#allocation3 + $0x40] sm:$0xff] %vm266_vm2, %v4742_v27 }
  0x93   : > { %340 = vst.msk [vmem:[#allocation3 + $0x48] sm:$0xff] %vm266_vm2, %v4742_v27  ;;  %341 = vst.msk [vmem:[#allocation3 + $0x50] sm:$0xff] %vm266_vm2, %v4742_v27 }
  0x94   : > { %v4921_v42 = vpop.permute.xlu0 %1212  ;;  %v4925_v45 = vpop.permute.xlu1 %1218  ;;  %342 = vst.msk [vmem:[#allocation3 + $0x58] sm:$0xff] %vm266_vm2, %v4742_v27  ;;  %343 = vst.msk [vmem:[#allocation3 + $0x60] sm:$0xff] %vm266_vm2, %v4742_v27 }
  0x95   : > { %344 = vst.msk [vmem:[#allocation3 + $0x68] sm:$0xff] %vm266_vm2, %v4742_v27  ;;  %345 = vst.msk [vmem:[#allocation3 + $0x70] sm:$0xff] %vm266_vm2, %v4742_v27  ;;  %vm1403_vm5 = vcmp.eq.s32.totalorder %v4986_v11, %v4925_v45  ;;  %vm1401_vm6 = vcmp.eq.s32.totalorder %v4986_v11, %v4921_v42 }
  0x96   : > { %346 = vst.msk [vmem:[#allocation3 + $0x78] sm:$0xff] %vm266_vm2, %v4742_v27  ;;  %347 = vst.msk [vmem:[#allocation3 + $0x80] sm:$0xff] %vm266_vm2, %v4742_v27 }
  0x97   : > { %348 = vst.msk [vmem:[#allocation3 + $0x88] sm:$0xff] %vm266_vm2, %v4742_v27  ;;  %349 = vst.msk [vmem:[#allocation3 + $0x90] sm:$0xff] %vm266_vm2, %v4742_v27 }
  0x98   : > { %v4923_v44 = vpop.permute.xlu0 %1221  ;;  %v4929_v47 = vpop.permute.xlu1 %1224  ;;  %350 = vst.msk [vmem:[#allocation3 + $0x98] sm:$0xff] %vm266_vm2, %v4742_v27  ;;  %351 = vst.msk [vmem:[#allocation3 + $0xa0] sm:$0xff] %vm266_vm2, %v4742_v27 }
  0x99   : > { %352 = vst.msk [vmem:[#allocation3 + $0xa8] sm:$0xff] %vm266_vm2, %v4742_v27  ;;  %353 = vst.msk [vmem:[#allocation3 + $0xb0] sm:$0xff] %vm266_vm2, %v4742_v27  ;;  %vm1404_vm11 = vcmp.eq.s32.totalorder %v4986_v11, %v4923_v44 }
  0x9a   : > { %354 = vst.msk [vmem:[#allocation3 + $0xb8] sm:$0xff] %vm266_vm2, %v4742_v27  ;;  %355 = vst.msk [vmem:[#allocation3 + $0xc0] sm:$0xff] %vm266_vm2, %v4742_v27 }
  0x9b   : > { %356 = vst.msk [vmem:[#allocation3 + $0xc8] sm:$0xff] %vm266_vm2, %v4742_v27  ;;  %357 = vst.msk [vmem:[#allocation3 + $0xd0] sm:$0xff] %vm266_vm2, %v4742_v27 }
  0x9c   : > { %v4927_v46 = vpop.permute.xlu0 %1227  ;;  %v4933_v49 = vpop.permute.xlu1 %1230  ;;  %358 = vst.msk [vmem:[#allocation3 + $0xd8] sm:$0xff] %vm266_vm2, %v4742_v27  ;;  %359 = vst.msk [vmem:[#allocation3 + $0xe0] sm:$0xff] %vm266_vm2, %v4742_v27 }
  0x9d   : > { %360 = vst.msk [vmem:[#allocation3 + $0xe8] sm:$0xff] %vm266_vm2, %v4742_v27  ;;  %361 = vst.msk [vmem:[#allocation3 + $0xf0] sm:$0xff] %vm266_vm2, %v4742_v27  ;;  %vm1406_vm8 = vcmp.eq.s32.totalorder %v4986_v11, %v4927_v46  ;;  %vm1407_vm12 = vcmp.eq.s32.totalorder %v4986_v11, %v4933_v49 }
  0x9e   : > { %362 = vst.msk [vmem:[#allocation3 + $0xf8] sm:$0xff] %vm266_vm2, %v4742_v27  ;;  %363 = vst.msk [vmem:[#allocation3 + $0x100] sm:$0xff] %vm266_vm2, %v4742_v27 }
  0x9f   : > { %364 = vst.msk [vmem:[#allocation3 + $0x108] sm:$0xff] %vm266_vm2, %v4742_v27  ;;  %365 = vst.msk [vmem:[#allocation3 + $0x110] sm:$0xff] %vm266_vm2, %v4742_v27 }
  0xa0   : > { %v4931_v48 = vpop.permute.xlu0 %1233  ;;  %v4937_v51 = vpop.permute.xlu1 %1236  ;;  %366 = vst.msk [vmem:[#allocation3 + $0x118] sm:$0xff] %vm266_vm2, %v4742_v27  ;;  %367 = vst.msk [vmem:[#allocation3 + $0x120] sm:$0xff] %vm266_vm2, %v4742_v27 }
  0xa1   : > { %368 = vst.msk [vmem:[#allocation3 + $0x128] sm:$0xff] %vm266_vm2, %v4742_v27  ;;  %369 = vst.msk [vmem:[#allocation3 + $0x130] sm:$0xff] %vm266_vm2, %v4742_v27 }
  0xa2   : > { %370 = vst.msk [vmem:[#allocation3 + $0x138] sm:$0xff] %vm266_vm2, %v4742_v27  ;;  %371 = vst.msk [vmem:[#allocation3 + $0x140] sm:$0xff] %vm266_vm2, %v4742_v27 }
  0xa3   : > { %372 = vst.msk [vmem:[#allocation3 + $0x148] sm:$0xff] %vm266_vm2, %v4742_v27  ;;  %373 = vst.msk [vmem:[#allocation3 + $0x150] sm:$0xff] %vm266_vm2, %v4742_v27 }
  0xa4   : > { %v4935_v50 = vpop.permute.xlu0 %1239  ;;  %v4941_v53 = vpop.permute.xlu1 %1242  ;;  %374 = vst.msk [vmem:[#allocation3 + $0x158] sm:$0xff] %vm266_vm2, %v4742_v27  ;;  %375 = vst.msk [vmem:[#allocation3 + $0x160] sm:$0xff] %vm266_vm2, %v4742_v27 }
  0xa5   : > { %376 = vst.msk [vmem:[#allocation3 + $0x168] sm:$0xff] %vm266_vm2, %v4742_v27  ;;  %377 = vst.msk [vmem:[#allocation3 + $0x170] sm:$0xff] %vm266_vm2, %v4742_v27  ;;  %vm1410_vm15 = vcmp.eq.s32.totalorder %v4986_v11, %v4935_v50 }
  0xa6   : > { %378 = vst.msk [vmem:[#allocation3 + $0x178] sm:$0xff] %vm266_vm2, %v4742_v27  ;;  %379 = vst.msk [vmem:[#allocation3 + $0x180] sm:$0xff] %vm266_vm2, %v4742_v27 }
  0xa7   : > { %380 = vst.msk [vmem:[#allocation3 + $0x188] sm:$0xff] %vm266_vm2, %v4742_v27  ;;  %381 = vst.msk [vmem:[#allocation3 + $0x190] sm:$0xff] %vm266_vm2, %v4742_v27 }
  0xa8   : > { %v4939_v52 = vpop.permute.xlu0 %1245  ;;  %v4945_v55 = vpop.permute.xlu1 %1248  ;;  %382 = vst.msk [vmem:[#allocation3 + $0x198] sm:$0xff] %vm266_vm2, %v4742_v27  ;;  %383 = vst.msk [vmem:[#allocation3 + $0x1a0] sm:$0xff] %vm266_vm2, %v4742_v27 }
  0xa9   : > { %384 = vst.msk [vmem:[#allocation3 + $0x1a8] sm:$0xff] %vm266_vm2, %v4742_v27  ;;  %385 = vst.msk [vmem:[#allocation3 + $0x1b0] sm:$0xff] %vm266_vm2, %v4742_v27 }
  0xaa   : > { %386 = vst.msk [vmem:[#allocation3 + $0x1b8] sm:$0xff] %vm266_vm2, %v4742_v27  ;;  %387 = vst.msk [vmem:[#allocation3 + $0x1c0] sm:$0xff] %vm266_vm2, %v4742_v27 }
  0xab   : > { %388 = vst.msk [vmem:[#allocation3 + $0x1c8] sm:$0xff] %vm266_vm2, %v4742_v27  ;;  %389 = vst.msk [vmem:[#allocation3 + $0x1d0] sm:$0xff] %vm266_vm2, %v4742_v27 }
  0xac   : > { %v4943_v54 = vpop.permute.xlu0 %1251  ;;  %v4949_v57 = vpop.permute.xlu1 %1254  ;;  %390 = vst.msk [vmem:[#allocation3 + $0x1d8] sm:$0xff] %vm266_vm2, %v4742_v27  ;;  %391 = vst.msk [vmem:[#allocation3 + $0x1e0] sm:$0xff] %vm266_vm2, %v4742_v27 }
  0xad   : > { %392 = vst.msk [vmem:[#allocation3 + $0x1e8] sm:$0xff] %vm266_vm2, %v4742_v27  ;;  %393 = vst.msk [vmem:[#allocation3 + $0x1f0] sm:$0xff] %vm266_vm2, %v4742_v27 }
  0xae   : > { %394 = vst.msk [vmem:[#allocation3 + $0x1f8] sm:$0xff] %vm266_vm2, %v4742_v27  ;;  %395 = vst.msk [vmem:[#allocation4] sm:$0xff] %vm266_vm2, %v4742_v27 }
  0xaf   : > { %396 = vst.msk [vmem:[#allocation4 + $0x8] sm:$0xff] %vm266_vm2, %v4742_v27  ;;  %398 = vst.msk [vmem:[#allocation4 + $0x18] sm:$0xff] %vm266_vm2, %v4742_v27 }
  0xb0   : > { %v4947_v56 = vpop.permute.xlu0 %1257  ;;  %v4953_v59 = vpop.permute.xlu1 %1260  ;;  %399 = vst.msk [vmem:[#allocation4 + $0x20] sm:$0xff] %vm266_vm2, %v4742_v27  ;;  %400 = vst.msk [vmem:[#allocation4 + $0x28] sm:$0xff] %vm266_vm2, %v4742_v27 }
  0xb1   : > { %401 = vst.msk [vmem:[#allocation4 + $0x30] sm:$0xff] %vm266_vm2, %v4742_v27  ;;  %402 = vst.msk [vmem:[#allocation4 + $0x38] sm:$0xff] %vm266_vm2, %v4742_v27 }
  0xb2   : > { %403 = vst.msk [vmem:[#allocation4 + $0x40] sm:$0xff] %vm266_vm2, %v4742_v27  ;;  %404 = vst.msk [vmem:[#allocation4 + $0x48] sm:$0xff] %vm266_vm2, %v4742_v27 }
  0xb3   : > { %405 = vst.msk [vmem:[#allocation4 + $0x50] sm:$0xff] %vm266_vm2, %v4742_v27  ;;  %406 = vst.msk [vmem:[#allocation4 + $0x58] sm:$0xff] %vm266_vm2, %v4742_v27 }
  0xb4   : > { %v4951_v58 = vpop.permute.xlu0 %1263  ;;  %v4957_v61 = vpop.permute.xlu1 %1266  ;;  %407 = vst.msk [vmem:[#allocation4 + $0x60] sm:$0xff] %vm266_vm2, %v4742_v27  ;;  %408 = vst.msk [vmem:[#allocation4 + $0x68] sm:$0xff] %vm266_vm2, %v4742_v27 }
  0xb5   : > { %409 = vst.msk [vmem:[#allocation4 + $0x70] sm:$0xff] %vm266_vm2, %v4742_v27  ;;  %410 = vst.msk [vmem:[#allocation4 + $0x78] sm:$0xff] %vm266_vm2, %v4742_v27 }
  0xb6   : > { %411 = vst.msk [vmem:[#allocation4 + $0x80] sm:$0xff] %vm266_vm2, %v4742_v27  ;;  %412 = vst.msk [vmem:[#allocation4 + $0x88] sm:$0xff] %vm266_vm2, %v4742_v27 }
  0xb7   : > { %413 = vst.msk [vmem:[#allocation4 + $0x90] sm:$0xff] %vm266_vm2, %v4742_v27  ;;  %414 = vst.msk [vmem:[#allocation4 + $0x98] sm:$0xff] %vm266_vm2, %v4742_v27 }
  0xb8   : > { %v4955_v60 = vpop.permute.xlu0 %1269  ;;  %v4961_v63 = vpop.permute.xlu1 %1272  ;;  %415 = vst.msk [vmem:[#allocation4 + $0xa0] sm:$0xff] %vm266_vm2, %v4742_v27  ;;  %416 = vst.msk [vmem:[#allocation4 + $0xa8] sm:$0xff] %vm266_vm2, %v4742_v27 }
  0xb9   : > { %417 = vst.msk [vmem:[#allocation4 + $0xb0] sm:$0xff] %vm266_vm2, %v4742_v27  ;;  %418 = vst.msk [vmem:[#allocation4 + $0xb8] sm:$0xff] %vm266_vm2, %v4742_v27 }
  0xba   : > { %419 = vst.msk [vmem:[#allocation4 + $0xc0] sm:$0xff] %vm266_vm2, %v4742_v27  ;;  %420 = vst.msk [vmem:[#allocation4 + $0xc8] sm:$0xff] %vm266_vm2, %v4742_v27 }
  0xbb   : > { %421 = vst.msk [vmem:[#allocation4 + $0xd0] sm:$0xff] %vm266_vm2, %v4742_v27  ;;  %422 = vst.msk [vmem:[#allocation4 + $0xd8] sm:$0xff] %vm266_vm2, %v4742_v27 }
  0xbc   : > { %v4959_v62 = vpop.permute.xlu0 %1275  ;;  %v4965_v1 = vpop.permute.xlu1 %1278  ;;  %423 = vst.msk [vmem:[#allocation4 + $0xe0] sm:$0xff] %vm266_vm2, %v4742_v27  ;;  %424 = vst.msk [vmem:[#allocation4 + $0xe8] sm:$0xff] %vm266_vm2, %v4742_v27 }
  0xbd   : > { %425 = vst.msk [vmem:[#allocation4 + $0xf0] sm:$0xff] %vm266_vm2, %v4742_v27  ;;  %426 = vst.msk [vmem:[#allocation4 + $0xf8] sm:$0xff] %vm266_vm2, %v4742_v27 }
  0xbe   : > { %427 = vst.msk [vmem:[#allocation4 + $0x100] sm:$0xff] %vm266_vm2, %v4742_v27  ;;  %428 = vst.msk [vmem:[#allocation4 + $0x108] sm:$0xff] %vm266_vm2, %v4742_v27 }
  0xbf   : > { %429 = vst.msk [vmem:[#allocation4 + $0x110] sm:$0xff] %vm266_vm2, %v4742_v27  ;;  %430 = vst.msk [vmem:[#allocation4 + $0x118] sm:$0xff] %vm266_vm2, %v4742_v27 }
  0xc0   : > { %v4963_v0 = vpop.permute.xlu0 %1281  ;;  %v4969_v3 = vpop.permute.xlu1 %1284  ;;  %431 = vst.msk [vmem:[#allocation4 + $0x120] sm:$0xff] %vm266_vm2, %v4742_v27  ;;  %432 = vst.msk [vmem:[#allocation4 + $0x128] sm:$0xff] %vm266_vm2, %v4742_v27 }
  0xc1   : > { %433 = vst.msk [vmem:[#allocation4 + $0x130] sm:$0xff] %vm266_vm2, %v4742_v27  ;;  %434 = vst.msk [vmem:[#allocation4 + $0x138] sm:$0xff] %vm266_vm2, %v4742_v27 }
  0xc2   : > { %435 = vst.msk [vmem:[#allocation4 + $0x140] sm:$0xff] %vm266_vm2, %v4742_v27  ;;  %436 = vst.msk [vmem:[#allocation4 + $0x148] sm:$0xff] %vm266_vm2, %v4742_v27 }
  0xc3   : > { %437 = vst.msk [vmem:[#allocation4 + $0x150] sm:$0xff] %vm266_vm2, %v4742_v27  ;;  %438 = vst.msk [vmem:[#allocation4 + $0x158] sm:$0xff] %vm266_vm2, %v4742_v27 }
  0xc4   : > { %v4967_v2 = vpop.permute.xlu0 %1287  ;;  %v4973_v5 = vpop.permute.xlu1 %1290  ;;  %439 = vst.msk [vmem:[#allocation4 + $0x160] sm:$0xff] %vm266_vm2, %v4742_v27  ;;  %440 = vst.msk [vmem:[#allocation4 + $0x168] sm:$0xff] %vm266_vm2, %v4742_v27 }
  0xc5   : > { %441 = vst.msk [vmem:[#allocation4 + $0x170] sm:$0xff] %vm266_vm2, %v4742_v27  ;;  %442 = vst.msk [vmem:[#allocation4 + $0x178] sm:$0xff] %vm266_vm2, %v4742_v27 }
  0xc6   : > { %443 = vst.msk [vmem:[#allocation4 + $0x180] sm:$0xff] %vm266_vm2, %v4742_v27  ;;  %444 = vst.msk [vmem:[#allocation4 + $0x188] sm:$0xff] %vm266_vm2, %v4742_v27 }
  0xc7   : > { %445 = vst.msk [vmem:[#allocation4 + $0x190] sm:$0xff] %vm266_vm2, %v4742_v27  ;;  %446 = vst.msk [vmem:[#allocation4 + $0x198] sm:$0xff] %vm266_vm2, %v4742_v27 }
  0xc8   : > { %v4971_v4 = vpop.permute.xlu0 %1293  ;;  %v4977_v8 = vpop.permute.xlu1 %1296  ;;  %447 = vst.msk [vmem:[#allocation4 + $0x1a0] sm:$0xff] %vm266_vm2, %v4742_v27  ;;  %448 = vst.msk [vmem:[#allocation4 + $0x1a8] sm:$0xff] %vm266_vm2, %v4742_v27 }
  0xc9   : > { %449 = vst.msk [vmem:[#allocation4 + $0x1b0] sm:$0xff] %vm266_vm2, %v4742_v27  ;;  %450 = vst.msk [vmem:[#allocation4 + $0x1b8] sm:$0xff] %vm266_vm2, %v4742_v27 }
  0xca   : > { %451 = vst.msk [vmem:[#allocation4 + $0x1c0] sm:$0xff] %vm266_vm2, %v4742_v27  ;;  %452 = vst.msk [vmem:[#allocation4 + $0x1c8] sm:$0xff] %vm266_vm2, %v4742_v27 }
  0xcb   : > { %453 = vst.msk [vmem:[#allocation4 + $0x1d0] sm:$0xff] %vm266_vm2, %v4742_v27  ;;  %454 = vst.msk [vmem:[#allocation4 + $0x1d8] sm:$0xff] %vm266_vm2, %v4742_v27 }
  0xcc   : > { %v4975_v6 = vpop.permute.xlu0 %1299  ;;  %v4991_v15 = vpop.permute.xlu1 %1302  ;;  %455 = vst.msk [vmem:[#allocation4 + $0x1e0] sm:$0xff] %vm266_vm2, %v4742_v27  ;;  %456 = vst.msk [vmem:[#allocation4 + $0x1e8] sm:$0xff] %vm266_vm2, %v4742_v27 }
  0xcd   : > { %457 = vst.msk [vmem:[#allocation4 + $0x1f0] sm:$0xff] %vm266_vm2, %v4742_v27  ;;  %458 = vst.msk [vmem:[#allocation4 + $0x1f8] sm:$0xff] %vm266_vm2, %v4742_v27 }
  0xd0   : > { %v4979_v9 = vpop.permute.xlu0 %1305  ;;  %v5145_v26 = vpop.permute.xlu1 %1308 }
  0xd1   : > { %vm1432_vm4 = vcmp.eq.s32.totalorder %v4986_v11, %v4979_v9  ;;  %vm1433_vm10 = vcmp.eq.s32.totalorder %v4986_v11, %v5145_v26 }
  0xd4   : > { %v1312_v16 = vpop.permute.xlu0 %1311  ;;  %v1315_v32 = vpop.permute.xlu1 %1314 }
  0xd5   : > { %vm1434_vm1 = vcmp.eq.s32.totalorder %v4986_v11, %v1312_v16  ;;  %vm1435_vm7 = vcmp.eq.s32.totalorder %v4986_v11, %v1315_v32 }
  0xd8   : > { %v1318_v39 = vpop.permute.xlu0 %1317 }
  0xd9   : > { %vm1436_vm13 = vcmp.eq.s32.totalorder %v4986_v11, %v1318_v39 }
  0xdc   : > { %v1324_v9 = vpop.permute.xlu0 %1323 }
  0xdd   : > { %vm1438_vm9 = vcmp.eq.s32.totalorder %v4986_v11, %v1324_v9 }
  0xee   : > { %v4118_v12 = vpop.f32.mrf.mxu0  ;;  %v4150_v13 = vpop.f32.mrf.mxu1 }
  0xef   : > { %v4989_v14 = vadd.f32 %v4118_v12, %v4984_v10  ;;  %v4994_v17 = vadd.f32 %v4150_v13, %v4984_v10 }
  0xf0   : > { %v820_v18 = vpop.f32.mrf.mxu0  ;;  %v5136_v23 = vpop.f32.mrf.mxu1 }
  0xf1   : > { %7377 = vst [vmem:[#allocation5_spill] sm:$0xff] %v4989_v14  ;;  %7378 = vst [vmem:[#allocation6_spill] sm:$0xff] %v4994_v17  ;;  %1853 = vmax.xlane.f32.xlu1 %v4989_v14  ;;  %v1466_v19 = vsel %vm1402_vm0, %v4989_v14, 0.0  ;;  %v5000_v20 = vadd.f32 %v4984_v10, %v820_v18  ;;  %v5004_v21 = vsel %vm1434_vm1, %v4994_v17, 0.0  ;;  %v5405_v28 = vadd.f32 %v4984_v10, %v5136_v23 }
  0xf2   : > { %1532 = vadd.xlane.f32.xlu0 %v1466_v19  ;;  %v5138_v24 = vpop.f32.mrf.mxu0  ;;  %v4151_v30 = vpop.f32.mrf.mxu1  ;;  %vm1405_vm0 = vcmp.eq.s32.totalorder %v4986_v11, %v4929_v47 }
  0xf3   : > { %7379 = vst [vmem:[#allocation7_spill] sm:$0xff] %v5000_v20  ;;  %v1464_v25 = vsel %vm1400_vm3, %v5000_v20, 0.0  ;;  %7380 = vst [vmem:[#allocation8_spill] sm:$0xff] %v5405_v28  ;;  %v5409_v29 = vadd.f32 %v5138_v24, %v4984_v10  ;;  %v1496_v34 = vsel %vm1432_vm4, %v5405_v28, 0.0  ;;  %v5422_v35 = vadd.f32 %v4151_v30, %v4984_v10  ;;  %v1321_v19 = vpop.permute.xlu1 %1320 }
  0xf4   : > { %v823_v31 = vpop.f32.mrf.mxu0  ;;  %v951_v36 = vpop.f32.mrf.mxu1  ;;  %vm1437_vm3 = vcmp.eq.s32.totalorder %v4986_v11, %v1321_v19  ;;  %vm1408_vm4 = vcmp.eq.s32.totalorder %v4986_v11, %v4931_v48 }
  0xf5   : > { %1596 = vadd.xlane.f32.xlu1 %v5004_v21  ;;  %7381 = vst [vmem:[#allocation9_spill] sm:$0xff] %v5409_v29  ;;  %v5416_v33 = vadd.f32 %v4984_v10, %v823_v31  ;;  %7383 = vst [vmem:[#allocation11_spill] sm:$0xff] %v5422_v35  ;;  %v1467_v38 = vsel %vm1403_vm5, %v5409_v29, 0.0  ;;  %v1499_v7 = vsel %vm1435_vm7, %v5422_v35, 0.0  ;;  %v5440_v13 = vadd.f32 %v4984_v10, %v951_v36 }
  0xf6   : > { %1528 = vadd.xlane.f32.xlu0 %v1464_v25  ;;  %v4122_v37 = vpop.f32.mrf.mxu0  ;;  %v4154_v43 = vpop.f32.mrf.mxu1  ;;  %vm1411_vm5 = vcmp.eq.s32.totalorder %v4986_v11, %v4941_v53 }
  0xf7   : > { %7382 = vst [vmem:[#allocation10_spill] sm:$0xff] %v5416_v33  ;;  %v5428_v40 = vadd.f32 %v4122_v37, %v4984_v10  ;;  %v1465_v41 = vsel %vm1401_vm6, %v5416_v33, 0.0  ;;  %v5436_v12 = vadd.f32 %v4154_v43, %v4984_v10  ;;  %7386 = vst [vmem:[#allocation14_spill] sm:$0xff] %v5440_v13  ;;  %v1497_v25 = vsel %vm1433_vm10, %v5440_v13, 0.0  ;;  %v1327_v27 = vpop.permute.xlu1 %1326  ;;  %v1330_v37 = vpop.permute.xlu0 %1329 }
  0xf8   : > { %v836_v45 = vpop.f32.mrf.mxu0  ;;  %v964_v16 = vpop.f32.mrf.mxu1  ;;  %vm1439_vm14 = vcmp.eq.s32.totalorder %v4986_v11, %v1327_v27  ;;  %vm1440_vm6 = vcmp.eq.s32.totalorder %v4986_v11, %v1330_v37 }
  0xf9   : > { %1849 = vmax.xlane.f32.xlu1 %v5000_v20  ;;  %7384 = vst [vmem:[#allocation12_spill] sm:$0xff] %v5428_v40  ;;  %7385 = vst [vmem:[#allocation13_spill] sm:$0xff] %v5436_v12  ;;  %v1470_v42 = vsel %vm1406_vm8, %v5428_v40, 0.0  ;;  %v5445_v21 = vadd.f32 %v4984_v10, %v836_v45  ;;  %v1502_v46 = vsel %vm1438_vm9, %v5436_v12, 0.0  ;;  %v5457_v30 = vadd.f32 %v4984_v10, %v964_v16 }
  0xfa   : > { %1855 = vmax.xlane.f32.xlu0 %v5409_v29  ;;  %v4123_v18 = vpop.f32.mrf.mxu0  ;;  %v4155_v23 = vpop.f32.mrf.mxu1  ;;  %vm1414_vm8 = vcmp.eq.s32.totalorder %v4986_v11, %v4943_v54  ;;  %vm1409_vm9 = vcmp.eq.s32.totalorder %v4986_v11, %v4937_v51 }
  0xfb   : > { %v5451_v22 = vadd.f32 %v4123_v18, %v4984_v10  ;;  %7388 = vst [vmem:[#allocation16_spill] sm:$0xff] %v5457_v30  ;;  %v1468_v31 = vsel %vm1404_vm11, %v5445_v21, 0.0  ;;  %v5463_v26 = vadd.f32 %v4155_v23, %v4984_v10  ;;  %v1336_v39 = vpop.permute.xlu0 %1335  ;;  %v1333_v23 = vpop.permute.xlu1 %1332 }
  0xfc   : > { %v839_v24 = vpop.f32.mrf.mxu0  ;;  %v967_v32 = vpop.f32.mrf.mxu1  ;;  %vm1442_vm1 = vcmp.eq.s32.totalorder %v4986_v11, %v1336_v39  ;;  %vm1441_vm11 = vcmp.eq.s32.totalorder %v4986_v11, %v1333_v23 }
  0xfd   : > { %1592 = vadd.xlane.f32.xlu1 %v1496_v34  ;;  %7387 = vst [vmem:[#allocation15_spill] sm:$0xff] %v5451_v22  ;;  %7389 = vst [vmem:[#allocation17_spill] sm:$0xff] %v5463_v26  ;;  %v1471_v36 = vsel %vm1407_vm12, %v5451_v22, 0.0  ;;  %v5473_v49 = vadd.f32 %v4984_v10, %v839_v24  ;;  %v1503_v45 = vsel %vm1439_vm14, %v5463_v26, 0.0  ;;  %vm1412_vm12 = vcmp.eq.s32.totalorder %v4986_v11, %v4939_v52 }
  0xfe   : > { %1534 = vadd.xlane.f32.xlu0 %v1467_v38  ;;  %v4126_v34 = vpop.f32.mrf.mxu0  ;;  %v1500_v38 = vsel %vm1436_vm13, %v5457_v30, 0.0  ;;  %vm1415_vm13 = vcmp.eq.s32.totalorder %v4986_v11, %v4949_v57 }
  0xff   : > { %v5468_v44 = vadd.f32 %v4126_v34, %v4984_v10 }
 0x100   : > { %v852_v43 = vpop.f32.mrf.mxu0 }
 0x101   : > { %1530 = vadd.xlane.f32.xlu1 %v1465_v41  ;;  %7390 = vst [vmem:[#allocation18_spill] sm:$0xff] %v5468_v44  ;;  %v4158_v41 = vpop.f32.mrf.mxu1  ;;  %v1474_v9 = vsel %vm1410_vm15, %v5468_v44, 0.0  ;;  %v5490_v50 = vadd.f32 %v4984_v10, %v852_v43 }
 0x102   : > { %1598 = vadd.xlane.f32.xlu0 %v1499_v7  ;;  %v5479_v7 = vadd.f32 %v4158_v41, %v4984_v10  ;;  %v4127_v18 = vpop.f32.mrf.mxu0 }
 0x103   : > { %v980_v16 = vpop.f32.mrf.mxu1  ;;  %7393 = vst [vmem:[#allocation21_spill] sm:$0xff] %v5490_v50  ;;  %v5495_v47 = vadd.f32 %v4127_v18, %v4984_v10 }
 0x104   : > { %7391 = vst [vmem:[#allocation19_spill] sm:$0xff] %v5479_v7  ;;  %v1506_v24 = vsel %vm1442_vm1, %v5479_v7, 0.0  ;;  %v855_v27 = vpop.f32.mrf.mxu0  ;;  %v5501_v34 = vadd.f32 %v4984_v10, %v980_v16  ;;  %vm1413_vm1 = vcmp.eq.s32.totalorder %v4986_v11, %v4945_v55 }
 0x105   : > { %1540 = vadd.xlane.f32.xlu1 %v1470_v42  ;;  %v5485_v42 = vadd.f32 %v4984_v10, %v967_v32  ;;  %7394 = vst [vmem:[#allocation22_spill] sm:$0xff] %v5495_v47  ;;  %v1339_v32 = vpop.permute.xlu1 %1338  ;;  %v1475_v43 = vsel %vm1411_vm5, %v5495_v47, 0.0  ;;  %v5517_v53 = vadd.f32 %v4984_v10, %v855_v27  ;;  %vm1416_vm5 = vcmp.eq.s32.totalorder %v4986_v11, %v4947_v56 }
 0x106   : > { %1851 = vmax.xlane.f32.xlu0 %v5416_v33  ;;  %7395 = vst [vmem:[#allocation23_spill] sm:$0xff] %v5501_v34  ;;  %v4130_v41 = vpop.f32.mrf.mxu0  ;;  %v1504_v39 = vsel %vm1440_vm6, %v5501_v34, 0.0  ;;  %vm1443_vm7 = vcmp.eq.s32.totalorder %v4986_v11, %v1339_v32  ;;  %vm1419_vm6 = vcmp.eq.s32.totalorder %v4986_v11, %v4957_v61 }
 0x107   : > { %7392 = vst [vmem:[#allocation20_spill] sm:$0xff] %v5485_v42  ;;  %v5512_v48 = vadd.f32 %v4130_v41, %v4984_v10  ;;  %7398 = vst [vmem:[#allocation26_spill] sm:$0xff] %v5517_v53  ;;  %v1473_v32 = vsel %vm1409_vm9, %v5517_v53, 0.0  ;;  %vm1422_vm9 = vcmp.eq.s32.totalorder %v4986_v11, %v4959_v62 }
 0x108   : > { %v868_v16 = vpop.f32.mrf.mxu0 }
 0x109   : > { %1604 = vadd.xlane.f32.xlu1 %v1502_v46  ;;  %v1469_v46 = vsel %vm1405_vm0, %v5473_v49, 0.0  ;;  %7397 = vst [vmem:[#allocation25_spill] sm:$0xff] %v5512_v48  ;;  %v5534_v54 = vadd.f32 %v4984_v10, %v868_v16  ;;  %vm1418_vm0 = vcmp.eq.s32.totalorder %v4986_v11, %v4951_v58 }
 0x10a   : > { %1594 = vadd.xlane.f32.xlu0 %v1497_v25  ;;  %v4159_v25 = vpop.f32.mrf.mxu1 }
 0x10b   : > { %v5507_v19 = vadd.f32 %v4159_v25, %v4984_v10  ;;  %7401 = vst [vmem:[#allocation29_spill] sm:$0xff] %v5534_v54 }
 0x10d   : > { %1536 = vadd.xlane.f32.xlu1 %v1468_v31  ;;  %v1501_v31 = vsel %vm1437_vm3, %v5485_v42, 0.0  ;;  %7396 = vst [vmem:[#allocation24_spill] sm:$0xff] %v5507_v19  ;;  %v1507_v18 = vsel %vm1443_vm7, %v5507_v19, 0.0 }
 0x10e   : > { %1542 = vadd.xlane.f32.xlu0 %v1471_v36  ;;  %v1472_v36 = vsel %vm1408_vm4, %v5490_v50, 0.0 }
 0x111   : > { %1600 = vadd.xlane.f32.xlu1 %v1500_v38  ;;  %v983_v38 = vpop.f32.mrf.mxu1 }
 0x112   : > { %1606 = vadd.xlane.f32.xlu0 %v1503_v45  ;;  %v1342_v45 = vpop.permute.xlu0 %1341  ;;  %v5529_v25 = vadd.f32 %v4984_v10, %v983_v38 }
 0x113   : > { %vm1444_vm14 = vcmp.eq.s32.totalorder %v4986_v11, %v1342_v45 }
 0x114   : > { %7400 = vst [vmem:[#allocation28_spill] sm:$0xff] %v5529_v25 }
 0x115   : > { %1548 = vadd.xlane.f32.xlu1 %v1474_v9  ;;  %v4162_v9 = vpop.f32.mrf.mxu1 }
 0x116   : > { %1538 = vadd.xlane.f32.xlu0 %v1469_v46  ;;  %v1348_v37 = vpop.permute.xlu0 %1347  ;;  %v5523_v46 = vadd.f32 %v4162_v9, %v4984_v10 }
 0x117   : > { %v996_v27 = vpop.f32.mrf.mxu1  ;;  %vm1446_vm10 = vcmp.eq.s32.totalorder %v4986_v11, %v1348_v37 }
 0x118   : > { %7399 = vst [vmem:[#allocation27_spill] sm:$0xff] %v5523_v46  ;;  %v1510_v41 = vsel %vm1446_vm10, %v5523_v46, 0.0  ;;  %v5545_v16 = vadd.f32 %v4984_v10, %v996_v27  ;;  %vm1417_vm10 = vcmp.eq.s32.totalorder %v4986_v11, %v4953_v59 }
 0x119   : > { %1612 = vadd.xlane.f32.xlu1 %v1506_v24  ;;  %v1478_v24 = vsel %vm1414_vm8, %v5512_v48, 0.0  ;;  %v4163_v38 = vpop.f32.mrf.mxu1 }
 0x11a   : > { %1602 = vadd.xlane.f32.xlu0 %v1501_v31  ;;  %v4131_v31 = vpop.f32.mrf.mxu0  ;;  %7403 = vst [vmem:[#allocation31_spill] sm:$0xff] %v5545_v16  ;;  %v5551_v23 = vadd.f32 %v4163_v38, %v4984_v10  ;;  %v1508_v27 = vsel %vm1444_vm14, %v5545_v16, 0.0  ;;  %vm1423_vm14 = vcmp.eq.s32.totalorder %v4986_v11, %v4965_v1 }
 0x11b   : > { %v5539_v51 = vadd.f32 %v4131_v31, %v4984_v10  ;;  %v999_v37 = vpop.f32.mrf.mxu1 }
 0x11c   : > { %7404 = vst [vmem:[#allocation32_spill] sm:$0xff] %v5551_v23 }
 0x11d   : > { %1544 = vadd.xlane.f32.xlu1 %v1472_v36  ;;  %v1345_v36 = vpop.permute.xlu1 %1344  ;;  %7402 = vst [vmem:[#allocation30_spill] sm:$0xff] %v5539_v51  ;;  %v1479_v31 = vsel %vm1415_vm13, %v5539_v51, 0.0  ;;  %vm1420_vm13 = vcmp.eq.s32.totalorder %v4986_v11, %v4955_v60 }
 0x11e   : > { %1550 = vadd.xlane.f32.xlu0 %v1475_v43  ;;  %v871_v43 = vpop.f32.mrf.mxu0  ;;  %vm1445_vm4 = vcmp.eq.s32.totalorder %v4986_v11, %v1345_v36 }
 0x11f   : > { %v5561_v57 = vadd.f32 %v4984_v10, %v871_v43  ;;  %v5573_v43 = vadd.f32 %v4984_v10, %v999_v37 }
 0x121   : > { %1608 = vadd.xlane.f32.xlu1 %v1504_v39  ;;  %v1505_v39 = vsel %vm1441_vm11, %v5529_v25, 0.0  ;;  %v1351_v9 = vpop.permute.xlu1 %1350  ;;  %7406 = vst [vmem:[#allocation34_spill] sm:$0xff] %v5561_v57  ;;  %7408 = vst [vmem:[#allocation36_spill] sm:$0xff] %v5573_v43 }
 0x122   : > { %1614 = vadd.xlane.f32.xlu0 %v1507_v18  ;;  %v1476_v18 = vsel %vm1412_vm12, %v5534_v54, 0.0  ;;  %vm1447_vm15 = vcmp.eq.s32.totalorder %v4986_v11, %v1351_v9 }
 0x125   : > { %1556 = vadd.xlane.f32.xlu1 %v1478_v24  ;;  %v4134_v24 = vpop.f32.mrf.mxu0 }
 0x126   : > { %1546 = vadd.xlane.f32.xlu0 %v1473_v32  ;;  %v1354_v32 = vpop.permute.xlu0 %1353  ;;  %v5556_v52 = vadd.f32 %v4134_v24, %v4984_v10 }
 0x127   : > { %v884_v38 = vpop.f32.mrf.mxu0  ;;  %vm1448_vm7 = vcmp.eq.s32.totalorder %v4986_v11, %v1354_v32 }
 0x128   : > { %7405 = vst [vmem:[#allocation33_spill] sm:$0xff] %v5556_v52  ;;  %v1482_v9 = vsel %vm1418_vm0, %v5556_v52, 0.0  ;;  %v5579_v55 = vadd.f32 %v4984_v10, %v884_v38 }
 0x129   : > { %1620 = vadd.xlane.f32.xlu1 %v1510_v41  ;;  %v4166_v41 = vpop.f32.mrf.mxu1 }
 0x12a   : > { %1610 = vadd.xlane.f32.xlu0 %v1505_v39  ;;  %v1511_v39 = vsel %vm1447_vm15, %v5551_v23, 0.0  ;;  %v1360_v45 = vpop.permute.xlu0 %1359  ;;  %7409 = vst [vmem:[#allocation37_spill] sm:$0xff] %v5579_v55 }
 0x12b   : > { %v1012_v24 = vpop.f32.mrf.mxu1  ;;  %vm1450_vm3 = vcmp.eq.s32.totalorder %v4986_v11, %v1360_v45  ;;  %v1480_v45 = vsel %vm1416_vm5, %v5579_v55, 0.0 }
 0x12c   : > { %v5591_v38 = vadd.f32 %v4984_v10, %v1012_v24 }
 0x12d   : > { %1552 = vadd.xlane.f32.xlu1 %v1476_v18  ;;  %v5569_v18 = vadd.f32 %v4166_v41, %v4984_v10  ;;  %v4167_v37 = vpop.f32.mrf.mxu1 }
 0x12e   : > { %1558 = vadd.xlane.f32.xlu0 %v1479_v31  ;;  %v4135_v31 = vpop.f32.mrf.mxu0  ;;  %7411 = vst [vmem:[#allocation39_spill] sm:$0xff] %v5591_v38  ;;  %v1366_v14 = vpop.permute.xlu0 %1365  ;;  %v1512_v61 = vsel %vm1448_vm7, %v5591_v38, 0.0  ;;  %vm1427_vm7 = vcmp.eq.s32.totalorder %v4986_v11, %v4973_v5 }
 0x12f   : > { %7407 = vst [vmem:[#allocation35_spill] sm:$0xff] %v5569_v18  ;;  %v1514_v58 = vsel %vm1450_vm3, %v5569_v18, 0.0  ;;  %v5583_v41 = vadd.f32 %v4135_v31, %v4984_v10  ;;  %v5595_v31 = vadd.f32 %v4167_v37, %v4984_v10  ;;  %vm1452_vm15 = vcmp.eq.s32.totalorder %v4986_v11, %v1366_v14 }
 0x130   : > { %v887_v33 = vpop.f32.mrf.mxu0  ;;  %vm1421_vm3 = vcmp.eq.s32.totalorder %v4986_v11, %v4961_v63 }
 0x131   : > { %1616 = vadd.xlane.f32.xlu1 %v1508_v27  ;;  %v1477_v27 = vsel %vm1413_vm1, %v5561_v57, 0.0  ;;  %7410 = vst [vmem:[#allocation38_spill] sm:$0xff] %v5583_v41  ;;  %7412 = vst [vmem:[#allocation40_spill] sm:$0xff] %v5595_v31  ;;  %v5605_v24 = vadd.f32 %v4984_v10, %v887_v33  ;;  %vm1426_vm1 = vcmp.eq.s32.totalorder %v4986_v11, %v4967_v2 }
 0x132   : > { %1622 = vadd.xlane.f32.xlu0 %v1511_v39  ;;  %v1357_v39 = vpop.permute.xlu1 %1356  ;;  %v1372_v32 = vpop.permute.xlu0 %1371 }
 0x133   : > { %7414 = vst [vmem:[#allocation42_spill] sm:$0xff] %v5605_v24  ;;  %vm1454_vm11 = vcmp.eq.s32.totalorder %v4986_v11, %v1372_v32  ;;  %vm1449_vm12 = vcmp.eq.s32.totalorder %v4986_v11, %v1357_v39 }
 0x135   : > { %1564 = vadd.xlane.f32.xlu1 %v1482_v9  ;;  %v1509_v9 = vsel %vm1445_vm4, %v5573_v43, 0.0 }
 0x136   : > { %1554 = vadd.xlane.f32.xlu0 %v1477_v27  ;;  %v1363_v36 = vpop.permute.xlu1 %1362  ;;  %v1015_v27 = vpop.f32.mrf.mxu1 }
 0x137   : > { %vm1451_vm8 = vcmp.eq.s32.totalorder %v4986_v11, %v1363_v36  ;;  %v5617_v33 = vadd.f32 %v4984_v10, %v1015_v27 }
 0x138   : > { %v4170_v37 = vpop.f32.mrf.mxu1 }
 0x139   : > { %1628 = vadd.xlane.f32.xlu1 %v1514_v58  ;;  %v4138_v58 = vpop.f32.mrf.mxu0  ;;  %v5613_v36 = vadd.f32 %v4170_v37, %v4984_v10  ;;  %7416 = vst [vmem:[#allocation44_spill] sm:$0xff] %v5617_v33 }
 0x13a   : > { %1618 = vadd.xlane.f32.xlu0 %v1509_v9  ;;  %v1483_v9 = vsel %vm1419_vm6, %v5583_v41, 0.0  ;;  %v5601_v56 = vadd.f32 %v4138_v58, %v4984_v10  ;;  %v1369_v20 = vpop.permute.xlu1 %1368  ;;  %vm1424_vm6 = vcmp.eq.s32.totalorder %v4986_v11, %v4963_v0 }
 0x13b   : > { %v900_v29 = vpop.f32.mrf.mxu0  ;;  %7415 = vst [vmem:[#allocation43_spill] sm:$0xff] %v5613_v36  ;;  %v1518_v62 = vsel %vm1454_vm11, %v5613_v36, 0.0  ;;  %v1378_v36 = vpop.permute.xlu0 %1377  ;;  %vm1453_vm5 = vcmp.eq.s32.totalorder %v4986_v11, %v1369_v20  ;;  %vm1425_vm11 = vcmp.eq.s32.totalorder %v4986_v11, %v4969_v3 }
 0x13c   : > { %7413 = vst [vmem:[#allocation41_spill] sm:$0xff] %v5601_v56  ;;  %v1486_v58 = vsel %vm1422_vm9, %v5601_v56, 0.0  ;;  %v5623_v59 = vadd.f32 %v4984_v10, %v900_v29 }
 0x13d   : > { %1560 = vadd.xlane.f32.xlu1 %v1480_v45  ;;  %v1515_v45 = vsel %vm1451_vm8, %v5595_v31, 0.0  ;;  %vm1456_vm8 = vcmp.eq.s32.totalorder %v4986_v11, %v1378_v36 }
 0x13e   : > { %1566 = vadd.xlane.f32.xlu0 %v1483_v9  ;;  %v1028_v9 = vpop.f32.mrf.mxu1  ;;  %7417 = vst [vmem:[#allocation45_spill] sm:$0xff] %v5623_v59  ;;  %v1375_v39 = vpop.permute.xlu1 %1374  ;;  %v1484_v32 = vsel %vm1420_vm13, %v5623_v59, 0.0 }
 0x13f   : > { %v5635_v29 = vadd.f32 %v4984_v10, %v1028_v9  ;;  %vm1455_vm0 = vcmp.eq.s32.totalorder %v4986_v11, %v1375_v39  ;;  %v1384_v14 = vpop.permute.xlu0 %1383 }
 0x140   : > { %v4171_v27 = vpop.f32.mrf.mxu1  ;;  %vm1458_vm4 = vcmp.eq.s32.totalorder %v4986_v11, %v1384_v14 }
 0x141   : > { %1624 = vadd.xlane.f32.xlu1 %v1512_v61  ;;  %v4139_v61 = vpop.f32.mrf.mxu0  ;;  %7419 = vst [vmem:[#allocation47_spill] sm:$0xff] %v5635_v29  ;;  %v1516_v1 = vsel %vm1452_vm15, %v5635_v29, 0.0  ;;  %vm1431_vm15 = vcmp.eq.s32.totalorder %v4986_v11, %v4991_v15 }
 0x142   : > { %1630 = vadd.xlane.f32.xlu0 %v1515_v45  ;;  %v1481_v45 = vsel %vm1417_vm10, %v5605_v24, 0.0  ;;  %v5627_v37 = vadd.f32 %v4139_v61, %v4984_v10  ;;  %v5639_v61 = vadd.f32 %v4171_v27, %v4984_v10  ;;  %vm1430_vm10 = vcmp.eq.s32.totalorder %v4986_v11, %v4975_v6 }
 0x143   : > { %v903_v31 = vpop.f32.mrf.mxu0 }
 0x144   : > { %7418 = vst [vmem:[#allocation46_spill] sm:$0xff] %v5627_v37  ;;  %7420 = vst [vmem:[#allocation48_spill] sm:$0xff] %v5639_v61  ;;  %v5649_v9 = vadd.f32 %v4984_v10, %v903_v31 }
 0x145   : > { %1572 = vadd.xlane.f32.xlu1 %v1486_v58  ;;  %v1513_v58 = vsel %vm1449_vm12, %v5617_v33, 0.0 }
 0x146   : > { %1562 = vadd.xlane.f32.xlu0 %v1481_v45  ;;  %v1031_v45 = vpop.f32.mrf.mxu1  ;;  %7422 = vst [vmem:[#allocation50_spill] sm:$0xff] %v5649_v9 }
 0x147   : > { %v5661_v31 = vadd.f32 %v4984_v10, %v1031_v45 }
 0x148   : > { %v4174_v27 = vpop.f32.mrf.mxu1 }
 0x149   : > { %1636 = vadd.xlane.f32.xlu1 %v1518_v62  ;;  %v4142_v62 = vpop.f32.mrf.mxu0  ;;  %v5657_v39 = vadd.f32 %v4174_v27, %v4984_v10  ;;  %7424 = vst [vmem:[#allocation52_spill] sm:$0xff] %v5661_v31 }
 0x14a   : > { %1626 = vadd.xlane.f32.xlu0 %v1513_v58  ;;  %v1487_v58 = vsel %vm1423_vm14, %v5627_v37, 0.0  ;;  %v5645_v60 = vadd.f32 %v4142_v62, %v4984_v10  ;;  %vm1428_vm14 = vcmp.eq.s32.totalorder %v4986_v11, %v4971_v4 }
 0x14b   : > { %v916_v33 = vpop.f32.mrf.mxu0  ;;  %7423 = vst [vmem:[#allocation51_spill] sm:$0xff] %v5657_v39  ;;  %v1522_v2 = vsel %vm1458_vm4, %v5657_v39, 0.0 }
 0x14c   : > { %7421 = vst [vmem:[#allocation49_spill] sm:$0xff] %v5645_v60  ;;  %v1490_v62 = vsel %vm1426_vm1, %v5645_v60, 0.0  ;;  %v5667_v63 = vadd.f32 %v4984_v10, %v916_v33 }
 0x14d   : > { %1568 = vadd.xlane.f32.xlu1 %v1484_v32  ;;  %v1519_v32 = vsel %vm1455_vm0, %v5639_v61, 0.0  ;;  %v1381_v61 = vpop.permute.xlu1 %1380 }
 0x14e   : > { %1574 = vadd.xlane.f32.xlu0 %v1487_v58  ;;  %v1044_v58 = vpop.f32.mrf.mxu1  ;;  %7425 = vst [vmem:[#allocation53_spill] sm:$0xff] %v5667_v63  ;;  %v1488_v14 = vsel %vm1424_vm6, %v5667_v63, 0.0  ;;  %vm1457_vm13 = vcmp.eq.s32.totalorder %v4986_v11, %v1381_v61 }
 0x14f   : > { %v5679_v33 = vadd.f32 %v4984_v10, %v1044_v58 }
 0x150   : > { %v4175_v45 = vpop.f32.mrf.mxu1 }
 0x151   : > { %1632 = vadd.xlane.f32.xlu1 %v1516_v1  ;;  %v4143_v1 = vpop.f32.mrf.mxu0  ;;  %v1387_v20 = vpop.permute.xlu1 %1386  ;;  %7427 = vst [vmem:[#allocation55_spill] sm:$0xff] %v5679_v33  ;;  %v1520_v5 = vsel %vm1456_vm8, %v5679_v33, 0.0 }
 0x152   : > { %1638 = vadd.xlane.f32.xlu0 %v1519_v32  ;;  %v1485_v32 = vsel %vm1421_vm3, %v5649_v9, 0.0  ;;  %v5671_v27 = vadd.f32 %v4143_v1, %v4984_v10  ;;  %v5683_v1 = vadd.f32 %v4175_v45, %v4984_v10  ;;  %vm1459_vm9 = vcmp.eq.s32.totalorder %v4986_v11, %v1387_v20 }
 0x153   : > { %v919_v29 = vpop.f32.mrf.mxu0  ;;  %vm1429_vm3 = vcmp.eq.s32.totalorder %v4986_v11, %v4977_v8 }
 0x154   : > { %7426 = vst [vmem:[#allocation54_spill] sm:$0xff] %v5671_v27  ;;  %7428 = vst [vmem:[#allocation56_spill] sm:$0xff] %v5683_v1  ;;  %v5693_v58 = vadd.f32 %v4984_v10, %v919_v29  ;;  %v4651_v29 = vld [vmem:[%s7209_s2] ss:$0 sm:$0xff] }
 0x155   : > { %1580 = vadd.xlane.f32.xlu1 %v1490_v62  ;;  %v1517_v62 = vsel %vm1453_vm5, %v5661_v31, 0.0  ;;  %v1390_v31 = vpop.permute.xlu0 %1389 }
 0x156   : > { %1570 = vadd.xlane.f32.xlu0 %v1485_v32  ;;  %v1047_v32 = vpop.f32.mrf.mxu1  ;;  %7430 = vst [vmem:[#allocation58_spill] sm:$0xff] %v5693_v58  ;;  %vm1460_vm0 = vcmp.eq.s32.totalorder %v4986_v11, %v1390_v31 }
 0x158   : > { %v4178_v45 = vpop.f32.mrf.mxu1 }
 0x159   : > { %1644 = vadd.xlane.f32.xlu1 %v1522_v2  ;;  %v4146_v2 = vpop.f32.mrf.mxu0  ;;  %v1396_v36 = vpop.permute.xlu0 %1395  ;;  %v5701_v20 = vadd.f32 %v4178_v45, %v4984_v10 }
 0x15a   : > { %1634 = vadd.xlane.f32.xlu0 %v1517_v62  ;;  %v1491_v62 = vsel %vm1427_vm7, %v5671_v27, 0.0  ;;  %v5689_v0 = vadd.f32 %v4146_v2, %v4984_v10  ;;  %vm1462_vm12 = vcmp.eq.s32.totalorder %v4986_v11, %v1396_v36 }
 0x15b   : > { %v932_v39 = vpop.f32.mrf.mxu0  ;;  %7431 = vst [vmem:[#allocation59_spill] sm:$0xff] %v5701_v20  ;;  %v1526_v10 = vsel %vm1462_vm12, %v5701_v20, 0.0 }
 0x15c   : > { %7429 = vst [vmem:[#allocation57_spill] sm:$0xff] %v5689_v0  ;;  %v1494_v2 = vsel %vm1430_vm10, %v5689_v0, 0.0  ;;  %v5712_v3 = vadd.f32 %v4651_v29, %v932_v39 }
 0x15d   : > { %1576 = vadd.xlane.f32.xlu1 %v1488_v14  ;;  %v1523_v14 = vsel %vm1459_vm9, %v5683_v1, 0.0  ;;  %v4147_v6 = vpop.f32.mrf.mxu0  ;;  %v1393_v1 = vpop.permute.xlu1 %1392 }
 0x15e   : > { %1582 = vadd.xlane.f32.xlu0 %v1491_v62  ;;  %v5707_v62 = vadd.f32 %v4651_v29, %v1047_v32  ;;  %7433 = vst [vmem:[#allocation61_spill] sm:$0xff] %v5712_v3  ;;  %v5715_v45 = vadd.f32 %v4651_v29, %v4147_v6  ;;  %v1492_v61 = vsel %vm1428_vm14, %v5712_v3, 0.0  ;;  %vm1461_vm4 = vcmp.eq.s32.totalorder %v4986_v11, %v1393_v1 }
 0x160   : > { %7432 = vst [vmem:[#allocation60_spill] sm:$0xff] %v5707_v62  ;;  %7434 = vst [vmem:[#allocation62_spill] sm:$0xff] %v5715_v45  ;;  %v1521_v32 = vsel %vm1457_vm13, %v5707_v62, 0.0  ;;  %v1495_v6 = vsel %vm1431_vm15, %v5715_v45, 0.0 }
 0x161   : > { %1640 = vadd.xlane.f32.xlu1 %v1520_v5  ;;  %v1489_v5 = vsel %vm1425_vm11, %v5693_v58, 0.0  ;;  %v1399_v39 = vpop.permute.xlu1 %1398 }
 0x162   : > { %1646 = vadd.xlane.f32.xlu0 %v1523_v14  ;;  %v1060_v14 = vpop.f32.mrf.mxu1  ;;  %vm1463_vm1 = vcmp.eq.s32.totalorder %v4986_v11, %v1399_v39  ;;  %v1144_v11 = vld [vmem:[#allocation4] sm:$0xff] }
 0x163   : > { %v5722_v36 = vadd.f32 %v4651_v29, %v1060_v14 }
 0x165   : > { %1588 = vadd.xlane.f32.xlu1 %v1494_v2  ;;  %v4179_v2 = vpop.f32.mrf.mxu1  ;;  %7435 = vst [vmem:[#allocation63_spill] sm:$0xff] %v5722_v36  ;;  %v1524_v4 = vsel %vm1460_vm0, %v5722_v36, 0.0 }
 0x166   : > { %1578 = vadd.xlane.f32.xlu0 %v1489_v5  ;;  %v5725_v5 = vadd.f32 %v4651_v29, %v4179_v2 }
 0x167   : > { %v1063_v14 = vpop.f32.mrf.mxu1 }
 0x168   : > { %7436 = vst [vmem:[#allocation64_spill] sm:$0xff] %v5725_v5  ;;  %v1527_v15 = vsel %vm1463_vm1, %v5725_v5, 0.0  ;;  %v5736_v2 = vadd.f32 %v4651_v29, %v1063_v14 }
 0x169   : > { %1652 = vadd.xlane.f32.xlu1 %v1526_v10  ;;  %v935_v10 = vpop.f32.mrf.mxu0 }
 0x16a   : > { %1642 = vadd.xlane.f32.xlu0 %v1521_v32  ;;  %v5731_v32 = vadd.f32 %v4651_v29, %v935_v10  ;;  %7438 = vst [vmem:[#allocation66_spill] sm:$0xff] %v5736_v2  ;;  %v1525_v39 = vsel %vm1461_vm4, %v5736_v2, 0.0 }
 0x16c   : > { %7437 = vst [vmem:[#allocation65_spill] sm:$0xff] %v5731_v32  ;;  %v1493_v31 = vsel %vm1429_vm3, %v5731_v32, 0.0 }
 0x16d   : > { %1584 = vadd.xlane.f32.xlu1 %v1492_v61  ;;  %v5741_v61 = vld [vmem:[#allocation2 + $0x10] sm:$0xff] }
 0x16e   : > { %1590 = vadd.xlane.f32.xlu0 %v1495_v6  ;;  %7439 = vst [vmem:[#allocation67_spill] sm:$0xff] %v5741_v61  ;;  %v1146_v6 = vld [vmem:[#allocation4 + $0x10] sm:$0xff] }
 0x171   : > { %1648 = vadd.xlane.f32.xlu1 %v1524_v4 }
 0x172   : > { %1654 = vadd.xlane.f32.xlu0 %v1527_v15  ;;  %v1178_v15 = vld [vmem:[#allocation4 + $0x110] sm:$0xff] }
 0x175   : > { %1857 = vmax.xlane.f32.xlu1 %v5445_v21 }
 0x176   : > { %1586 = vadd.xlane.f32.xlu0 %v1493_v31 }
 0x179   : > { %1861 = vmax.xlane.f32.xlu1 %v5428_v40  ;;  %v5753_v40 = vld [vmem:[#allocation2] sm:$0xff] }
 0x17a   : > { %v1854_v10 = vpop.xlane.xlu1 %1853  ;;  %1650 = vadd.xlane.f32.xlu0 %v1525_v39 }
 0x17b   : > { %v5746_v8 = vmax.f32 %v5741_v61, %v1854_v10  ;;  %v1533_v29 = vpop.xlane.xlu0 %1532 }
 0x17c   : > { %v1658_v4 = vadd.f32 %v1533_v29, %v1146_v6  ;;  %v5757_v6 = vld [vmem:[#allocation2 + $0x18] sm:$0xff] }
 0x17d   : > { %3131 = vst.msk [vmem:[#allocation2 + $0x10] sm:$0xff] %vm266_vm2, %v5746_v8  ;;  %1865 = vmax.xlane.f32.xlu1 %v5490_v50  ;;  %7440 = vst [vmem:[#allocation68_spill] sm:$0xff] %v5757_v6 }
 0x17e   : > { %1723 = vst.msk [vmem:[#allocation4 + $0x10] sm:$0xff] %vm266_vm2, %v1658_v4  ;;  %v1597_v1 = vpop.xlane.xlu1 %1596  ;;  %1859 = vmax.xlane.f32.xlu0 %v5473_v49 }
 0x17f   : > { %v1690_v14 = vadd.f32 %v1597_v1, %v1178_v15  ;;  %v1529_v31 = vpop.xlane.xlu0 %1528  ;;  %v1147_v1 = vld [vmem:[#allocation4 + $0x18] sm:$0xff] }
 0x180   : > { %v1656_v39 = vadd.f32 %v1529_v31, %v1144_v11  ;;  %v1176_v11 = vld [vmem:[#allocation4 + $0x100] sm:$0xff] }
 0x181   : > { %1755 = vst.msk [vmem:[#allocation4 + $0x110] sm:$0xff] %vm266_vm2, %v1690_v14  ;;  %1869 = vmax.xlane.f32.xlu1 %v5468_v44  ;;  %v1145_v44 = vld [vmem:[#allocation4 + $0x8] sm:$0xff] }
 0x182   : > { %1721 = vst.msk [vmem:[#allocation4] sm:$0xff] %vm266_vm2, %v1656_v39  ;;  %v1850_v10 = vpop.xlane.xlu1 %1849  ;;  %1863 = vmax.xlane.f32.xlu0 %v5451_v22 }
 0x183   : > { %v5762_v29 = vmax.f32 %v5753_v40, %v1850_v10  ;;  %v1856_v4 = vpop.xlane.xlu0 %1855 }
 0x184   : > { %v5765_v15 = vmax.f32 %v5757_v6, %v1856_v4  ;;  %v1179_v4 = vld [vmem:[#allocation4 + $0x118] sm:$0xff]  ;;  %v1150_v6 = vld [vmem:[#allocation4 + $0x30] sm:$0xff] }
 0x185   : > { %3129 = vst.msk [vmem:[#allocation2] sm:$0xff] %vm266_vm2, %v5762_v29  ;;  %1873 = vmax.xlane.f32.xlu1 %v5534_v54 }
 0x186   : > { %3132 = vst.msk [vmem:[#allocation2 + $0x18] sm:$0xff] %vm266_vm2, %v5765_v15  ;;  %v1593_v14 = vpop.xlane.xlu1 %1592  ;;  %1867 = vmax.xlane.f32.xlu0 %v5517_v53  ;;  %v7510_v53 = vld [vmem:[#allocation7_spill] sm:$0xff] }
 0x187   : > { %v1688_v31 = vadd.f32 %v1593_v14, %v1176_v11  ;;  %v1535_v39 = vpop.xlane.xlu0 %1534  ;;  %v5779_v11 = vld [vmem:[#allocation2 + $0x8] sm:$0xff] }
 0x188   : > { %v1659_v10 = vadd.f32 %v1535_v39, %v1147_v1 }
 0x189   : > { %1753 = vst.msk [vmem:[#allocation4 + $0x100] sm:$0xff] %vm266_vm2, %v1688_v31  ;;  %1877 = vmax.xlane.f32.xlu1 %v5512_v48 }
 0x18a   : > { %1724 = vst.msk [vmem:[#allocation4 + $0x18] sm:$0xff] %vm266_vm2, %v1659_v10  ;;  %v1531_v22 = vpop.xlane.xlu1 %1530  ;;  %1871 = vmax.xlane.f32.xlu0 %v5495_v47 }
 0x18b   : > { %v1657_v54 = vadd.f32 %v1531_v22, %v1145_v44  ;;  %v1599_v50 = vpop.xlane.xlu0 %1598  ;;  %v1182_v22 = vld [vmem:[#allocation4 + $0x130] sm:$0xff]  ;;  %v1177_v44 = vld [vmem:[#allocation4 + $0x108] sm:$0xff] }
 0x18c   : > { %v1691_v61 = vadd.f32 %v1599_v50, %v1179_v4  ;;  %v1151_v4 = vld [vmem:[#allocation4 + $0x38] sm:$0xff] }
 0x18d   : > { %1722 = vst.msk [vmem:[#allocation4 + $0x8] sm:$0xff] %vm266_vm2, %v1657_v54  ;;  %1881 = vmax.xlane.f32.xlu1 %v5579_v55  ;;  %v1180_v55 = vld [vmem:[#allocation4 + $0x120] sm:$0xff] }
 0x18e   : > { %1756 = vst.msk [vmem:[#allocation4 + $0x118] sm:$0xff] %vm266_vm2, %v1691_v61  ;;  %v1541_v1 = vpop.xlane.xlu1 %1540  ;;  %1875 = vmax.xlane.f32.xlu0 %v5561_v57 }
 0x18f   : > { %v1662_v14 = vadd.f32 %v1541_v1, %v1150_v6  ;;  %v1852_v31 = vpop.xlane.xlu0 %1851  ;;  %v1148_v6 = vld [vmem:[#allocation4 + $0x20] sm:$0xff] }
 0x190   : > { %v5784_v39 = vmax.f32 %v5779_v11, %v1852_v31 }
 0x191   : > { %1727 = vst.msk [vmem:[#allocation4 + $0x30] sm:$0xff] %vm266_vm2, %v1662_v14  ;;  %1885 = vmax.xlane.f32.xlu1 %v5556_v52 }
 0x192   : > { %3130 = vst.msk [vmem:[#allocation2 + $0x8] sm:$0xff] %vm266_vm2, %v5784_v39  ;;  %v1605_v50 = vpop.xlane.xlu1 %1604  ;;  %1879 = vmax.xlane.f32.xlu0 %v5539_v51 }
 0x193   : > { %v1694_v54 = vadd.f32 %v1605_v50, %v1182_v22  ;;  %v1595_v61 = vpop.xlane.xlu0 %1594  ;;  %v1183_v22 = vld [vmem:[#allocation4 + $0x138] sm:$0xff] }
 0x194   : > { %v1689_v10 = vadd.f32 %v1595_v61, %v1177_v44 }
 0x195   : > { %1759 = vst.msk [vmem:[#allocation4 + $0x130] sm:$0xff] %vm266_vm2, %v1694_v54  ;;  %1889 = vmax.xlane.f32.xlu1 %v5623_v59 }
 0x196   : > { %1754 = vst.msk [vmem:[#allocation4 + $0x108] sm:$0xff] %vm266_vm2, %v1689_v10  ;;  %v1537_v1 = vpop.xlane.xlu1 %1536  ;;  %1883 = vmax.xlane.f32.xlu0 %v5605_v24  ;;  %v1154_v10 = vld [vmem:[#allocation4 + $0x50] sm:$0xff] }
 0x197   : > { %v1660_v14 = vadd.f32 %v1537_v1, %v1148_v6  ;;  %v1543_v31 = vpop.xlane.xlu0 %1542  ;;  %v1149_v6 = vld [vmem:[#allocation4 + $0x28] sm:$0xff] }
 0x198   : > { %v1663_v52 = vadd.f32 %v1543_v31, %v1151_v4  ;;  %v1186_v31 = vld [vmem:[#allocation4 + $0x150] sm:$0xff] }
 0x199   : > { %1725 = vst.msk [vmem:[#allocation4 + $0x20] sm:$0xff] %vm266_vm2, %v1660_v14  ;;  %1893 = vmax.xlane.f32.xlu1 %v5601_v56  ;;  %v7483_v56 = vld [vmem:[#allocation56_spill] sm:$0xff] }
 0x19a   : > { %1728 = vst.msk [vmem:[#allocation4 + $0x38] sm:$0xff] %vm266_vm2, %v1663_v52  ;;  %v1601_v44 = vpop.xlane.xlu1 %1600  ;;  %1887 = vmax.xlane.f32.xlu0 %v5583_v41 }
 0x19b   : > { %v1692_v50 = vadd.f32 %v1601_v44, %v1180_v55  ;;  %v1607_v54 = vpop.xlane.xlu0 %1606  ;;  %v1181_v55 = vld [vmem:[#allocation4 + $0x128] sm:$0xff] }
 0x19c   : > { %v1695_v61 = vadd.f32 %v1607_v54, %v1183_v22 }
 0x19d   : > { %1757 = vst.msk [vmem:[#allocation4 + $0x120] sm:$0xff] %vm266_vm2, %v1692_v50  ;;  %1897 = vmax.xlane.f32.xlu1 %v5667_v63 }
 0x19e   : > { %1760 = vst.msk [vmem:[#allocation4 + $0x138] sm:$0xff] %vm266_vm2, %v1695_v61  ;;  %v1549_v4 = vpop.xlane.xlu1 %1548  ;;  %1891 = vmax.xlane.f32.xlu0 %v5649_v9  ;;  %v1152_v61 = vld [vmem:[#allocation4 + $0x40] sm:$0xff] }
 0x19f   : > { %v1666_v1 = vadd.f32 %v1549_v4, %v1154_v10  ;;  %v1539_v14 = vpop.xlane.xlu0 %1538  ;;  %v1155_v10 = vld [vmem:[#allocation4 + $0x58] sm:$0xff] }
 0x1a0   : > { %v1661_v52 = vadd.f32 %v1539_v14, %v1149_v6 }
 0x1a1   : > { %1731 = vst.msk [vmem:[#allocation4 + $0x50] sm:$0xff] %vm266_vm2, %v1666_v1  ;;  %1901 = vmax.xlane.f32.xlu1 %v5645_v60  ;;  %v6051_v60 = vld [vmem:[#allocation2 + $0xc8] sm:$0xff] }
 0x1a2   : > { %1726 = vst.msk [vmem:[#allocation4 + $0x28] sm:$0xff] %vm266_vm2, %v1661_v52  ;;  %v1613_v22 = vpop.xlane.xlu1 %1612  ;;  %1895 = vmax.xlane.f32.xlu0 %v5627_v37  ;;  %v1184_v52 = vld [vmem:[#allocation4 + $0x140] sm:$0xff]  ;;  %7472 = vst [vmem:[#allocation95_spill] sm:$0xff] %v6051_v60 }
 0x1a3   : > { %v1698_v44 = vadd.f32 %v1613_v22, %v1186_v31  ;;  %v1603_v50 = vpop.xlane.xlu0 %1602  ;;  %v1187_v31 = vld [vmem:[#allocation4 + $0x158] sm:$0xff] }
 0x1a4   : > { %v1693_v54 = vadd.f32 %v1603_v50, %v1181_v55 }
 0x1a5   : > { %1763 = vst.msk [vmem:[#allocation4 + $0x150] sm:$0xff] %vm266_vm2, %v1698_v44  ;;  %1905 = vmax.xlane.f32.xlu1 %v5712_v3  ;;  %v6021_v3 = vld [vmem:[#allocation2 + $0xa8] sm:$0xff] }
 0x1a6   : > { %1758 = vst.msk [vmem:[#allocation4 + $0x128] sm:$0xff] %vm266_vm2, %v1693_v54  ;;  %v1545_v6 = vpop.xlane.xlu1 %1544  ;;  %1899 = vmax.xlane.f32.xlu0 %v5693_v58  ;;  %v1158_v54 = vld [vmem:[#allocation4 + $0x70] sm:$0xff]  ;;  %7466 = vst [vmem:[#allocation91_spill] sm:$0xff] %v6021_v3  ;;  %v7473_v58 = vld [vmem:[#allocation52_spill] sm:$0xff] }
 0x1a7   : > { %v1664_v4 = vadd.f32 %v1545_v6, %v1152_v61  ;;  %v1551_v1 = vpop.xlane.xlu0 %1550  ;;  %v1153_v61 = vld [vmem:[#allocation4 + $0x48] sm:$0xff] }
 0x1a8   : > { %v1667_v14 = vadd.f32 %v1551_v1, %v1155_v10 }
 0x1a9   : > { %1729 = vst.msk [vmem:[#allocation4 + $0x40] sm:$0xff] %vm266_vm2, %v1664_v4  ;;  %1909 = vmax.xlane.f32.xlu1 %v5689_v0 }
 0x1aa   : > { %1732 = vst.msk [vmem:[#allocation4 + $0x58] sm:$0xff] %vm266_vm2, %v1667_v14  ;;  %v1609_v55 = vpop.xlane.xlu1 %1608  ;;  %1903 = vmax.xlane.f32.xlu0 %v5671_v27  ;;  %v1190_v14 = vld [vmem:[#allocation4 + $0x170] sm:$0xff]  ;;  %v6036_v27 = vld [vmem:[#allocation2 + $0xb8] sm:$0xff] }
 0x1ab   : > { %v1696_v22 = vadd.f32 %v1609_v55, %v1184_v52  ;;  %v1615_v44 = vpop.xlane.xlu0 %1614  ;;  %v1185_v52 = vld [vmem:[#allocation4 + $0x148] sm:$0xff]  ;;  %7469 = vst [vmem:[#allocation93_spill] sm:$0xff] %v6036_v27 }
 0x1ac   : > { %v1699_v50 = vadd.f32 %v1615_v44, %v1187_v31 }
 0x1ad   : > { %1761 = vst.msk [vmem:[#allocation4 + $0x140] sm:$0xff] %vm266_vm2, %v1696_v22  ;;  %1913 = vmax.xlane.f32.xlu1 %v5405_v28 }
 0x1ae   : > { %1764 = vst.msk [vmem:[#allocation4 + $0x158] sm:$0xff] %vm266_vm2, %v1699_v50  ;;  %v1557_v10 = vpop.xlane.xlu1 %1556  ;;  %1907 = vmax.xlane.f32.xlu0 %v5731_v32  ;;  %v1156_v50 = vld [vmem:[#allocation4 + $0x60] sm:$0xff] }
 0x1af   : > { %v1670_v6 = vadd.f32 %v1557_v10, %v1158_v54  ;;  %v1547_v4 = vpop.xlane.xlu0 %1546  ;;  %v1159_v54 = vld [vmem:[#allocation4 + $0x78] sm:$0xff] }
 0x1b0   : > { %v1665_v1 = vadd.f32 %v1547_v4, %v1153_v61 }
 0x1b1   : > { %1735 = vst.msk [vmem:[#allocation4 + $0x70] sm:$0xff] %vm266_vm2, %v1670_v6  ;;  %1917 = vmax.xlane.f32.xlu1 %v4994_v17 }
 0x1b2   : > { %1730 = vst.msk [vmem:[#allocation4 + $0x48] sm:$0xff] %vm266_vm2, %v1665_v1  ;;  %v1621_v31 = vpop.xlane.xlu1 %1620  ;;  %1911 = vmax.xlane.f32.xlu0 %v5715_v45  ;;  %v1188_v1 = vld [vmem:[#allocation4 + $0x160] sm:$0xff] }
 0x1b3   : > { %v1702_v55 = vadd.f32 %v1621_v31, %v1190_v14  ;;  %v1611_v22 = vpop.xlane.xlu0 %1610  ;;  %v1191_v14 = vld [vmem:[#allocation4 + $0x178] sm:$0xff] }
 0x1b4   : > { %v1697_v44 = vadd.f32 %v1611_v22, %v1185_v52 }
 0x1b5   : > { %1767 = vst.msk [vmem:[#allocation4 + $0x170] sm:$0xff] %vm266_vm2, %v1702_v55  ;;  %1921 = vmax.xlane.f32.xlu1 %v5457_v30 }
 0x1b6   : > { %1762 = vst.msk [vmem:[#allocation4 + $0x148] sm:$0xff] %vm266_vm2, %v1697_v44  ;;  %v1553_v61 = vpop.xlane.xlu1 %1552  ;;  %1915 = vmax.xlane.f32.xlu0 %v5440_v13  ;;  %v1162_v44 = vld [vmem:[#allocation4 + $0x90] sm:$0xff] }
 0x1b7   : > { %v1668_v10 = vadd.f32 %v1553_v61, %v1156_v50  ;;  %v1559_v6 = vpop.xlane.xlu0 %1558  ;;  %v1157_v50 = vld [vmem:[#allocation4 + $0x68] sm:$0xff] }
 0x1b8   : > { %v1671_v4 = vadd.f32 %v1559_v6, %v1159_v54 }
 0x1b9   : > { %1733 = vst.msk [vmem:[#allocation4 + $0x60] sm:$0xff] %vm266_vm2, %v1668_v10  ;;  %1925 = vmax.xlane.f32.xlu1 %v5436_v12  ;;  %v7476_v12 = vld [vmem:[#allocation43_spill] sm:$0xff] }
 0x1ba   : > { %1736 = vst.msk [vmem:[#allocation4 + $0x78] sm:$0xff] %vm266_vm2, %v1671_v4  ;;  %v1617_v52 = vpop.xlane.xlu1 %1616  ;;  %1919 = vmax.xlane.f32.xlu0 %v5422_v35  ;;  %v1194_v4 = vld [vmem:[#allocation4 + $0x190] sm:$0xff] }
 0x1bb   : > { %v1700_v31 = vadd.f32 %v1617_v52, %v1188_v1  ;;  %v1623_v55 = vpop.xlane.xlu0 %1622  ;;  %v1189_v1 = vld [vmem:[#allocation4 + $0x168] sm:$0xff] }
 0x1bc   : > { %v1703_v22 = vadd.f32 %v1623_v55, %v1191_v14 }
 0x1bd   : > { %1765 = vst.msk [vmem:[#allocation4 + $0x160] sm:$0xff] %vm266_vm2, %v1700_v31  ;;  %1929 = vmax.xlane.f32.xlu1 %v5501_v34 }
 0x1be   : > { %1768 = vst.msk [vmem:[#allocation4 + $0x178] sm:$0xff] %vm266_vm2, %v1703_v22  ;;  %v1565_v54 = vpop.xlane.xlu1 %1564  ;;  %1923 = vmax.xlane.f32.xlu0 %v5485_v42  ;;  %v1160_v22 = vld [vmem:[#allocation4 + $0x80] sm:$0xff] }
 0x1bf   : > { %v1674_v61 = vadd.f32 %v1565_v54, %v1162_v44  ;;  %v1555_v10 = vpop.xlane.xlu0 %1554  ;;  %v1163_v44 = vld [vmem:[#allocation4 + $0x98] sm:$0xff] }
 0x1c0   : > { %v1669_v6 = vadd.f32 %v1555_v10, %v1157_v50 }
 0x1c1   : > { %1739 = vst.msk [vmem:[#allocation4 + $0x90] sm:$0xff] %vm266_vm2, %v1674_v61  ;;  %1933 = vmax.xlane.f32.xlu1 %v5479_v7 }
 0x1c2   : > { %1734 = vst.msk [vmem:[#allocation4 + $0x68] sm:$0xff] %vm266_vm2, %v1669_v6  ;;  %v1629_v14 = vpop.xlane.xlu1 %1628  ;;  %1927 = vmax.xlane.f32.xlu0 %v5463_v26  ;;  %v1192_v6 = vld [vmem:[#allocation4 + $0x180] sm:$0xff] }
 0x1c3   : > { %v1706_v52 = vadd.f32 %v1629_v14, %v1194_v4  ;;  %v1619_v31 = vpop.xlane.xlu0 %1618  ;;  %v1195_v4 = vld [vmem:[#allocation4 + $0x198] sm:$0xff] }
 0x1c4   : > { %v1701_v55 = vadd.f32 %v1619_v31, %v1189_v1 }
 0x1c5   : > { %1771 = vst.msk [vmem:[#allocation4 + $0x190] sm:$0xff] %vm266_vm2, %v1706_v52  ;;  %1937 = vmax.xlane.f32.xlu1 %v5545_v16 }
 0x1c6   : > { %1766 = vst.msk [vmem:[#allocation4 + $0x168] sm:$0xff] %vm266_vm2, %v1701_v55  ;;  %v1561_v50 = vpop.xlane.xlu1 %1560  ;;  %1931 = vmax.xlane.f32.xlu0 %v5529_v25  ;;  %v1166_v55 = vld [vmem:[#allocation4 + $0xb0] sm:$0xff] }
 0x1c7   : > { %v1672_v54 = vadd.f32 %v1561_v50, %v1160_v22  ;;  %v1567_v61 = vpop.xlane.xlu0 %1566  ;;  %v1161_v22 = vld [vmem:[#allocation4 + $0x88] sm:$0xff] }
 0x1c8   : > { %v1675_v10 = vadd.f32 %v1567_v61, %v1163_v44 }
 0x1c9   : > { %1737 = vst.msk [vmem:[#allocation4 + $0x80] sm:$0xff] %vm266_vm2, %v1672_v54  ;;  %1941 = vmax.xlane.f32.xlu1 %v5523_v46 }
 0x1ca   : > { %1740 = vst.msk [vmem:[#allocation4 + $0x98] sm:$0xff] %vm266_vm2, %v1675_v10  ;;  %v1625_v1 = vpop.xlane.xlu1 %1624  ;;  %1935 = vmax.xlane.f32.xlu0 %v5507_v19  ;;  %v1198_v10 = vld [vmem:[#allocation4 + $0x1b0] sm:$0xff]  ;;  %v1196_v19 = vld [vmem:[#allocation4 + $0x1a0] sm:$0xff] }
 0x1cb   : > { %v1704_v14 = vadd.f32 %v1625_v1, %v1192_v6  ;;  %v1631_v52 = vpop.xlane.xlu0 %1630  ;;  %v1193_v6 = vld [vmem:[#allocation4 + $0x188] sm:$0xff] }
 0x1cc   : > { %v1707_v31 = vadd.f32 %v1631_v52, %v1195_v4 }
 0x1cd   : > { %1769 = vst.msk [vmem:[#allocation4 + $0x180] sm:$0xff] %vm266_vm2, %v1704_v14  ;;  %1945 = vmax.xlane.f32.xlu1 %v5591_v38 }
 0x1ce   : > { %1772 = vst.msk [vmem:[#allocation4 + $0x198] sm:$0xff] %vm266_vm2, %v1707_v31  ;;  %v1573_v44 = vpop.xlane.xlu1 %1572  ;;  %1939 = vmax.xlane.f32.xlu0 %v5573_v43  ;;  %v1164_v31 = vld [vmem:[#allocation4 + $0xa0] sm:$0xff] }
 0x1cf   : > { %v1678_v50 = vadd.f32 %v1573_v44, %v1166_v55  ;;  %v1563_v54 = vpop.xlane.xlu0 %1562  ;;  %v1167_v55 = vld [vmem:[#allocation4 + $0xb8] sm:$0xff] }
 0x1d0   : > { %v1673_v61 = vadd.f32 %v1563_v54, %v1161_v22  ;;  %v7441_v44 = vld [vmem:[#allocation44_spill] sm:$0xff] }
 0x1d1   : > { %1743 = vst.msk [vmem:[#allocation4 + $0xb0] sm:$0xff] %vm266_vm2, %v1678_v50  ;;  %1949 = vmax.xlane.f32.xlu1 %v5569_v18 }
 0x1d2   : > { %1738 = vst.msk [vmem:[#allocation4 + $0x88] sm:$0xff] %vm266_vm2, %v1673_v61  ;;  %v1637_v4 = vpop.xlane.xlu1 %1636  ;;  %1943 = vmax.xlane.f32.xlu0 %v5551_v23  ;;  %v1199_v61 = vld [vmem:[#allocation4 + $0x1b8] sm:$0xff]  ;;  %v1170_v23 = vld [vmem:[#allocation4 + $0xd0] sm:$0xff] }
 0x1d3   : > { %v1710_v1 = vadd.f32 %v1637_v4, %v1198_v10  ;;  %v1627_v14 = vpop.xlane.xlu0 %1626 }
 0x1d4   : > { %v1705_v52 = vadd.f32 %v1627_v14, %v1193_v6  ;;  %v7442_v6 = vld [vmem:[#allocation40_spill] sm:$0xff] }
 0x1d5   : > { %1775 = vst.msk [vmem:[#allocation4 + $0x1b0] sm:$0xff] %vm266_vm2, %v1710_v1 }
 0x1d6   : > { %1770 = vst.msk [vmem:[#allocation4 + $0x188] sm:$0xff] %vm266_vm2, %v1705_v52  ;;  %v1569_v22 = vpop.xlane.xlu1 %1568  ;;  %1947 = vmax.xlane.f32.xlu0 %v7441_v44  ;;  %v1165_v52 = vld [vmem:[#allocation4 + $0xa8] sm:$0xff] }
 0x1d7   : > { %v1676_v50 = vadd.f32 %v1569_v22, %v1164_v31  ;;  %v1575_v54 = vpop.xlane.xlu0 %1574  ;;  %v5936_v44 = vld [vmem:[#allocation2 + $0x48] sm:$0xff] }
 0x1d8   : > { %v1679_v43 = vadd.f32 %v1575_v54, %v1167_v55  ;;  %7453 = vst [vmem:[#allocation79_spill] sm:$0xff] %v5936_v44 }
 0x1d9   : > { %1741 = vst.msk [vmem:[#allocation4 + $0xa0] sm:$0xff] %vm266_vm2, %v1676_v50  ;;  %v1202_v50 = vld [vmem:[#allocation4 + $0x1d0] sm:$0xff] }
 0x1da   : > { %1744 = vst.msk [vmem:[#allocation4 + $0xb8] sm:$0xff] %vm266_vm2, %v1679_v43  ;;  %v1633_v10 = vpop.xlane.xlu1 %1632  ;;  %1951 = vmax.xlane.f32.xlu0 %v7442_v6  ;;  %v1197_v43 = vld [vmem:[#allocation4 + $0x1a8] sm:$0xff]  ;;  %v1204_v6 = vld [vmem:[#allocation4 + $0x1e0] sm:$0xff] }
 0x1db   : > { %v1708_v4 = vadd.f32 %v1633_v10, %v1196_v19  ;;  %v1639_v1 = vpop.xlane.xlu0 %1638 }
 0x1dc   : > { %v1711_v14 = vadd.f32 %v1639_v1, %v1199_v61 }
 0x1dd   : > { %1773 = vst.msk [vmem:[#allocation4 + $0x1a0] sm:$0xff] %vm266_vm2, %v1708_v4  ;;  %v1168_v4 = vld [vmem:[#allocation4 + $0xc0] sm:$0xff] }
 0x1de   : > { %1776 = vst.msk [vmem:[#allocation4 + $0x1b8] sm:$0xff] %vm266_vm2, %v1711_v14  ;;  %v1581_v31 = vpop.xlane.xlu1 %1580  ;;  %v1171_v14 = vld [vmem:[#allocation4 + $0xd8] sm:$0xff] }
 0x1df   : > { %v1682_v55 = vadd.f32 %v1581_v31, %v1170_v23  ;;  %v1571_v22 = vpop.xlane.xlu0 %1570 }
 0x1e0   : > { %v1677_v54 = vadd.f32 %v1571_v22, %v1165_v52  ;;  %v1200_v22 = vld [vmem:[#allocation4 + $0x1c0] sm:$0xff] }
 0x1e1   : > { %1747 = vst.msk [vmem:[#allocation4 + $0xd0] sm:$0xff] %vm266_vm2, %v1682_v55 }
 0x1e2   : > { %1742 = vst.msk [vmem:[#allocation4 + $0xa8] sm:$0xff] %vm266_vm2, %v1677_v54  ;;  %2363 = vperm.xlu1 %4226, %v5762_v29   ;;  %v1645_v19 = vpop.xlane.xlu1 %1644  ;;  %v1203_v54 = vld [vmem:[#allocation4 + $0x1d8] sm:$0xff] }
 0x1e3   : > { %v1714_v61 = vadd.f32 %v1645_v19, %v1202_v50  ;;  %v1635_v10 = vpop.xlane.xlu0 %1634 }
 0x1e4   : > { %v1709_v1 = vadd.f32 %v1635_v10, %v1197_v43  ;;  %v1174_v10 = vld [vmem:[#allocation4 + $0xf0] sm:$0xff] }
 0x1e5   : > { %1779 = vst.msk [vmem:[#allocation4 + $0x1d0] sm:$0xff] %vm266_vm2, %v1714_v61 }
 0x1e6   : > { %1774 = vst.msk [vmem:[#allocation4 + $0x1a8] sm:$0xff] %vm266_vm2, %v1709_v1  ;;  %2373 = vperm.xlu1 %4226, %v5746_v8   ;;  %v1577_v23 = vpop.xlane.xlu1 %1576  ;;  %v1169_v1 = vld [vmem:[#allocation4 + $0xc8] sm:$0xff] }
 0x1e7   : > { %v1680_v52 = vadd.f32 %v1577_v23, %v1168_v4  ;;  %v1583_v31 = vpop.xlane.xlu0 %1582 }
 0x1e8   : > { %v1683_v55 = vadd.f32 %v1583_v31, %v1171_v14 }
 0x1e9   : > { %1745 = vst.msk [vmem:[#allocation4 + $0xc0] sm:$0xff] %vm266_vm2, %v1680_v52  ;;  %v1206_v52 = vld [vmem:[#allocation4 + $0x1f0] sm:$0xff] }
 0x1ea   : > { %1748 = vst.msk [vmem:[#allocation4 + $0xd8] sm:$0xff] %vm266_vm2, %v1683_v55  ;;  %v1641_v50 = vpop.xlane.xlu1 %1640  ;;  %2378 = vperm.xlu1 %4226, %v5765_v15   ;;  %v1201_v55 = vld [vmem:[#allocation4 + $0x1c8] sm:$0xff] }
 0x1eb   : > { %v1712_v43 = vadd.f32 %v1641_v50, %v1200_v22  ;;  %v1647_v19 = vpop.xlane.xlu0 %1646 }
 0x1ec   : > { %v1715_v61 = vadd.f32 %v1647_v19, %v1203_v54 }
 0x1ed   : > { %1777 = vst.msk [vmem:[#allocation4 + $0x1c0] sm:$0xff] %vm266_vm2, %v1712_v43  ;;  %v1172_v43 = vld [vmem:[#allocation4 + $0xe0] sm:$0xff] }
 0x1ee   : > { %1780 = vst.msk [vmem:[#allocation4 + $0x1d8] sm:$0xff] %vm266_vm2, %v1715_v61  ;;  %v1589_v4 = vpop.xlane.xlu1 %1588  ;;  %v1175_v61 = vld [vmem:[#allocation4 + $0xf8] sm:$0xff] }
 0x1ef   : > { %v1686_v14 = vadd.f32 %v1589_v4, %v1174_v10  ;;  %v1579_v23 = vpop.xlane.xlu0 %1578 }
 0x1f0   : > { %v1681_v31 = vadd.f32 %v1579_v23, %v1169_v1  ;;  %2368 = vperm.xlu0 %4225, %v5784_v39  }
 0x1f1   : > { %1751 = vst.msk [vmem:[#allocation4 + $0xf0] sm:$0xff] %vm266_vm2, %v1686_v14  ;;  %v1207_v14 = vld [vmem:[#allocation4 + $0x1f8] sm:$0xff] }
 0x1f2   : > { %1746 = vst.msk [vmem:[#allocation4 + $0xc8] sm:$0xff] %vm266_vm2, %v1681_v31  ;;  %v1653_v22 = vpop.xlane.xlu1 %1652 }
 0x1f3   : > { %v1718_v54 = vadd.f32 %v1653_v22, %v1206_v52  ;;  %v1643_v50 = vpop.xlane.xlu0 %1642 }
 0x1f4   : > { %v1713_v19 = vadd.f32 %v1643_v50, %v1201_v55  ;;  %v5881_v50 = vld [vmem:[#allocation2 + $0x20] sm:$0xff] }
 0x1f5   : > { %1783 = vst.msk [vmem:[#allocation4 + $0x1f0] sm:$0xff] %vm266_vm2, %v1718_v54  ;;  %7443 = vst [vmem:[#allocation69_spill] sm:$0xff] %v5881_v50  ;;  %v1173_v54 = vld [vmem:[#allocation4 + $0xe8] sm:$0xff] }
 0x1f6   : > { %1778 = vst.msk [vmem:[#allocation4 + $0x1c8] sm:$0xff] %vm266_vm2, %v1713_v19  ;;  %v1585_v10 = vpop.xlane.xlu1 %1584 }
 0x1f7   : > { %v1684_v1 = vadd.f32 %v1585_v10, %v1172_v43  ;;  %v1591_v4 = vpop.xlane.xlu0 %1590 }
 0x1f8   : > { %v1687_v23 = vadd.f32 %v1591_v4, %v1175_v61  ;;  %v1205_v4 = vld [vmem:[#allocation4 + $0x1e8] sm:$0xff] }
 0x1f9   : > { %1749 = vst.msk [vmem:[#allocation4 + $0xe0] sm:$0xff] %vm266_vm2, %v1684_v1  ;;  %v5888_v1 = vld [vmem:[#allocation2 + $0x30] sm:$0xff] }
 0x1fa   : > { %1752 = vst.msk [vmem:[#allocation4 + $0xf8] sm:$0xff] %vm266_vm2, %v1687_v23  ;;  %v1649_v31 = vpop.xlane.xlu1 %1648  ;;  %7445 = vst [vmem:[#allocation71_spill] sm:$0xff] %v5888_v1 }
 0x1fb   : > { %v1716_v52 = vadd.f32 %v1649_v31, %v1204_v6  ;;  %v1655_v22 = vpop.xlane.xlu0 %1654 }
 0x1fc   : > { %v1719_v55 = vadd.f32 %v1655_v22, %v1207_v14  ;;  %v5899_v22 = vld [vmem:[#allocation2 + $0x40] sm:$0xff] }
 0x1fd   : > { %1781 = vst.msk [vmem:[#allocation4 + $0x1e0] sm:$0xff] %vm266_vm2, %v1716_v52  ;;  %7447 = vst [vmem:[#allocation73_spill] sm:$0xff] %v5899_v22 }
 0x1fe   : > { %1784 = vst.msk [vmem:[#allocation4 + $0x1f8] sm:$0xff] %vm266_vm2, %v1719_v55  ;;  %v1858_v19 = vpop.xlane.xlu1 %1857 }
 0x1ff   : > { %v5886_v43 = vmax.f32 %v5881_v50, %v1858_v19  ;;  %v1587_v61 = vpop.xlane.xlu0 %1586 }
 0x200   : > { %v1685_v10 = vadd.f32 %v1587_v61, %v1173_v54  ;;  %v5906_v54 = vld [vmem:[#allocation2 + $0x28] sm:$0xff] }
 0x201   : > { %7444 = vst [vmem:[#allocation70_spill] sm:$0xff] %v5886_v43  ;;  %3133 = vst.msk [vmem:[#allocation2 + $0x20] sm:$0xff] %vm266_vm2, %v5886_v43  ;;  %2383 = vperm.xlu0 %4225, %v5886_v43  }
 0x202   : > { %1750 = vst.msk [vmem:[#allocation4 + $0xe8] sm:$0xff] %vm266_vm2, %v1685_v10  ;;  %v1862_v23 = vpop.xlane.xlu1 %1861  ;;  %7448 = vst [vmem:[#allocation74_spill] sm:$0xff] %v5906_v54 }
 0x203   : > { %v5897_v14 = vmax.f32 %v5888_v1, %v1862_v23  ;;  %v1651_v31 = vpop.xlane.xlu0 %1650  ;;  %v5915_v23 = vld [vmem:[#allocation2 + $0x50] sm:$0xff] }
 0x204   : > { %v1717_v52 = vadd.f32 %v1651_v31, %v1205_v4  ;;  %7450 = vst [vmem:[#allocation76_spill] sm:$0xff] %v5915_v23  ;;  %v5919_v31 = vld [vmem:[#allocation2 + $0x38] sm:$0xff] }
 0x205   : > { %7446 = vst [vmem:[#allocation72_spill] sm:$0xff] %v5897_v14  ;;  %3135 = vst.msk [vmem:[#allocation2 + $0x30] sm:$0xff] %vm266_vm2, %v5897_v14  ;;  %2393 = vperm.xlu0 %4225, %v5897_v14  }
 0x206   : > { %1782 = vst.msk [vmem:[#allocation4 + $0x1e8] sm:$0xff] %vm266_vm2, %v1717_v52  ;;  %v1866_v19 = vpop.xlane.xlu1 %1865  ;;  %7451 = vst [vmem:[#allocation77_spill] sm:$0xff] %v5919_v31 }
 0x207   : > { %v5910_v61 = vmax.f32 %v5899_v22, %v1866_v19  ;;  %v1860_v10 = vpop.xlane.xlu0 %1859  ;;  %v5932_v22 = vld [vmem:[#allocation2 + $0x60] sm:$0xff] }
 0x208   : > { %v5913_v4 = vmax.f32 %v5906_v54, %v1860_v10  ;;  %7452 = vst [vmem:[#allocation78_spill] sm:$0xff] %v5932_v22 }
 0x209   : > { %3137 = vst.msk [vmem:[#allocation2 + $0x40] sm:$0xff] %vm266_vm2, %v5910_v61 }
 0x20a   : > { %7449 = vst [vmem:[#allocation75_spill] sm:$0xff] %v5913_v4  ;;  %3134 = vst.msk [vmem:[#allocation2 + $0x28] sm:$0xff] %vm266_vm2, %v5913_v4  ;;  %v1870_v52 = vpop.xlane.xlu1 %1869  ;;  %2388 = vperm.xlu1 %4226, %v5913_v4  }
 0x20b   : > { %v5927_v19 = vmax.f32 %v5915_v23, %v1870_v52  ;;  %v1864_v10 = vpop.xlane.xlu0 %1863 }
 0x20c   : > { %v5930_v6 = vmax.f32 %v5919_v31, %v1864_v10  ;;  %v5946_v10 = vld [vmem:[#allocation2 + $0x70] sm:$0xff]  ;;  %v5950_v31 = vld [vmem:[#allocation2 + $0x58] sm:$0xff] }
 0x20d   : > { %3139 = vst.msk [vmem:[#allocation2 + $0x50] sm:$0xff] %vm266_vm2, %v5927_v19  ;;  %7454 = vst [vmem:[#allocation80_spill] sm:$0xff] %v5946_v10 }
 0x20e   : > { %3136 = vst.msk [vmem:[#allocation2 + $0x38] sm:$0xff] %vm266_vm2, %v5930_v6  ;;  %v1874_v55 = vpop.xlane.xlu1 %1873  ;;  %7455 = vst [vmem:[#allocation81_spill] sm:$0xff] %v5950_v31 }
 0x20f   : > { %v5941_v25 = vmax.f32 %v5932_v22, %v1874_v55  ;;  %v1868_v52 = vpop.xlane.xlu0 %1867 }
 0x210   : > { %v5944_v23 = vmax.f32 %v5936_v44, %v1868_v52  ;;  %v5960_v52 = vld [vmem:[#allocation2 + $0x80] sm:$0xff]  ;;  %v5964_v44 = vld [vmem:[#allocation2 + $0x68] sm:$0xff] }
 0x211   : > { %3141 = vst.msk [vmem:[#allocation2 + $0x60] sm:$0xff] %vm266_vm2, %v5941_v25  ;;  %7456 = vst [vmem:[#allocation82_spill] sm:$0xff] %v5960_v52 }
 0x212   : > { %3138 = vst.msk [vmem:[#allocation2 + $0x48] sm:$0xff] %vm266_vm2, %v5944_v23  ;;  %v1878_v26 = vpop.xlane.xlu1 %1877  ;;  %7457 = vst [vmem:[#allocation83_spill] sm:$0xff] %v5964_v44 }
 0x213   : > { %v5955_v42 = vmax.f32 %v5946_v10, %v1878_v26  ;;  %v1872_v55 = vpop.xlane.xlu0 %1871 }
 0x214   : > { %v5958_v22 = vmax.f32 %v5950_v31, %v1872_v55  ;;  %v5974_v55 = vld [vmem:[#allocation2 + $0x90] sm:$0xff]  ;;  %v5978_v31 = vld [vmem:[#allocation2 + $0x78] sm:$0xff] }
 0x215   : > { %3143 = vst.msk [vmem:[#allocation2 + $0x70] sm:$0xff] %vm266_vm2, %v5955_v42  ;;  %7458 = vst [vmem:[#allocation84_spill] sm:$0xff] %v5974_v55 }
 0x216   : > { %3140 = vst.msk [vmem:[#allocation2 + $0x58] sm:$0xff] %vm266_vm2, %v5958_v22  ;;  %v1882_v35 = vpop.xlane.xlu1 %1881  ;;  %7459 = vst [vmem:[#allocation85_spill] sm:$0xff] %v5978_v31 }
 0x217   : > { %v5969_v13 = vmax.f32 %v5960_v52, %v1882_v35  ;;  %v1876_v26 = vpop.xlane.xlu0 %1875 }
 0x218   : > { %v5972_v10 = vmax.f32 %v5964_v44, %v1876_v26  ;;  %v5988_v26 = vld [vmem:[#allocation2 + $0xa0] sm:$0xff]  ;;  %v5992_v44 = vld [vmem:[#allocation2 + $0x88] sm:$0xff] }
 0x219   : > { %3145 = vst.msk [vmem:[#allocation2 + $0x80] sm:$0xff] %vm266_vm2, %v5969_v13  ;;  %7460 = vst [vmem:[#allocation86_spill] sm:$0xff] %v5988_v26 }
 0x21a   : > { %3142 = vst.msk [vmem:[#allocation2 + $0x68] sm:$0xff] %vm266_vm2, %v5972_v10  ;;  %v1886_v45 = vpop.xlane.xlu1 %1885  ;;  %7461 = vst [vmem:[#allocation87_spill] sm:$0xff] %v5992_v44 }
 0x21b   : > { %v5983_v18 = vmax.f32 %v5974_v55, %v1886_v45  ;;  %v1880_v35 = vpop.xlane.xlu0 %1879 }
 0x21c   : > { %v5986_v52 = vmax.f32 %v5978_v31, %v1880_v35  ;;  %v6002_v35 = vld [vmem:[#allocation2 + $0xb0] sm:$0xff]  ;;  %v6006_v31 = vld [vmem:[#allocation2 + $0x98] sm:$0xff] }
 0x21d   : > { %3147 = vst.msk [vmem:[#allocation2 + $0x90] sm:$0xff] %vm266_vm2, %v5983_v18  ;;  %7462 = vst [vmem:[#allocation88_spill] sm:$0xff] %v6002_v35 }
 0x21e   : > { %3144 = vst.msk [vmem:[#allocation2 + $0x78] sm:$0xff] %vm266_vm2, %v5986_v52  ;;  %v1890_v0 = vpop.xlane.xlu1 %1889  ;;  %7463 = vst [vmem:[#allocation89_spill] sm:$0xff] %v6006_v31 }
 0x21f   : > { %v5997_v32 = vmax.f32 %v5988_v26, %v1890_v0  ;;  %v1884_v45 = vpop.xlane.xlu0 %1883 }
 0x220   : > { %v6000_v55 = vmax.f32 %v5992_v44, %v1884_v45  ;;  %v7464_v45 = vld [vmem:[#allocation47_spill] sm:$0xff]  ;;  %v6017_v44 = vld [vmem:[#allocation2 + $0xc0] sm:$0xff] }
 0x221   : > { %3149 = vst.msk [vmem:[#allocation2 + $0xa0] sm:$0xff] %vm266_vm2, %v5997_v32  ;;  %7465 = vst [vmem:[#allocation90_spill] sm:$0xff] %v6017_v44 }
 0x222   : > { %3146 = vst.msk [vmem:[#allocation2 + $0x88] sm:$0xff] %vm266_vm2, %v6000_v55  ;;  %v1894_v38 = vpop.xlane.xlu1 %1893 }
 0x223   : > { %v6011_v46 = vmax.f32 %v6002_v35, %v1894_v38  ;;  %v1888_v0 = vpop.xlane.xlu0 %1887 }
 0x224   : > { %v6014_v26 = vmax.f32 %v6006_v31, %v1888_v0  ;;  %1953 = vmax.xlane.f32.xlu0 %v7464_v45  ;;  %v7467_v31 = vld [vmem:[#allocation48_spill] sm:$0xff]  ;;  %v6032_v45 = vld [vmem:[#allocation2 + $0xd0] sm:$0xff] }
 0x225   : > { %3151 = vst.msk [vmem:[#allocation2 + $0xb0] sm:$0xff] %vm266_vm2, %v6011_v46  ;;  %7468 = vst [vmem:[#allocation92_spill] sm:$0xff] %v6032_v45 }
 0x226   : > { %3148 = vst.msk [vmem:[#allocation2 + $0x98] sm:$0xff] %vm266_vm2, %v6014_v26  ;;  %v1898_v16 = vpop.xlane.xlu1 %1897 }
 0x227   : > { %v6026_v38 = vmax.f32 %v6017_v44, %v1898_v16  ;;  %v1892_v35 = vpop.xlane.xlu0 %1891 }
 0x228   : > { %v6029_v0 = vmax.f32 %v6021_v3, %v1892_v35  ;;  %1959 = vmax.xlane.f32.xlu0 %v7467_v31  ;;  %v7470_v3 = vld [vmem:[#allocation51_spill] sm:$0xff]  ;;  %v6047_v31 = vld [vmem:[#allocation2 + $0xe0] sm:$0xff] }
 0x229   : > { %3153 = vst.msk [vmem:[#allocation2 + $0xc0] sm:$0xff] %vm266_vm2, %v6026_v38  ;;  %7471 = vst [vmem:[#allocation94_spill] sm:$0xff] %v6047_v31 }
 0x22a   : > { %3150 = vst.msk [vmem:[#allocation2 + $0xa8] sm:$0xff] %vm266_vm2, %v6029_v0  ;;  %v1902_v7 = vpop.xlane.xlu1 %1901 }
 0x22b   : > { %v6041_v16 = vmax.f32 %v6032_v45, %v1902_v7  ;;  %v1896_v44 = vpop.xlane.xlu0 %1895  ;;  %v6063_v45 = vld [vmem:[#allocation2 + $0xf0] sm:$0xff] }
 0x22c   : > { %v6044_v35 = vmax.f32 %v6036_v27, %v1896_v44  ;;  %1965 = vmax.xlane.f32.xlu0 %v7470_v3  ;;  %7474 = vst [vmem:[#allocation96_spill] sm:$0xff] %v6063_v45  ;;  %v6067_v3 = vld [vmem:[#allocation2 + $0xd8] sm:$0xff] }
 0x22d   : > { %3155 = vst.msk [vmem:[#allocation2 + $0xd0] sm:$0xff] %vm266_vm2, %v6041_v16  ;;  %7475 = vst [vmem:[#allocation97_spill] sm:$0xff] %v6067_v3 }
 0x22e   : > { %3152 = vst.msk [vmem:[#allocation2 + $0xb8] sm:$0xff] %vm266_vm2, %v6044_v35  ;;  %v1906_v34 = vpop.xlane.xlu1 %1905  ;;  %1955 = vmax.xlane.f32.xlu1 %v7473_v58 }
 0x22f   : > { %v6057_v7 = vmax.f32 %v6047_v31, %v1906_v34  ;;  %v1900_v44 = vpop.xlane.xlu0 %1899  ;;  %v6079_v31 = vld [vmem:[#allocation2 + $0x100] sm:$0xff] }
 0x230   : > { %v6060_v27 = vmax.f32 %v6051_v60, %v1900_v44  ;;  %1969 = vmax.xlane.f32.xlu0 %v5722_v36  ;;  %7477 = vst [vmem:[#allocation98_spill] sm:$0xff] %v6079_v31  ;;  %v6083_v36 = vld [vmem:[#allocation2 + $0xe8] sm:$0xff] }
 0x231   : > { %3157 = vst.msk [vmem:[#allocation2 + $0xe0] sm:$0xff] %vm266_vm2, %v6057_v7  ;;  %7478 = vst [vmem:[#allocation99_spill] sm:$0xff] %v6083_v36 }
 0x232   : > { %3154 = vst.msk [vmem:[#allocation2 + $0xc8] sm:$0xff] %vm266_vm2, %v6060_v27  ;;  %v1910_v58 = vpop.xlane.xlu1 %1909  ;;  %1957 = vmax.xlane.f32.xlu1 %v7476_v12 }
 0x233   : > { %v6073_v34 = vmax.f32 %v6063_v45, %v1910_v58  ;;  %v1904_v44 = vpop.xlane.xlu0 %1903  ;;  %v6094_v45 = vld [vmem:[#allocation2 + $0x110] sm:$0xff] }
 0x234   : > { %v6076_v60 = vmax.f32 %v6067_v3, %v1904_v44  ;;  %1973 = vmax.xlane.f32.xlu0 %v5701_v20  ;;  %7479 = vst [vmem:[#allocation100_spill] sm:$0xff] %v6094_v45  ;;  %v6098_v20 = vld [vmem:[#allocation2 + $0xf8] sm:$0xff] }
 0x235   : > { %3159 = vst.msk [vmem:[#allocation2 + $0xf0] sm:$0xff] %vm266_vm2, %v6073_v34  ;;  %7480 = vst [vmem:[#allocation101_spill] sm:$0xff] %v6098_v20 }
 0x236   : > { %3156 = vst.msk [vmem:[#allocation2 + $0xd8] sm:$0xff] %vm266_vm2, %v6076_v60  ;;  %v1914_v12 = vpop.xlane.xlu1 %1913  ;;  %1961 = vmax.xlane.f32.xlu1 %v5679_v33  ;;  %v6113_v33 = vld [vmem:[#allocation2 + $0x108] sm:$0xff] }
 0x237   : > { %v6089_v58 = vmax.f32 %v6079_v31, %v1914_v12  ;;  %v1908_v44 = vpop.xlane.xlu0 %1907  ;;  %7482 = vst [vmem:[#allocation103_spill] sm:$0xff] %v6113_v33 }
 0x238   : > { %v6092_v3 = vmax.f32 %v6083_v36, %v1908_v44  ;;  %v6109_v36 = vld [vmem:[#allocation2 + $0x120] sm:$0xff] }
 0x239   : > { %3161 = vst.msk [vmem:[#allocation2 + $0x100] sm:$0xff] %vm266_vm2, %v6089_v58  ;;  %7481 = vst [vmem:[#allocation102_spill] sm:$0xff] %v6109_v36 }
 0x23a   : > { %3158 = vst.msk [vmem:[#allocation2 + $0xe8] sm:$0xff] %vm266_vm2, %v6092_v3  ;;  %v1918_v37 = vpop.xlane.xlu1 %1917  ;;  %1963 = vmax.xlane.f32.xlu1 %v5707_v62  ;;  %v6128_v62 = vld [vmem:[#allocation2 + $0x118] sm:$0xff] }
 0x23b   : > { %v6104_v12 = vmax.f32 %v6094_v45, %v1918_v37  ;;  %v1912_v31 = vpop.xlane.xlu0 %1911  ;;  %7485 = vst [vmem:[#allocation105_spill] sm:$0xff] %v6128_v62 }
 0x23c   : > { %v6107_v44 = vmax.f32 %v6098_v20, %v1912_v31  ;;  %v6124_v20 = vld [vmem:[#allocation2 + $0x130] sm:$0xff] }
 0x23d   : > { %3163 = vst.msk [vmem:[#allocation2 + $0x110] sm:$0xff] %vm266_vm2, %v6104_v12  ;;  %7484 = vst [vmem:[#allocation104_spill] sm:$0xff] %v6124_v20 }
 0x23e   : > { %3160 = vst.msk [vmem:[#allocation2 + $0xf8] sm:$0xff] %vm266_vm2, %v6107_v44  ;;  %v1922_v30 = vpop.xlane.xlu1 %1921  ;;  %1967 = vmax.xlane.f32.xlu1 %v7483_v56  ;;  %v6143_v56 = vld [vmem:[#allocation2 + $0x128] sm:$0xff] }
 0x23f   : > { %v6119_v37 = vmax.f32 %v6109_v36, %v1922_v30  ;;  %v1916_v45 = vpop.xlane.xlu0 %1915  ;;  %7487 = vst [vmem:[#allocation107_spill] sm:$0xff] %v6143_v56 }
 0x240   : > { %v6122_v31 = vmax.f32 %v6113_v33, %v1916_v45  ;;  %v6139_v33 = vld [vmem:[#allocation2 + $0x140] sm:$0xff] }
 0x241   : > { %3165 = vst.msk [vmem:[#allocation2 + $0x120] sm:$0xff] %vm266_vm2, %v6119_v37  ;;  %7486 = vst [vmem:[#allocation106_spill] sm:$0xff] %v6139_v33 }
 0x242   : > { %3162 = vst.msk [vmem:[#allocation2 + $0x108] sm:$0xff] %vm266_vm2, %v6122_v31  ;;  %v1926_v17 = vpop.xlane.xlu1 %1925  ;;  %1971 = vmax.xlane.f32.xlu1 %v5736_v2  ;;  %v6158_v2 = vld [vmem:[#allocation2 + $0x138] sm:$0xff] }
 0x243   : > { %v6134_v30 = vmax.f32 %v6124_v20, %v1926_v17  ;;  %v1920_v36 = vpop.xlane.xlu0 %1919  ;;  %7490 = vst [vmem:[#allocation110_spill] sm:$0xff] %v6158_v2 }
 0x244   : > { %v6137_v45 = vmax.f32 %v6128_v62, %v1920_v36  ;;  %v6154_v62 = vld [vmem:[#allocation2 + $0x150] sm:$0xff] }
 0x245   : > { %3167 = vst.msk [vmem:[#allocation2 + $0x130] sm:$0xff] %vm266_vm2, %v6134_v30  ;;  %7489 = vst [vmem:[#allocation109_spill] sm:$0xff] %v6154_v62 }
 0x246   : > { %3164 = vst.msk [vmem:[#allocation2 + $0x118] sm:$0xff] %vm266_vm2, %v6137_v45  ;;  %v1930_v9 = vpop.xlane.xlu1 %1929  ;;  %1975 = vmax.xlane.f32.xlu1 %v5725_v5 }
 0x247   : > { %v6149_v17 = vmax.f32 %v6139_v33, %v1930_v9  ;;  %v1924_v20 = vpop.xlane.xlu0 %1923 }
 0x248   : > { %v6152_v36 = vmax.f32 %v6143_v56, %v1924_v20  ;;  %v6168_v20 = vld [vmem:[#allocation2 + $0x160] sm:$0xff]  ;;  %v6172_v56 = vld [vmem:[#allocation2 + $0x148] sm:$0xff] }
 0x249   : > { %3169 = vst.msk [vmem:[#allocation2 + $0x140] sm:$0xff] %vm266_vm2, %v6149_v17  ;;  %7493 = vst [vmem:[#allocation113_spill] sm:$0xff] %v6168_v20 }
 0x24a   : > { %7488 = vst [vmem:[#allocation108_spill] sm:$0xff] %v6152_v36  ;;  %3166 = vst.msk [vmem:[#allocation2 + $0x128] sm:$0xff] %vm266_vm2, %v6152_v36  ;;  %v1934_v59 = vpop.xlane.xlu1 %1933 }
 0x24b   : > { %v6163_v5 = vmax.f32 %v6154_v62, %v1934_v59  ;;  %v1928_v9 = vpop.xlane.xlu0 %1927  ;;  %7494 = vst [vmem:[#allocation114_spill] sm:$0xff] %v6172_v56 }
 0x24c   : > { %v6166_v33 = vmax.f32 %v6158_v2, %v1928_v9  ;;  %v6182_v9 = vld [vmem:[#allocation2 + $0x170] sm:$0xff]  ;;  %v6186_v2 = vld [vmem:[#allocation2 + $0x158] sm:$0xff] }
 0x24d   : > { %7491 = vst [vmem:[#allocation111_spill] sm:$0xff] %v6163_v5  ;;  %3171 = vst.msk [vmem:[#allocation2 + $0x150] sm:$0xff] %vm266_vm2, %v6163_v5 }
 0x24e   : > { %7492 = vst [vmem:[#allocation112_spill] sm:$0xff] %v6166_v33  ;;  %3168 = vst.msk [vmem:[#allocation2 + $0x138] sm:$0xff] %vm266_vm2, %v6166_v33  ;;  %v1938_v28 = vpop.xlane.xlu1 %1937 }
 0x24f   : > { %v6177_v41 = vmax.f32 %v6168_v20, %v1938_v28  ;;  %v1932_v59 = vpop.xlane.xlu0 %1931  ;;  %7497 = vst [vmem:[#allocation117_spill] sm:$0xff] %v6182_v9  ;;  %7498 = vst [vmem:[#allocation118_spill] sm:$0xff] %v6186_v2 }
 0x250   : > { %v6180_v62 = vmax.f32 %v6172_v56, %v1932_v59  ;;  %v6196_v59 = vld [vmem:[#allocation2 + $0x180] sm:$0xff]  ;;  %v6200_v56 = vld [vmem:[#allocation2 + $0x168] sm:$0xff] }
 0x251   : > { %7495 = vst [vmem:[#allocation115_spill] sm:$0xff] %v6177_v41  ;;  %3173 = vst.msk [vmem:[#allocation2 + $0x160] sm:$0xff] %vm266_vm2, %v6177_v41 }
 0x252   : > { %7496 = vst [vmem:[#allocation116_spill] sm:$0xff] %v6180_v62  ;;  %3170 = vst.msk [vmem:[#allocation2 + $0x148] sm:$0xff] %vm266_vm2, %v6180_v62  ;;  %v1942_v63 = vpop.xlane.xlu1 %1941 }
 0x253   : > { %v6191_v24 = vmax.f32 %v6182_v9, %v1942_v63  ;;  %v1936_v28 = vpop.xlane.xlu0 %1935  ;;  %7501 = vst [vmem:[#allocation121_spill] sm:$0xff] %v6196_v59  ;;  %7502 = vst [vmem:[#allocation122_spill] sm:$0xff] %v6200_v56 }
 0x254   : > { %v6194_v20 = vmax.f32 %v6186_v2, %v1936_v28  ;;  %v6210_v28 = vld [vmem:[#allocation2 + $0x190] sm:$0xff]  ;;  %v6214_v2 = vld [vmem:[#allocation2 + $0x178] sm:$0xff] }
 0x255   : > { %7499 = vst [vmem:[#allocation119_spill] sm:$0xff] %v6191_v24  ;;  %3175 = vst.msk [vmem:[#allocation2 + $0x170] sm:$0xff] %vm266_vm2, %v6191_v24 }
 0x256   : > { %7500 = vst [vmem:[#allocation120_spill] sm:$0xff] %v6194_v20  ;;  %3172 = vst.msk [vmem:[#allocation2 + $0x158] sm:$0xff] %vm266_vm2, %v6194_v20  ;;  %v1946_v51 = vpop.xlane.xlu1 %1945 }
 0x257   : > { %v6205_v48 = vmax.f32 %v6196_v59, %v1946_v51  ;;  %v1940_v63 = vpop.xlane.xlu0 %1939  ;;  %7505 = vst [vmem:[#allocation125_spill] sm:$0xff] %v6210_v28  ;;  %7506 = vst [vmem:[#allocation126_spill] sm:$0xff] %v6214_v2 }
 0x258   : > { %v6208_v9 = vmax.f32 %v6200_v56, %v1940_v63  ;;  %v6226_v63 = vld [vmem:[#allocation2 + $0x188] sm:$0xff] }
 0x259   : > { %7503 = vst [vmem:[#allocation123_spill] sm:$0xff] %v6205_v48  ;;  %3177 = vst.msk [vmem:[#allocation2 + $0x180] sm:$0xff] %vm266_vm2, %v6205_v48 }
 0x25a   : > { %7504 = vst [vmem:[#allocation124_spill] sm:$0xff] %v6208_v9  ;;  %3174 = vst.msk [vmem:[#allocation2 + $0x168] sm:$0xff] %vm266_vm2, %v6208_v9  ;;  %v1950_v57 = vpop.xlane.xlu1 %1949 }
 0x25b   : > { %v6219_v47 = vmax.f32 %v6210_v28, %v1950_v57  ;;  %v1944_v51 = vpop.xlane.xlu0 %1943  ;;  %7509 = vst [vmem:[#allocation129_spill] sm:$0xff] %v6226_v63  ;;  %v6234_v28 = vld [vmem:[#allocation2 + $0x198] sm:$0xff] }
 0x25c   : > { %v6222_v59 = vmax.f32 %v6214_v2, %v1944_v51  ;;  %7512 = vst [vmem:[#allocation130_spill] sm:$0xff] %v6234_v28 }
 0x25d   : > { %7507 = vst [vmem:[#allocation127_spill] sm:$0xff] %v6219_v47  ;;  %3179 = vst.msk [vmem:[#allocation2 + $0x190] sm:$0xff] %vm266_vm2, %v6219_v47  ;;  %v7516_v47 = vld [vmem:[#allocation10_spill] sm:$0xff] }
 0x25e   : > { %7508 = vst [vmem:[#allocation128_spill] sm:$0xff] %v6222_v59  ;;  %3176 = vst.msk [vmem:[#allocation2 + $0x178] sm:$0xff] %vm266_vm2, %v6222_v59  ;;  %v2364_v56 = vpop.permute.xlu1 %2363 }
 0x25f   : > { %v2681_v4 = vsub.f32 %v7510_v53, %v2364_v56  ;;  %v1948_v54 = vpop.xlane.xlu0 %1947  ;;  %v7514_v56 = vld [vmem:[#allocation9_spill] sm:$0xff] }
 0x260   : > { %v6232_v14 = vmax.f32 %v6226_v63, %v1948_v54  ;;  %v7515_v63 = vld [vmem:[#allocation5_spill] sm:$0xff] }
 0x261   : > { %v2745_v57 = vmul.f32 1.442695, %v2681_v4 }
 0x262   : > { %7511 = vst [vmem:[#allocation7_spill] sm:$0xff] %v6232_v14  ;;  %3178 = vst.msk [vmem:[#allocation2 + $0x188] sm:$0xff] %vm266_vm2, %v6232_v14  ;;  %v2374_v51 = vpop.permute.xlu1 %2373 }
 0x263   : > { %4267 = vpow2.f32 %v2745_v57  ;;  %v1952_v2 = vpop.xlane.xlu0 %1951  ;;  %v2683_v50 = vsub.f32 %v7515_v63, %v2374_v51  ;;  %v7517_v63 = vld [vmem:[#allocation12_spill] sm:$0xff] }
 0x264   : > { %v6239_v1 = vmax.f32 %v6234_v28, %v1952_v2 }
 0x265   : > { %v2749_v57 = vmul.f32 1.442695, %v2683_v50 }
 0x266   : > { %7513 = vst [vmem:[#allocation131_spill] sm:$0xff] %v6239_v1  ;;  %3180 = vst.msk [vmem:[#allocation2 + $0x198] sm:$0xff] %vm266_vm2, %v6239_v1  ;;  %v2379_v53 = vpop.permute.xlu1 %2378 }
 0x267   : > { %v2684_v43 = vsub.f32 %v7514_v56, %v2379_v53 }
 0x269   : > { %v2751_v54 = vmul.f32 1.442695, %v2684_v43 }
 0x26b   : > { %4269 = vpow2.f32 %v2751_v54  ;;  %v2369_v4 = vpop.permute.xlu0 %2368 }
 0x26c   : > { %v2682_v48 = vsub.f32 %v7516_v47, %v2369_v4 }
 0x26e   : > { %v2747_v14 = vmul.f32 1.442695, %v2682_v48 }
 0x270   : > { %v4268_v59 = vpop.eup %4267  ;;  %4271 = vpow2.f32 %v2747_v14 }
 0x271   : > { %2873 = vadd.xlane.f32.xlu0 %v4268_v59  ;;  %4273 = vpow2.f32 %v2749_v57 }
 0x278   : > { %v4270_v2 = vpop.eup %4269 }
 0x279   : > { %2879 = vadd.xlane.f32.xlu0 %v4270_v2  ;;  %v6267_v2 = vld [vmem:[#allocation2 + $0x1d0] sm:$0xff] }
 0x27a   : > { %7521 = vst [vmem:[#allocation12_spill] sm:$0xff] %v6267_v2 }
 0x27c   : > { %v2384_v28 = vpop.permute.xlu0 %2383 }
 0x27d   : > { %v4272_v1 = vpop.eup %4271  ;;  %v2685_v9 = vsub.f32 %v5445_v21, %v2384_v28  ;;  %v6258_v28 = vld [vmem:[#allocation2 + $0x1b8] sm:$0xff] }
 0x27e   : > { %2875 = vadd.xlane.f32.xlu1 %v4272_v1  ;;  %v4274_v56 = vpop.eup %4273  ;;  %v6251_v1 = vld [vmem:[#allocation2 + $0x1a0] sm:$0xff]  ;;  %7519 = vst [vmem:[#allocation5_spill] sm:$0xff] %v6258_v28 }
 0x27f   : > { %v2753_v43 = vmul.f32 1.442695, %v2685_v9  ;;  %7518 = vst [vmem:[#allocation9_spill] sm:$0xff] %v6251_v1 }
 0x280   : > { %v2394_v53 = vpop.permute.xlu0 %2393 }
 0x281   : > { %4275 = vpow2.f32 %v2753_v43  ;;  %v2687_v51 = vsub.f32 %v7517_v63, %v2394_v53  ;;  %v6273_v53 = vld [vmem:[#allocation2 + $0x1a8] sm:$0xff] }
 0x282   : > { %2877 = vadd.xlane.f32.xlu1 %v4274_v56  ;;  %7522 = vst [vmem:[#allocation132_spill] sm:$0xff] %v6273_v53 }
 0x283   : > { %v2757_v47 = vmul.f32 1.442695, %v2687_v51  ;;  %v6278_v51 = vld [vmem:[#allocation2 + $0x1e0] sm:$0xff] }
 0x284   : > { %7524 = vst [vmem:[#allocation134_spill] sm:$0xff] %v6278_v51 }
 0x285   : > { %4277 = vpow2.f32 %v2757_v47  ;;  %v2389_v48 = vpop.permute.xlu1 %2388 }
 0x286   : > { %v2686_v50 = vsub.f32 %v5473_v49, %v2389_v48 }
 0x288   : > { %v2755_v14 = vmul.f32 1.442695, %v2686_v50  ;;  %v6287_v50 = vld [vmem:[#allocation2 + $0x1b0] sm:$0xff] }
 0x289   : > { %7526 = vst [vmem:[#allocation136_spill] sm:$0xff] %v6287_v50 }
 0x28a   : > { %4279 = vpow2.f32 %v2755_v14 }
 0x28e   : > { %v4276_v59 = vpop.eup %4275 }
 0x28f   : > { %2881 = vadd.xlane.f32.xlu1 %v4276_v59 }
 0x292   : > { %v4278_v54 = vpop.eup %4277 }
 0x293   : > { %2885 = vadd.xlane.f32.xlu0 %v4278_v54  ;;  %v6294_v54 = vld [vmem:[#allocation2 + $0x1f0] sm:$0xff] }
 0x294   : > { %7528 = vst [vmem:[#allocation138_spill] sm:$0xff] %v6294_v54 }
 0x297   : > { %v4280_v21 = vpop.eup %4279 }
 0x298   : > { %2883 = vadd.xlane.f32.xlu1 %v4280_v21 }
 0x2a9   : > { %2398 = vperm.xlu1 %4226, %v5930_v6   ;;  %2403 = vperm.xlu0 %4225, %v5910_v61  }
 0x2ad   : > { %2408 = vperm.xlu1 %4226, %v5944_v23   ;;  %2413 = vperm.xlu0 %4225, %v5927_v19   ;;  %v1954_v9 = vpop.xlane.xlu0 %1953 }
 0x2ae   : > { %v6256_v49 = vmax.f32 %v6251_v1, %v1954_v9  ;;  %v7544_v1 = vld [vmem:[#allocation128_spill] sm:$0xff] }
 0x2b0   : > { %3181 = vst.msk [vmem:[#allocation2 + $0x1a0] sm:$0xff] %vm266_vm2, %v6256_v49 }
 0x2b1   : > { %2418 = vperm.xlu1 %4226, %v5958_v22   ;;  %2423 = vperm.xlu0 %4225, %v5941_v25   ;;  %v1960_v4 = vpop.xlane.xlu0 %1959 }
 0x2b2   : > { %v6265_v57 = vmax.f32 %v6258_v28, %v1960_v4  ;;  %v6303_v4 = vld [vmem:[#allocation2 + $0x1c0] sm:$0xff] }
 0x2b3   : > { %7530 = vst [vmem:[#allocation140_spill] sm:$0xff] %v6303_v4  ;;  %v2041_v28 = vld [vmem:[#allocation3] sm:$0xff] }
 0x2b4   : > { %7520 = vst [vmem:[#allocation10_spill] sm:$0xff] %v6265_v57  ;;  %3184 = vst.msk [vmem:[#allocation2 + $0x1b8] sm:$0xff] %vm266_vm2, %v6265_v57 }
 0x2b5   : > { %2428 = vperm.xlu1 %4226, %v5972_v10   ;;  %2433 = vperm.xlu0 %4225, %v5955_v42   ;;  %v1966_v43 = vpop.xlane.xlu0 %1965 }
 0x2b6   : > { %v6276_v56 = vmax.f32 %v6267_v2, %v1966_v43  ;;  %v6344_v2 = vld [vmem:[#allocation2 + $0x1f8] sm:$0xff] }
 0x2b7   : > { %v1956_v63 = vpop.xlane.xlu1 %1955  ;;  %7539 = vst [vmem:[#allocation149_spill] sm:$0xff] %v6344_v2 }
 0x2b8   : > { %7523 = vst [vmem:[#allocation133_spill] sm:$0xff] %v6276_v56  ;;  %3187 = vst.msk [vmem:[#allocation2 + $0x1d0] sm:$0xff] %vm266_vm2, %v6276_v56  ;;  %v6283_v47 = vmax.f32 %v6273_v53, %v1956_v63  ;;  %v6335_v53 = vld [vmem:[#allocation2 + $0x1e8] sm:$0xff] }
 0x2b9   : > { %2438 = vperm.xlu1 %4226, %v5986_v52   ;;  %2448 = vperm.xlu0 %4225, %v6000_v55   ;;  %v1970_v48 = vpop.xlane.xlu0 %1969  ;;  %7537 = vst [vmem:[#allocation147_spill] sm:$0xff] %v6335_v53 }
 0x2ba   : > { %7525 = vst [vmem:[#allocation135_spill] sm:$0xff] %v6283_v47  ;;  %3182 = vst.msk [vmem:[#allocation2 + $0x1a8] sm:$0xff] %vm266_vm2, %v6283_v47  ;;  %v6292_v14 = vmax.f32 %v6278_v51, %v1970_v48 }
 0x2bb   : > { %v1958_v59 = vpop.xlane.xlu1 %1957 }
 0x2bc   : > { %7527 = vst [vmem:[#allocation137_spill] sm:$0xff] %v6292_v14  ;;  %3189 = vst.msk [vmem:[#allocation2 + $0x1e0] sm:$0xff] %vm266_vm2, %v6292_v14  ;;  %v6299_v21 = vmax.f32 %v6287_v50, %v1958_v59  ;;  %v6317_v59 = vld [vmem:[#allocation2 + $0x1c8] sm:$0xff] }
 0x2bd   : > { %2443 = vperm.xlu1 %4226, %v5969_v13   ;;  %2463 = vperm.xlu0 %4225, %v5997_v32   ;;  %v1974_v9 = vpop.xlane.xlu0 %1973  ;;  %7533 = vst [vmem:[#allocation143_spill] sm:$0xff] %v6317_v59 }
 0x2be   : > { %7529 = vst [vmem:[#allocation139_spill] sm:$0xff] %v6299_v21  ;;  %3183 = vst.msk [vmem:[#allocation2 + $0x1b0] sm:$0xff] %vm266_vm2, %v6299_v21  ;;  %v6308_v43 = vmax.f32 %v6294_v54, %v1974_v9  ;;  %v6326_v54 = vld [vmem:[#allocation2 + $0x1d8] sm:$0xff] }
 0x2bf   : > { %v1962_v63 = vpop.xlane.xlu1 %1961  ;;  %7535 = vst [vmem:[#allocation145_spill] sm:$0xff] %v6326_v54 }
 0x2c0   : > { %7531 = vst [vmem:[#allocation141_spill] sm:$0xff] %v6308_v43  ;;  %3191 = vst.msk [vmem:[#allocation2 + $0x1f0] sm:$0xff] %vm266_vm2, %v6308_v43  ;;  %v6313_v48 = vmax.f32 %v6303_v4, %v1962_v63 }
 0x2c1   : > { %2453 = vperm.xlu1 %4226, %v5983_v18   ;;  %2478 = vperm.xlu0 %4225, %v6044_v35  }
 0x2c2   : > { %7532 = vst [vmem:[#allocation142_spill] sm:$0xff] %v6313_v48  ;;  %3185 = vst.msk [vmem:[#allocation2 + $0x1c0] sm:$0xff] %vm266_vm2, %v6313_v48 }
 0x2c3   : > { %v1964_v51 = vpop.xlane.xlu1 %1963 }
 0x2c4   : > { %v6322_v9 = vmax.f32 %v6317_v59, %v1964_v51 }
 0x2c5   : > { %2458 = vperm.xlu1 %4226, %v6014_v26   ;;  %2488 = vperm.xlu0 %4225, %v6060_v27  }
 0x2c6   : > { %7534 = vst [vmem:[#allocation144_spill] sm:$0xff] %v6322_v9  ;;  %3186 = vst.msk [vmem:[#allocation2 + $0x1c8] sm:$0xff] %vm266_vm2, %v6322_v9 }
 0x2c7   : > { %v1968_v63 = vpop.xlane.xlu1 %1967 }
 0x2c8   : > { %v6331_v4 = vmax.f32 %v6326_v54, %v1968_v63 }
 0x2c9   : > { %2468 = vperm.xlu1 %4226, %v6029_v0   ;;  %2498 = vperm.xlu0 %4225, %v6076_v60  }
 0x2ca   : > { %7536 = vst [vmem:[#allocation146_spill] sm:$0xff] %v6331_v4  ;;  %3188 = vst.msk [vmem:[#allocation2 + $0x1d8] sm:$0xff] %vm266_vm2, %v6331_v4 }
 0x2cb   : > { %v1972_v51 = vpop.xlane.xlu1 %1971 }
 0x2cc   : > { %v6340_v59 = vmax.f32 %v6335_v53, %v1972_v51  ;;  %v2105_v51 = vsub.f32 %v5753_v40, %v5762_v29  ;;  %v2106_v40 = vsub.f32 %v5779_v11, %v5784_v39  ;;  %v7542_v29 = vld [vmem:[#allocation67_spill] sm:$0xff] }
 0x2cd   : > { %2473 = vperm.xlu1 %4226, %v6011_v46   ;;  %2503 = vperm.xlu0 %4225, %v6057_v7   ;;  %v7545_v11 = vld [vmem:[#allocation123_spill] sm:$0xff] }
 0x2ce   : > { %7538 = vst [vmem:[#allocation148_spill] sm:$0xff] %v6340_v59  ;;  %3190 = vst.msk [vmem:[#allocation2 + $0x1e8] sm:$0xff] %vm266_vm2, %v6340_v59 }
 0x2cf   : > { %v1976_v63 = vpop.xlane.xlu1 %1975 }
 0x2d0   : > { %v6349_v54 = vmax.f32 %v6344_v2, %v1976_v63  ;;  %v2169_v63 = vmul.f32 1.442695, %v2105_v51  ;;  %v7541_v2 = vld [vmem:[#allocation68_spill] sm:$0xff] }
 0x2d1   : > { %2483 = vperm.xlu1 %4226, %v6026_v38   ;;  %2513 = vperm.xlu0 %4225, %v6073_v34   ;;  %v2108_v53 = vsub.f32 %v7541_v2, %v5765_v15  ;;  %v2107_v15 = vsub.f32 %v7542_v29, %v5746_v8  ;;  %v2171_v2 = vmul.f32 1.442695, %v2106_v40  ;;  %v7543_v51 = vld [vmem:[#allocation124_spill] sm:$0xff]  ;;  %v7546_v8 = vld [vmem:[#allocation7_spill] sm:$0xff] }
 0x2d2   : > { %7540 = vst [vmem:[#allocation150_spill] sm:$0xff] %v6349_v54  ;;  %3192 = vst.msk [vmem:[#allocation2 + $0x1f8] sm:$0xff] %vm266_vm2, %v6349_v54  ;;  %4281 = vpow2.f32 %v2169_v63  ;;  %v2044_v29 = vld [vmem:[#allocation3 + $0x18] sm:$0xff] }
 0x2d3   : > { %v2175_v50 = vmul.f32 1.442695, %v2108_v53  ;;  %v2173_v63 = vmul.f32 1.442695, %v2107_v15 }
 0x2d5   : > { %2493 = vperm.xlu1 %4226, %v6041_v16   ;;  %2518 = vperm.xlu0 %4225, %v6107_v44   ;;  %4283 = vpow2.f32 %v2175_v50 }
 0x2d6   : > { %4285 = vpow2.f32 %v2171_v2 }
 0x2d7   : > { %4287 = vpow2.f32 %v2173_v63  ;;  %v7551_v63 = vld [vmem:[#allocation131_spill] sm:$0xff] }
 0x2d9   : > { %2508 = vperm.xlu1 %4226, %v6092_v3   ;;  %2523 = vperm.xlu0 %4225, %v6089_v58  }
 0x2dd   : > { %2538 = vperm.xlu1 %4226, %v6137_v45   ;;  %2528 = vperm.xlu0 %4225, %v6122_v31  }
 0x2df   : > { %v4282_v53 = vpop.eup %4281 }
 0x2e0   : > { %v2297_v39 = vmul.f32 %v4282_v53, %v2041_v28  ;;  %v2042_v28 = vld [vmem:[#allocation3 + $0x8] sm:$0xff] }
 0x2e1   : > { %2548 = vperm.xlu1 %4226, %v6152_v36   ;;  %2533 = vperm.xlu0 %4225, %v6104_v12  }
 0x2e2   : > { %v4284_v40 = vpop.eup %4283 }
 0x2e3   : > { %v4286_v2 = vpop.eup %4285 }
 0x2e5   : > { %2558 = vperm.xlu1 %4226, %v6166_v33   ;;  %2543 = vperm.xlu0 %4225, %v6119_v37  }
 0x2e9   : > { %2568 = vperm.xlu1 %4226, %v6180_v62   ;;  %2553 = vperm.xlu0 %4225, %v6134_v30   ;;  %v7548_v62 = vld [vmem:[#allocation69_spill] sm:$0xff] }
 0x2ed   : > { %2578 = vperm.xlu1 %4226, %v6194_v20   ;;  %2563 = vperm.xlu0 %4225, %v6149_v17  }
 0x2f1   : > { %2583 = vperm.xlu1 %4226, %v6177_v41   ;;  %2573 = vperm.xlu0 %4225, %v6163_v5   ;;  %v7549_v41 = vld [vmem:[#allocation70_spill] sm:$0xff]  ;;  %v2043_v5 = vld [vmem:[#allocation3 + $0x10] sm:$0xff] }
 0x2f5   : > { %2593 = vperm.xlu1 %4226, %v6191_v24   ;;  %2588 = vperm.xlu0 %4225, %v7543_v51   ;;  %v7547_v24 = vld [vmem:[#allocation127_spill] sm:$0xff]  ;;  %v2300_v51 = vmul.f32 %v4284_v40, %v2044_v29 }
 0x2f9   : > { %2598 = vperm.xlu1 %4226, %v7544_v1   ;;  %2603 = vperm.xlu0 %4225, %v7545_v11   ;;  %v7550_v1 = vsub.f32 %v7548_v62, %v7549_v41 }
 0x2fa   : > { %v2874_v50 = vpop.xlane.xlu0 %2873 }
 0x2fb   : > { %v3001_v20 = vadd.f32 %v2874_v50, %v2297_v39  ;;  %v2177_v33 = vmul.f32 1.442695, %v7550_v1  ;;  %v4288_v39 = vpop.eup %4287  ;;  %v7552_v50 = vld [vmem:[#allocation71_spill] sm:$0xff]  ;;  %v7555_v1 = vld [vmem:[#allocation74_spill] sm:$0xff] }
 0x2fc   : > { %v2299_v41 = vmul.f32 %v4288_v39, %v2043_v5  ;;  %v2045_v5 = vld [vmem:[#allocation3 + $0x20] sm:$0xff] }
 0x2fd   : > { %3065 = vst.msk [vmem:[#allocation3] sm:$0xff] %vm266_vm2, %v3001_v20  ;;  %2608 = vperm.xlu0 %4225, %v7546_v8   ;;  %v2298_v20 = vmul.f32 %v4286_v2, %v2042_v28  ;;  %4289 = vpow2.f32 %v2177_v33  ;;  %v7553_v8 = vld [vmem:[#allocation72_spill] sm:$0xff] }
 0x301   : > { %2613 = vperm.xlu0 %4225, %v7547_v24   ;;  %v7554_v24 = vsub.f32 %v7552_v50, %v7553_v8 }
 0x302   : > { %v2880_v15 = vpop.xlane.xlu0 %2879 }
 0x303   : > { %v3004_v11 = vadd.f32 %v2880_v15, %v2300_v51  ;;  %v2181_v40 = vmul.f32 1.442695, %v7554_v24  ;;  %v7556_v51 = vld [vmem:[#allocation75_spill] sm:$0xff] }
 0x304   : > { %v3260_v53 = vld [vmem:[#allocation3] sm:$0xff] }
 0x305   : > { %3068 = vst.msk [vmem:[#allocation3 + $0x18] sm:$0xff] %vm266_vm2, %v3004_v11  ;;  %2618 = vperm.xlu0 %4225, %v7551_v63   ;;  %4291 = vlog2.f32 %v3260_v53  ;;  %v7557_v11 = vsub.f32 %v7555_v1, %v7556_v51 }
 0x306   : > { %4293 = vpow2.f32 %v2181_v40  ;;  %v2047_v40 = vld [vmem:[#allocation3 + $0x30] sm:$0xff] }
 0x307   : > { %v2876_v29 = vpop.xlane.xlu1 %2875  ;;  %v2179_v15 = vmul.f32 1.442695, %v7557_v11 }
 0x308   : > { %v3002_v36 = vadd.f32 %v2876_v29, %v2298_v20 }
 0x309   : > { %2623 = vperm.xlu0 %4225, %v6256_v49  }
 0x30a   : > { %3066 = vst.msk [vmem:[#allocation3 + $0x8] sm:$0xff] %vm266_vm2, %v3002_v36  ;;  %v4290_v36 = vpop.eup %4289 }
 0x30b   : > { %v2878_v62 = vpop.xlane.xlu1 %2877  ;;  %v2301_v53 = vmul.f32 %v4290_v36, %v2045_v5  ;;  %v3516_v5 = vld [vmem:[#allocation4] sm:$0xff] }
 0x30c   : > { %v3263_v33 = vld [vmem:[#allocation3 + $0x18] sm:$0xff]  ;;  %v3003_v2 = vadd.f32 %v2878_v62, %v2299_v41  ;;  %v3196_v62 = vld [vmem:[#allocation2] sm:$0xff] }
 0x30d   : > { %4295 = vlog2.f32 %v3263_v33  ;;  %2628 = vperm.xlu0 %4225, %v6283_v47   ;;  %v4655_v47 = vld [vmem:[%s4801_s29 + $0x10] sm:$0xff] }
 0x30e   : > { %3067 = vst.msk [vmem:[#allocation3 + $0x10] sm:$0xff] %vm266_vm2, %v3003_v2  ;;  %4297 = vpow2.f32 %v2179_v15  ;;  %vm3646_vm8 = vcmp.ge.s32.totalorder %v4655_v47, 0 }
 0x311   : > { %v3261_v24 = vld [vmem:[#allocation3 + $0x8] sm:$0xff]  ;;  %2633 = vperm.xlu0 %4225, %v6299_v21  }
 0x312   : > { %4299 = vlog2.f32 %v3261_v24  ;;  %v4292_v8 = vpop.eup %4291  ;;  %v2046_v24 = vld [vmem:[#allocation3 + $0x28] sm:$0xff] }
 0x313   : > { %v4294_v20 = vpop.eup %4293  ;;  %v3325_v39 = vmul.f32 0.6931472, %v4292_v8  ;;  %v3199_v8 = vld [vmem:[#allocation2 + $0x18] sm:$0xff] }
 0x314   : > { %v2303_v1 = vmul.f32 %v4294_v20, %v2047_v40  ;;  %v3197_v20 = vld [vmem:[#allocation2 + $0x8] sm:$0xff] }
 0x315   : > { %v3262_v28 = vld [vmem:[#allocation3 + $0x10] sm:$0xff]  ;;  %2638 = vperm.xlu0 %4225, %v6265_v57   ;;  %v3452_v51 = vadd.f32 %v3325_v39, %v3196_v62 }
 0x316   : > { %4301 = vlog2.f32 %v3262_v28 }
 0x317   : > { %v3580_v28 = vsub.f32 %v3452_v51, %v3516_v5  ;;  %v3198_v5 = vld [vmem:[#allocation2 + $0x10] sm:$0xff] }
 0x318   : > { %v2882_v50 = vpop.xlane.xlu1 %2881 }
 0x319   : > { %v3005_v29 = vadd.f32 %v2882_v50, %v2301_v53  ;;  %2643 = vperm.xlu0 %4225, %v6313_v48   ;;  %v3517_v48 = vld [vmem:[#allocation4 + $0x8] sm:$0xff] }
 0x31a   : > { %v4296_v41 = vpop.eup %4295 }
 0x31b   : > { %3069 = vst.msk [vmem:[#allocation3 + $0x20] sm:$0xff] %vm266_vm2, %v3005_v29  ;;  %v4298_v15 = vpop.eup %4297  ;;  %v3331_v33 = vmul.f32 0.6931472, %v4296_v41  ;;  %v4652_v29 = vld [vmem:[%s4801_s29] sm:$0xff] }
 0x31c   : > { %v2886_v11 = vpop.xlane.xlu0 %2885  ;;  %v2302_v50 = vmul.f32 %v4298_v15, %v2046_v24  ;;  %vm3644_vm5 = vcmp.ge.s32.totalorder %v4652_v29, 0 }
 0x31d   : > { %v3007_v2 = vadd.f32 %v2886_v11, %v2303_v1  ;;  %2648 = vperm.xlu0 %4225, %v6322_v9   ;;  %v3455_v39 = vadd.f32 %v3331_v33, %v3199_v8  ;;  %v4653_v9 = vld [vmem:[%s4801_s29 + $0x8] sm:$0xff]  ;;  %v3708_v51 = vsel %vm3644_vm5, %v3580_v28, 0.0 }
 0x31e   : > { %vm3645_vm6 = vcmp.ge.s32.totalorder %v4653_v9, 0 }
 0x31f   : > { %v4300_v36 = vpop.eup %4299  ;;  %3071 = vst.msk [vmem:[#allocation3 + $0x30] sm:$0xff] %vm266_vm2, %v3007_v2  ;;  %v3519_v2 = vld [vmem:[#allocation4 + $0x18] sm:$0xff] }
 0x320   : > { %v3327_v53 = vmul.f32 0.6931472, %v4300_v36  ;;  %v4654_v36 = vld [vmem:[%s4801_s29 + $0x18] sm:$0xff]  ;;  %v3583_v8 = vsub.f32 %v3455_v39, %v3519_v2 }
 0x321   : > { %v2884_v40 = vpop.xlane.xlu1 %2883  ;;  %2653 = vperm.xlu0 %4225, %v6276_v56   ;;  %vm3647_vm7 = vcmp.ge.s32.totalorder %v4654_v36, 0 }
 0x322   : > { %v3453_v41 = vadd.f32 %v3327_v53, %v3197_v20  ;;  %v3264_v62 = vld [vmem:[#allocation3 + $0x20] sm:$0xff]  ;;  %v3006_v1 = vadd.f32 %v2884_v40, %v2302_v50 }
 0x323   : > { %v4302_v11 = vpop.eup %4301  ;;  %4303 = vlog2.f32 %v3264_v62  ;;  %v7558_v20 = vld [vmem:[#allocation21_spill] sm:$0xff]  ;;  %v7559_v62 = vld [vmem:[#allocation15_spill] sm:$0xff] }
 0x324   : > { %v3581_v15 = vsub.f32 %v3453_v41, %v3517_v48  ;;  %v3329_v24 = vmul.f32 0.6931472, %v4302_v11  ;;  %3070 = vst.msk [vmem:[#allocation3 + $0x28] sm:$0xff] %vm266_vm2, %v3006_v1  ;;  %v2404_v33 = vpop.permute.xlu0 %2403  ;;  %v3518_v48 = vld [vmem:[#allocation4 + $0x10] sm:$0xff]  ;;  %v3772_v41 = vsel %vm266_vm2, %v3708_v51, 0.0 }
 0x325   : > { %v2399_v53 = vpop.permute.xlu1 %2398  ;;  %2658 = vperm.xlu0 %4225, %v6331_v4   ;;  %v2689_v40 = vsub.f32 %v7558_v20, %v2404_v33 }
 0x326   : > { %v3709_v50 = vsel %vm3645_vm6, %v3581_v15, 0.0  ;;  %v3454_v29 = vadd.f32 %v3329_v24, %v3198_v5  ;;  %v3266_v9 = vld [vmem:[#allocation3 + $0x30] sm:$0xff]  ;;  %v2688_v28 = vsub.f32 %v7559_v62, %v2399_v53  ;;  %v3711_v15 = vsel %vm3647_vm7, %v3583_v8, 0.0  ;;  %v7560_v53 = vld [vmem:[#allocation26_spill] sm:$0xff] }
 0x327   : > { %v3773_v1 = vsel %vm266_vm2, %v3709_v50, 0.0  ;;  %4305 = vlog2.f32 %v3266_v9  ;;  %v2761_v5 = vmul.f32 1.442695, %v2689_v40  ;;  %v7561_v8 = vld [vmem:[#allocation18_spill] sm:$0xff] }
 0x328   : > { %v3774_v11 = vadd.f32 %v3773_v1, %v3772_v41  ;;  %v3582_v39 = vsub.f32 %v3454_v29, %v3518_v48  ;;  %v2759_v2 = vmul.f32 1.442695, %v2688_v28  ;;  %v2414_v56 = vpop.permute.xlu0 %2413  ;;  %v3777_v29 = vsel %vm266_vm2, %v3711_v15, 0.0 }
 0x329   : > { %v2409_v24 = vpop.permute.xlu1 %2408  ;;  %2663 = vperm.xlu0 %4225, %v6292_v14   ;;  %v2691_v28 = vsub.f32 %v7561_v8, %v2414_v56 }
 0x32a   : > { %v3710_v33 = vsel %vm3646_vm8, %v3582_v39, 0.0  ;;  %4307 = vpow2.f32 %v2759_v2  ;;  %v2690_v47 = vsub.f32 %v7560_v53, %v2409_v24  ;;  %v7562_v24 = vld [vmem:[#allocation22_spill] sm:$0xff] }
 0x32b   : > { %v3775_v20 = vsel %vm266_vm2, %v3710_v33, 0.0  ;;  %v3265_v51 = vld [vmem:[#allocation3 + $0x28] sm:$0xff]  ;;  %v2765_v2 = vmul.f32 1.442695, %v2691_v28 }
 0x32c   : > { %v3776_v62 = vadd.f32 %v3775_v20, %v3774_v11  ;;  %4309 = vlog2.f32 %v3265_v51  ;;  %v2424_v50 = vpop.permute.xlu0 %2423  ;;  %v2763_v40 = vmul.f32 1.442695, %v2690_v47  ;;  %v3200_v11 = vld [vmem:[#allocation2 + $0x20] sm:$0xff] }
 0x32d   : > { %v2419_v9 = vpop.permute.xlu1 %2418  ;;  %2668 = vperm.xlu0 %4225, %v6340_v59   ;;  %4311 = vpow2.f32 %v2761_v5  ;;  %v4656_v20 = vld [vmem:[%s4801_s29 + $0x20] sm:$0xff] }
 0x32e   : > { %v3778_v36 = vadd.f32 %v3777_v29, %v3776_v62  ;;  %4313 = vpow2.f32 %v2763_v40  ;;  %v2692_v15 = vsub.f32 %v7562_v24, %v2419_v9  ;;  %vm3648_vm9 = vcmp.ge.s32.totalorder %v4656_v20, 0  ;;  %v3520_v51 = vld [vmem:[#allocation4 + $0x20] sm:$0xff]  ;;  %v3202_v40 = vld [vmem:[#allocation2 + $0x30] sm:$0xff] }
 0x32f   : > { %4315 = vpow2.f32 %v2765_v2  ;;  %v7563_v29 = vld [vmem:[#allocation29_spill] sm:$0xff]  ;;  %v7564_v2 = vld [vmem:[#allocation34_spill] sm:$0xff] }
 0x330   : > { %v4304_v48 = vpop.eup %4303  ;;  %v2434_v41 = vpop.permute.xlu0 %2433  ;;  %v2693_v8 = vsub.f32 %v7563_v29, %v2424_v50  ;;  %v3522_v29 = vld [vmem:[#allocation4 + $0x30] sm:$0xff] }
 0x331   : > { %v3333_v1 = vmul.f32 0.6931472, %v4304_v48  ;;  %v2429_v39 = vpop.permute.xlu1 %2428  ;;  %2673 = vperm.xlu0 %4225, %v6308_v43   ;;  %v2767_v48 = vmul.f32 1.442695, %v2692_v15 }
 0x332   : > { %v2694_v50 = vsub.f32 %v7564_v2, %v2429_v39 }
 0x333   : > { %v3456_v33 = vadd.f32 %v3333_v1, %v3200_v11  ;;  %4317 = vpow2.f32 %v2767_v48 }
 0x334   : > { %v4306_v53 = vpop.eup %4305  ;;  %v6428_v5 = vpop.permute.xlu0 %2448 }
 0x335   : > { %v3584_v56 = vsub.f32 %v3456_v33, %v3520_v51  ;;  %v3337_v47 = vmul.f32 0.6931472, %v4306_v53  ;;  %v2439_v62 = vpop.permute.xlu1 %2438  ;;  %2678 = vperm.xlu0 %4225, %v6349_v54   ;;  %v2769_v51 = vmul.f32 1.442695, %v2693_v8  ;;  %v3201_v54 = vld [vmem:[#allocation2 + $0x28] sm:$0xff]  ;;  %v7565_v8 = vld [vmem:[#allocation25_spill] sm:$0xff] }
 0x336   : > { %v2695_v48 = vsub.f32 %v7565_v8, %v2434_v41  ;;  %v7568_v8 = vld [vmem:[#allocation42_spill] sm:$0xff] }
 0x337   : > { %v4308_v28 = vpop.eup %4307  ;;  %v3712_v59 = vsel %vm3648_vm9, %v3584_v56, 0.0  ;;  %v3458_v1 = vadd.f32 %v3337_v47, %v3202_v40  ;;  %v4657_v47 = vld [vmem:[%s4801_s29 + $0x28] sm:$0xff]  ;;  %4319 = vpow2.f32 %v2769_v51 }
 0x338   : > { %v3779_v9 = vsel %vm266_vm2, %v3712_v59, 0.0  ;;  %2887 = vadd.xlane.f32.xlu1 %v4308_v28  ;;  %v6433_v11 = vpop.permute.xlu0 %2463  ;;  %vm3649_vm10 = vcmp.ge.s32.totalorder %v4657_v47, 0  ;;  %v4658_v28 = vld [vmem:[%s4801_s29 + $0x30] sm:$0xff]  ;;  %v3521_v40 = vld [vmem:[#allocation4 + $0x28] sm:$0xff] }
 0x339   : > { %v4310_v24 = vpop.eup %4309  ;;  %v3780_v33 = vadd.f32 %v3779_v9, %v3778_v36  ;;  %v2444_v53 = vpop.permute.xlu1 %2443  ;;  %v3586_v56 = vsub.f32 %v3458_v1, %v3522_v29  ;;  %vm3650_vm11 = vcmp.ge.s32.totalorder %v4658_v28, 0  ;;  %v2773_v29 = vmul.f32 1.442695, %v2695_v48  ;;  %v7566_v47 = vld [vmem:[#allocation30_spill] sm:$0xff] }
 0x33a   : > { %v3335_v20 = vmul.f32 0.6931472, %v4310_v24  ;;  %v4312_v15 = vpop.eup %4311  ;;  %v2771_v24 = vmul.f32 1.442695, %v2694_v50  ;;  %v2696_v28 = vsub.f32 %v7566_v47, %v2439_v62  ;;  %v2698_v62 = vsub.f32 %v7568_v8, %v6428_v5 }
 0x33b   : > { %v4314_v39 = vpop.eup %4313  ;;  %v3714_v2 = vsel %vm3650_vm11, %v3586_v56, 0.0 }
 0x33c   : > { %v3457_v4 = vadd.f32 %v3335_v20, %v3201_v54  ;;  %2889 = vadd.xlane.f32.xlu1 %v4312_v15  ;;  %v6436_v59 = vpop.permute.xlu0 %2478  ;;  %4321 = vpow2.f32 %v2771_v24  ;;  %v4316_v14 = vpop.eup %4315  ;;  %v2775_v56 = vmul.f32 1.442695, %v2696_v28 }
 0x33d   : > { %v2454_v36 = vpop.permute.xlu1 %2453  ;;  %4323 = vpow2.f32 %v2773_v29 }
 0x33e   : > { %v3585_v9 = vsub.f32 %v3457_v4, %v3521_v40  ;;  %v3783_v4 = vsel %vm266_vm2, %v3714_v2, 0.0  ;;  %v7567_v40 = vld [vmem:[#allocation37_spill] sm:$0xff]  ;;  %4325 = vpow2.f32 %v2775_v56  ;;  %v2779_v2 = vmul.f32 1.442695, %v2698_v62 }
 0x340   : > { %v3713_v43 = vsel %vm3649_vm10, %v3585_v9, 0.0  ;;  %2891 = vadd.xlane.f32.xlu1 %v4314_v39  ;;  %v6441_v1 = vpop.permute.xlu0 %2488  ;;  %v2697_v9 = vsub.f32 %v7567_v40, %v2444_v53  ;;  %v7570_v53 = vld [vmem:[#allocation53_spill] sm:$0xff] }
 0x341   : > { %v3781_v54 = vsel %vm266_vm2, %v3713_v43, 0.0  ;;  %v2459_v20 = vpop.permute.xlu1 %2458  ;;  %v4318_v43 = vpop.eup %4317 }
 0x342   : > { %v3782_v15 = vadd.f32 %v3781_v54, %v3780_v33  ;;  %v2777_v24 = vmul.f32 1.442695, %v2697_v9  ;;  %v7571_v9 = vld [vmem:[#allocation38_spill] sm:$0xff] }
 0x344   : > { %v6446_v51 = vadd.f32 %v3783_v4, %v3782_v15  ;;  %2893 = vadd.xlane.f32.xlu1 %v4316_v14  ;;  %v6448_v41 = vpop.permute.xlu0 %2498  ;;  %v4320_v39 = vpop.eup %4319  ;;  %4327 = vpow2.f32 %v2777_v24  ;;  %v7569_v15 = vld [vmem:[#allocation33_spill] sm:$0xff]  ;;  %v7572_v24 = vld [vmem:[#allocation8_spill] sm:$0xff] }
 0x345   : > { %v2469_v50 = vpop.permute.xlu1 %2468  ;;  %v2699_v29 = vsub.f32 %v7569_v15, %v2454_v36  ;;  %4329 = vpow2.f32 %v2779_v2 }
 0x347   : > { %v2781_v56 = vmul.f32 1.442695, %v2699_v29 }
 0x348   : > { %2895 = vadd.xlane.f32.xlu1 %v4318_v43  ;;  %v6451_v33 = vpop.permute.xlu0 %2503  ;;  %v2700_v43 = vsub.f32 %v7571_v9, %v2459_v20 }
 0x349   : > { %v2474_v48 = vpop.permute.xlu1 %2473  ;;  %v4322_v28 = vpop.eup %4321 }
 0x34a   : > { %v4324_v8 = vpop.eup %4323 }
 0x34c   : > { %2897 = vadd.xlane.f32.xlu1 %v4320_v39  ;;  %v6455_v14 = vpop.permute.xlu0 %2513 }
 0x34d   : > { %v2484_v54 = vpop.permute.xlu1 %2483 }
 0x34e   : > { %v2705_v47 = vsub.f32 %v7570_v53, %v2484_v54  ;;  %v7573_v54 = vld [vmem:[#allocation45_spill] sm:$0xff]  ;;  %v2783_v53 = vmul.f32 1.442695, %v2700_v43 }
 0x34f   : > { %v2701_v15 = vsub.f32 %v7573_v54, %v6433_v11 }
 0x350   : > { %v2793_v4 = vmul.f32 1.442695, %v2705_v47  ;;  %2899 = vadd.xlane.f32.xlu1 %v4322_v28  ;;  %v6459_v40 = vpop.permute.xlu0 %2518  ;;  %v4326_v47 = vpop.eup %4325 }
 0x351   : > { %v6461_v5 = vpop.permute.xlu1 %2493  ;;  %v2785_v29 = vmul.f32 1.442695, %v2701_v15 }
 0x352   : > { %4331 = vpow2.f32 %v2793_v4  ;;  %v7574_v4 = vld [vmem:[#allocation50_spill] sm:$0xff] }
 0x353   : > { %4333 = vpow2.f32 %v2781_v56  ;;  %v2702_v9 = vsub.f32 %v7574_v4, %v2469_v50 }
 0x354   : > { %2901 = vadd.xlane.f32.xlu1 %v4324_v8  ;;  %v2524_v62 = vpop.permute.xlu0 %2523  ;;  %v4328_v8 = vpop.eup %4327 }
 0x355   : > { %v2713_v39 = vsub.f32 %v7572_v24, %v2524_v62  ;;  %v6465_v36 = vpop.permute.xlu1 %2508  ;;  %v7575_v24 = vld [vmem:[#allocation6_spill] sm:$0xff]  ;;  %v4330_v56 = vpop.eup %4329  ;;  %v2787_v43 = vmul.f32 1.442695, %v2702_v9 }
 0x357   : > { %v2809_v2 = vmul.f32 1.442695, %v2713_v39  ;;  %v7576_v39 = vld [vmem:[#allocation41_spill] sm:$0xff] }
 0x358   : > { %2903 = vadd.xlane.f32.xlu1 %v4326_v47  ;;  %v6469_v28 = vpop.permute.xlu0 %2528  ;;  %v2703_v54 = vsub.f32 %v7576_v39, %v2474_v48  ;;  %v7579_v48 = vld [vmem:[#allocation13_spill] sm:$0xff] }
 0x359   : > { %4335 = vpow2.f32 %v2809_v2  ;;  %v6471_v20 = vpop.permute.xlu1 %2538 }
 0x35a   : > { %4337 = vpow2.f32 %v2783_v53  ;;  %v7577_v53 = vld [vmem:[#allocation16_spill] sm:$0xff] }
 0x35b   : > { %4339 = vpow2.f32 %v2785_v29 }
 0x35c   : > { %2905 = vadd.xlane.f32.xlu1 %v4328_v8  ;;  %v2534_v62 = vpop.permute.xlu0 %2533  ;;  %v7578_v8 = vld [vmem:[#allocation46_spill] sm:$0xff] }
 0x35d   : > { %v2715_v21 = vsub.f32 %v7575_v24, %v2534_v62  ;;  %v6475_v11 = vpop.permute.xlu1 %2548  ;;  %v2704_v62 = vsub.f32 %v7578_v8, %v6436_v59  ;;  %v2789_v24 = vmul.f32 1.442695, %v2703_v54  ;;  %v7582_v8 = vld [vmem:[#allocation49_spill] sm:$0xff] }
 0x35f   : > { %v4332_v47 = vpop.eup %4331  ;;  %v2813_v2 = vmul.f32 1.442695, %v2715_v21 }
 0x360   : > { %2921 = vadd.xlane.f32.xlu0 %v4332_v47  ;;  %2907 = vadd.xlane.f32.xlu1 %v4330_v56  ;;  %v2544_v15 = vpop.permute.xlu0 %2543  ;;  %v4334_v57 = vpop.eup %4333  ;;  %v2791_v47 = vmul.f32 1.442695, %v2704_v62 }
 0x361   : > { %4341 = vpow2.f32 %v2813_v2  ;;  %v2717_v50 = vsub.f32 %v7577_v53, %v2544_v15  ;;  %v6479_v4 = vpop.permute.xlu1 %2558  ;;  %v7580_v2 = vld [vmem:[#allocation58_spill] sm:$0xff] }
 0x362   : > { %4343 = vpow2.f32 %v2787_v43  ;;  %v2706_v15 = vsub.f32 %v7580_v2, %v6441_v1  ;;  %v7581_v43 = vld [vmem:[#allocation23_spill] sm:$0xff] }
 0x363   : > { %v2817_v29 = vmul.f32 1.442695, %v2717_v50 }
 0x364   : > { %2909 = vadd.xlane.f32.xlu1 %v4334_v57  ;;  %v2554_v9 = vpop.permute.xlu0 %2553  ;;  %v2795_v50 = vmul.f32 1.442695, %v2706_v15 }
 0x365   : > { %4345 = vpow2.f32 %v2817_v29  ;;  %v2719_v21 = vsub.f32 %v7579_v48, %v2554_v9  ;;  %v6484_v39 = vpop.permute.xlu1 %2568  ;;  %v2707_v29 = vsub.f32 %v7582_v8, %v6461_v5 }
 0x366   : > { %v4336_v56 = vpop.eup %4335  ;;  %4347 = vpow2.f32 %v2789_v24  ;;  %v7583_v24 = vld [vmem:[#allocation19_spill] sm:$0xff] }
 0x367   : > { %v4338_v53 = vpop.eup %4337  ;;  %v2821_v63 = vmul.f32 1.442695, %v2719_v21  ;;  %2937 = vadd.xlane.f32.xlu0 %v4336_v56 }
 0x368   : > { %2911 = vadd.xlane.f32.xlu1 %v4338_v53  ;;  %v2564_v59 = vpop.permute.xlu0 %2563  ;;  %v4340_v62 = vpop.eup %4339  ;;  %v2797_v53 = vmul.f32 1.442695, %v2707_v29 }
 0x369   : > { %4349 = vpow2.f32 %v2821_v63  ;;  %v2721_v57 = vsub.f32 %v7581_v43, %v2564_v59  ;;  %v6489_v54 = vpop.permute.xlu1 %2578  ;;  %v7584_v63 = vld [vmem:[#allocation54_spill] sm:$0xff]  ;;  %v7585_v59 = vld [vmem:[#allocation31_spill] sm:$0xff] }
 0x36a   : > { %4351 = vpow2.f32 %v2791_v47  ;;  %v2708_v2 = vsub.f32 %v7584_v63, %v6448_v41 }
 0x36b   : > { %v2825_v9 = vmul.f32 1.442695, %v2721_v57 }
 0x36c   : > { %2913 = vadd.xlane.f32.xlu1 %v4340_v62  ;;  %v2574_v1 = vpop.permute.xlu0 %2573 }
 0x36d   : > { %4353 = vpow2.f32 %v2825_v9  ;;  %v2723_v48 = vsub.f32 %v7583_v24, %v2574_v1  ;;  %v2584_v21 = vpop.permute.xlu1 %2583  ;;  %v2799_v9 = vmul.f32 1.442695, %v2708_v2  ;;  %v7586_v1 = vld [vmem:[#allocation61_spill] sm:$0xff]  ;;  %v7587_v24 = vld [vmem:[#allocation27_spill] sm:$0xff] }
 0x36e   : > { %v4342_v56 = vpop.eup %4341  ;;  %4355 = vpow2.f32 %v2795_v50  ;;  %v2725_v47 = vsub.f32 %v7585_v59, %v2584_v21  ;;  %v2709_v50 = vsub.f32 %v7586_v1, %v6451_v33 }
 0x36f   : > { %v4344_v15 = vpop.eup %4343  ;;  %v2829_v43 = vmul.f32 1.442695, %v2723_v48  ;;  %2941 = vadd.xlane.f32.xlu0 %v4342_v56  ;;  %v7588_v56 = vld [vmem:[#allocation39_spill] sm:$0xff] }
 0x370   : > { %2915 = vadd.xlane.f32.xlu1 %v4344_v15  ;;  %v6497_v5 = vpop.permute.xlu0 %2588  ;;  %v2833_v57 = vmul.f32 1.442695, %v2725_v47  ;;  %v2801_v47 = vmul.f32 1.442695, %v2709_v50  ;;  %v7589_v15 = vld [vmem:[#allocation65_spill] sm:$0xff]  ;;  %v7591_v50 = vld [vmem:[#allocation35_spill] sm:$0xff] }
 0x371   : > { %4357 = vpow2.f32 %v2829_v43  ;;  %v2594_v8 = vpop.permute.xlu1 %2593  ;;  %v2710_v2 = vsub.f32 %v7589_v15, %v6465_v36  ;;  %v7593_v15 = vld [vmem:[#allocation14_spill] sm:$0xff] }
 0x372   : > { %v4346_v62 = vpop.eup %4345  ;;  %4359 = vpow2.f32 %v2797_v53  ;;  %v2727_v41 = vsub.f32 %v7587_v24, %v2594_v8 }
 0x373   : > { %v4348_v29 = vpop.eup %4347  ;;  %2945 = vadd.xlane.f32.xlu0 %v4346_v62  ;;  %4361 = vpow2.f32 %v2833_v57  ;;  %v7590_v57 = vld [vmem:[#allocation57_spill] sm:$0xff]  ;;  %v2803_v1 = vmul.f32 1.442695, %v2710_v2  ;;  %v2714_v2 = vsub.f32 %v7593_v15, %v6469_v28 }
 0x374   : > { %2917 = vadd.xlane.f32.xlu1 %v4348_v29  ;;  %v2604_v21 = vpop.permute.xlu0 %2603  ;;  %v2837_v48 = vmul.f32 1.442695, %v2727_v41  ;;  %4363 = vpow2.f32 %v2799_v9  ;;  %v2711_v62 = vsub.f32 %v7590_v57, %v6455_v14  ;;  %v7598_v15 = vld [vmem:[#allocation17_spill] sm:$0xff] }
 0x375   : > { %v2729_v63 = vsub.f32 %v7588_v56, %v2604_v21  ;;  %v7592_v21 = vld [vmem:[#allocation62_spill] sm:$0xff] }
 0x376   : > { %v4350_v59 = vpop.eup %4349  ;;  %4365 = vpow2.f32 %v2837_v48  ;;  %v2805_v29 = vmul.f32 1.442695, %v2711_v62  ;;  %v2712_v56 = vsub.f32 %v7592_v21, %v6459_v40  ;;  %v2811_v62 = vmul.f32 1.442695, %v2714_v2 }
 0x377   : > { %v4352_v43 = vpop.eup %4351  ;;  %2949 = vadd.xlane.f32.xlu0 %v4350_v59  ;;  %v2841_v53 = vmul.f32 1.442695, %v2729_v63  ;;  %4367 = vpow2.f32 %v2801_v47  ;;  %v2720_v2 = vsub.f32 %v7598_v15, %v6479_v4  ;;  %v7603_v15 = vld [vmem:[#allocation51_spill] sm:$0xff] }
 0x378   : > { %2919 = vadd.xlane.f32.xlu1 %v4352_v43  ;;  %v6505_v33 = vpop.permute.xlu0 %2608  ;;  %v2807_v47 = vmul.f32 1.442695, %v2712_v56 }
 0x379   : > { %4369 = vpow2.f32 %v2841_v53 }
 0x37a   : > { %v4354_v8 = vpop.eup %4353  ;;  %4371 = vpow2.f32 %v2803_v1  ;;  %v7595_v1 = vld [vmem:[#allocation11_spill] sm:$0xff] }
 0x37b   : > { %v4356_v24 = vpop.eup %4355  ;;  %2953 = vadd.xlane.f32.xlu0 %v4354_v8  ;;  %v7594_v8 = vld [vmem:[#allocation47_spill] sm:$0xff] }
 0x37c   : > { %2923 = vadd.xlane.f32.xlu1 %v4356_v24  ;;  %v2614_v9 = vpop.permute.xlu0 %2613  ;;  %v2716_v24 = vsub.f32 %v7595_v1, %v6471_v20 }
 0x37d   : > { %v2731_v36 = vsub.f32 %v7591_v50, %v2614_v9 }
 0x37e   : > { %v4358_v41 = vpop.eup %4357 }
 0x37f   : > { %v4360_v48 = vpop.eup %4359  ;;  %v2845_v63 = vmul.f32 1.442695, %v2731_v36  ;;  %2957 = vadd.xlane.f32.xlu0 %v4358_v41  ;;  %v2815_v41 = vmul.f32 1.442695, %v2716_v24  ;;  %v7600_v24 = vld [vmem:[#allocation55_spill] sm:$0xff] }
 0x380   : > { %2925 = vadd.xlane.f32.xlu1 %v4360_v48  ;;  %v6512_v59 = vpop.permute.xlu0 %2618  ;;  %v4362_v14 = vpop.eup %4361 }
 0x381   : > { %4373 = vpow2.f32 %v2845_v63  ;;  %v4364_v43 = vpop.eup %4363  ;;  %v7597_v63 = vld [vmem:[#allocation43_spill] sm:$0xff] }
 0x382   : > { %4375 = vpow2.f32 %v2805_v29  ;;  %v7596_v29 = vld [vmem:[#allocation20_spill] sm:$0xff] }
 0x383   : > { %2961 = vadd.xlane.f32.xlu0 %v4362_v14  ;;  %v4366_v57 = vpop.eup %4365  ;;  %4377 = vpow2.f32 %v2807_v47  ;;  %v2718_v21 = vsub.f32 %v7596_v29, %v6475_v11  ;;  %v2823_v11 = vmul.f32 1.442695, %v2720_v2 }
 0x384   : > { %2927 = vadd.xlane.f32.xlu1 %v4364_v43  ;;  %v2624_v53 = vpop.permute.xlu0 %2623  ;;  %v4368_v9 = vpop.eup %4367 }
 0x385   : > { %v2733_v40 = vsub.f32 %v7594_v8, %v2624_v53  ;;  %v2819_v47 = vmul.f32 1.442695, %v2718_v21 }
 0x386   : > { %v4370_v28 = vpop.eup %4369 }
 0x387   : > { %v2849_v50 = vmul.f32 1.442695, %v2733_v40  ;;  %2965 = vadd.xlane.f32.xlu0 %v4366_v57  ;;  %v4372_v56 = vpop.eup %4371  ;;  %v7599_v40 = vld [vmem:[#allocation28_spill] sm:$0xff] }
 0x388   : > { %2929 = vadd.xlane.f32.xlu1 %v4368_v9  ;;  %v6519_v36 = vpop.permute.xlu0 %2628  ;;  %v2722_v57 = vsub.f32 %v7599_v40, %v6484_v39 }
 0x389   : > { %4379 = vpow2.f32 %v2849_v50 }
 0x38a   : > { %4381 = vpow2.f32 %v2811_v62  ;;  %v2827_v4 = vmul.f32 1.442695, %v2722_v57 }
 0x38b   : > { %2969 = vadd.xlane.f32.xlu0 %v4370_v28  ;;  %4383 = vpow2.f32 %v2815_v41  ;;  %v7601_v28 = vld [vmem:[#allocation24_spill] sm:$0xff] }
 0x38c   : > { %2931 = vadd.xlane.f32.xlu1 %v4372_v56  ;;  %v2634_v48 = vpop.permute.xlu0 %2633  ;;  %v2724_v41 = vsub.f32 %v7601_v28, %v6489_v54 }
 0x38d   : > { %v2735_v14 = vsub.f32 %v7597_v63, %v2634_v48  ;;  %v7602_v48 = vld [vmem:[#allocation36_spill] sm:$0xff] }
 0x38e   : > { %v4374_v20 = vpop.eup %4373  ;;  %v2831_v39 = vmul.f32 1.442695, %v2724_v41  ;;  %v2726_v63 = vsub.f32 %v7602_v48, %v6497_v5  ;;  %v7605_v5 = vld [vmem:[#allocation44_spill] sm:$0xff] }
 0x38f   : > { %v4376_v43 = vpop.eup %4375  ;;  %v2853_v53 = vmul.f32 1.442695, %v2735_v14  ;;  %2973 = vadd.xlane.f32.xlu0 %v4374_v20  ;;  %v2599_v20 = vpop.permute.xlu1 %2598 }
 0x390   : > { %2933 = vadd.xlane.f32.xlu1 %v4376_v43  ;;  %v6526_v8 = vpop.permute.xlu0 %2638  ;;  %v4378_v62 = vpop.eup %4377  ;;  %v2835_v54 = vmul.f32 1.442695, %v2726_v63 }
 0x391   : > { %4385 = vpow2.f32 %v2853_v53  ;;  %v7604_v53 = vld [vmem:[#allocation32_spill] sm:$0xff] }
 0x392   : > { %4387 = vpow2.f32 %v2819_v47 }
 0x393   : > { %4389 = vpow2.f32 %v2823_v11  ;;  %v2728_v11 = vsub.f32 %v7604_v53, %v2599_v20 }
 0x394   : > { %2935 = vadd.xlane.f32.xlu1 %v4378_v62  ;;  %v2644_v1 = vpop.permute.xlu0 %2643 }
 0x395   : > { %v2737_v9 = vsub.f32 %v7600_v24, %v2644_v1  ;;  %v2839_v1 = vmul.f32 1.442695, %v2728_v11  ;;  %v2730_v24 = vsub.f32 %v7605_v5, %v6505_v33  ;;  %v7612_v5 = vld [vmem:[#allocation48_spill] sm:$0xff] }
 0x396   : > { %v4380_v50 = vpop.eup %4379 }
 0x397   : > { %v4382_v29 = vpop.eup %4381  ;;  %v2857_v21 = vmul.f32 1.442695, %v2737_v9  ;;  %2977 = vadd.xlane.f32.xlu0 %v4380_v50 }
 0x398   : > { %2939 = vadd.xlane.f32.xlu1 %v4382_v29  ;;  %v6533_v56 = vpop.permute.xlu0 %2648  ;;  %v4384_v14 = vpop.eup %4383  ;;  %v2843_v29 = vmul.f32 1.442695, %v2730_v24  ;;  %v2736_v24 = vsub.f32 %v7612_v5, %v6526_v8 }
 0x399   : > { %4391 = vpow2.f32 %v2857_v21  ;;  %v7607_v21 = vld [vmem:[#allocation40_spill] sm:$0xff] }
 0x39a   : > { %4393 = vpow2.f32 %v2827_v4  ;;  %v7606_v4 = vld [vmem:[#allocation63_spill] sm:$0xff] }
 0x39b   : > { %4395 = vpow2.f32 %v2831_v39  ;;  %v2732_v39 = vsub.f32 %v7607_v21, %v6512_v59 }
 0x39c   : > { %2943 = vadd.xlane.f32.xlu1 %v4384_v14  ;;  %v2654_v47 = vpop.permute.xlu0 %2653  ;;  %v7608_v14 = vld [vmem:[#allocation77_spill] sm:$0xff] }
 0x39d   : > { %v2739_v2 = vsub.f32 %v7603_v15, %v2654_v47  ;;  %v2112_v20 = vsub.f32 %v7608_v14, %v5930_v6  ;;  %v2847_v33 = vmul.f32 1.442695, %v2732_v39  ;;  %v7609_v15 = vld [vmem:[#allocation52_spill] sm:$0xff] }
 0x39e   : > { %v4386_v43 = vpop.eup %4385  ;;  %v7615_v39 = vld [vmem:[#allocation76_spill] sm:$0xff] }
 0x39f   : > { %v4388_v40 = vpop.eup %4387  ;;  %v2861_v57 = vmul.f32 1.442695, %v2739_v2  ;;  %2981 = vadd.xlane.f32.xlu0 %v4386_v43  ;;  %v2734_v2 = vsub.f32 %v7609_v15, %v6519_v36  ;;  %v2183_v11 = vmul.f32 1.442695, %v2112_v20  ;;  %v7613_v36 = vld [vmem:[#allocation79_spill] sm:$0xff]  ;;  %v2115_v8 = vsub.f32 %v7615_v39, %v5927_v19  ;;  %v7616_v20 = vld [vmem:[#allocation56_spill] sm:$0xff] }
 0x3a0   : > { %2947 = vadd.xlane.f32.xlu1 %v4388_v40  ;;  %v2659_v62 = vpop.permute.xlu0 %2658  ;;  %v4390_v9 = vpop.eup %4389  ;;  %v7611_v40 = vld [vmem:[#allocation59_spill] sm:$0xff] }
 0x3a1   : > { %4397 = vpow2.f32 %v2861_v57  ;;  %v2851_v6 = vmul.f32 1.442695, %v2734_v2  ;;  %v2189_v15 = vmul.f32 1.442695, %v2115_v8  ;;  %v7617_v2 = vld [vmem:[#allocation81_spill] sm:$0xff] }
 0x3a2   : > { %4399 = vpow2.f32 %v2835_v54  ;;  %v7610_v54 = vld [vmem:[#allocation73_spill] sm:$0xff] }
 0x3a3   : > { %4401 = vpow2.f32 %v2839_v1  ;;  %v2113_v53 = vsub.f32 %v7610_v54, %v5910_v61  ;;  %v2855_v61 = vmul.f32 1.442695, %v2736_v24  ;;  %v7618_v54 = vld [vmem:[#allocation66_spill] sm:$0xff]  ;;  %v7620_v24 = vld [vmem:[#allocation64_spill] sm:$0xff] }
 0x3a4   : > { %2951 = vadd.xlane.f32.xlu1 %v4390_v9  ;;  %v2664_v50 = vpop.permute.xlu0 %2663 }
 0x3a5   : > { %v2741_v28 = vsub.f32 %v7606_v4, %v2664_v50  ;;  %v2185_v4 = vmul.f32 1.442695, %v2113_v53 }
 0x3a6   : > { %v4392_v41 = vpop.eup %4391 }
 0x3a7   : > { %v4394_v48 = vpop.eup %4393  ;;  %v2865_v63 = vmul.f32 1.442695, %v2741_v28  ;;  %2985 = vadd.xlane.f32.xlu0 %v4392_v41  ;;  %v2114_v28 = vsub.f32 %v7613_v36, %v5944_v23  ;;  %v7614_v41 = vld [vmem:[#allocation60_spill] sm:$0xff] }
 0x3a8   : > { %2955 = vadd.xlane.f32.xlu1 %v4394_v48  ;;  %v2669_v47 = vpop.permute.xlu0 %2668  ;;  %v4396_v43 = vpop.eup %4395 }
 0x3a9   : > { %4403 = vpow2.f32 %v2865_v63  ;;  %v2187_v48 = vmul.f32 1.442695, %v2114_v28  ;;  %v2742_v53 = vsub.f32 %v7618_v54, %v2669_v47  ;;  %v7621_v47 = vld [vmem:[#allocation83_spill] sm:$0xff] }
 0x3aa   : > { %4405 = vpow2.f32 %v2843_v29  ;;  %v2738_v29 = vsub.f32 %v7614_v41, %v6533_v56  ;;  %v7622_v41 = vld [vmem:[#allocation80_spill] sm:$0xff] }
 0x3ab   : > { %4407 = vpow2.f32 %v2847_v33  ;;  %v2740_v33 = vsub.f32 %v7616_v20, %v2659_v62  ;;  %v2867_v5 = vmul.f32 1.442695, %v2742_v53 }
 0x3ac   : > { %2959 = vadd.xlane.f32.xlu1 %v4396_v43  ;;  %v2674_v59 = vpop.permute.xlu0 %2673  ;;  %4409 = vpow2.f32 %v2183_v11  ;;  %v2859_v14 = vmul.f32 1.442695, %v2738_v29  ;;  %v2116_v43 = vsub.f32 %v7617_v2, %v5958_v22  ;;  %v2119_v29 = vsub.f32 %v7622_v41, %v5955_v42  ;;  %v2050_v2 = vld [vmem:[#allocation3 + $0x48] sm:$0xff]  ;;  %v2052_v41 = vld [vmem:[#allocation3 + $0x58] sm:$0xff] }
 0x3ad   : > { %v2743_v57 = vsub.f32 %v7611_v40, %v2674_v59  ;;  %v2863_v56 = vmul.f32 1.442695, %v2740_v33  ;;  %v7619_v59 = vld [vmem:[#allocation78_spill] sm:$0xff]  ;;  %v7624_v33 = vld [vmem:[#allocation84_spill] sm:$0xff] }
 0x3ae   : > { %v4398_v1 = vpop.eup %4397  ;;  %v2117_v40 = vsub.f32 %v7619_v59, %v5941_v25  ;;  %v2197_v42 = vmul.f32 1.442695, %v2119_v29 }
 0x3af   : > { %v4400_v9 = vpop.eup %4399  ;;  %v2869_v50 = vmul.f32 1.442695, %v2743_v57  ;;  %2989 = vadd.xlane.f32.xlu0 %v4398_v1  ;;  %v2191_v57 = vmul.f32 1.442695, %v2116_v43  ;;  %v2048_v1 = vld [vmem:[#allocation3 + $0x38] sm:$0xff]  ;;  %v7625_v43 = vld [vmem:[#allocation85_spill] sm:$0xff] }
 0x3b0   : > { %2963 = vadd.xlane.f32.xlu1 %v4400_v9  ;;  %v4402_v21 = vpop.eup %4401  ;;  %v2679_v11 = vpop.permute.xlu0 %2678 }
 0x3b1   : > { %4411 = vpow2.f32 %v2869_v50  ;;  %v2744_v22 = vsub.f32 %v7620_v24, %v2679_v11  ;;  %v2193_v50 = vmul.f32 1.442695, %v2117_v40 }
 0x3b2   : > { %4413 = vpow2.f32 %v2851_v6 }
 0x3b3   : > { %4415 = vpow2.f32 %v2185_v4  ;;  %v2118_v4 = vsub.f32 %v7621_v47, %v5972_v10 }
 0x3b4   : > { %2967 = vadd.xlane.f32.xlu1 %v4402_v21  ;;  %4417 = vpow2.f32 %v2855_v61  ;;  %v2049_v61 = vld [vmem:[#allocation3 + $0x40] sm:$0xff]  ;;  %v2871_v21 = vmul.f32 1.442695, %v2744_v22 }
 0x3b5   : > { %4419 = vpow2.f32 %v2187_v48  ;;  %v7623_v48 = vld [vmem:[#allocation82_spill] sm:$0xff] }
 0x3b6   : > { %v4404_v63 = vpop.eup %4403  ;;  %4421 = vpow2.f32 %v2859_v14  ;;  %v2195_v14 = vmul.f32 1.442695, %v2118_v4 }
 0x3b7   : > { %v4406_v23 = vpop.eup %4405  ;;  %2993 = vadd.xlane.f32.xlu0 %v4404_v63  ;;  %4423 = vpow2.f32 %v2189_v15  ;;  %v2121_v63 = vsub.f32 %v7623_v48, %v5969_v13 }
 0x3b8   : > { %2971 = vadd.xlane.f32.xlu1 %v4406_v23  ;;  %v4408_v19 = vpop.eup %4407  ;;  %4425 = vpow2.f32 %v2863_v56  ;;  %v2123_v23 = vsub.f32 %v7624_v33, %v5983_v18  ;;  %v2120_v56 = vsub.f32 %v7625_v43, %v5986_v52  ;;  %v7634_v43 = vld [vmem:[#allocation94_spill] sm:$0xff] }
 0x3b9   : > { %v4410_v62 = vpop.eup %4409  ;;  %4427 = vpow2.f32 %v2191_v57  ;;  %v2201_v13 = vmul.f32 1.442695, %v2121_v63  ;;  %v7627_v57 = vld [vmem:[#allocation87_spill] sm:$0xff]  ;;  %v7632_v63 = vld [vmem:[#allocation92_spill] sm:$0xff] }
 0x3ba   : > { %v2304_v36 = vmul.f32 %v4410_v62, %v2048_v1  ;;  %4429 = vpow2.f32 %v2867_v5  ;;  %v2205_v18 = vmul.f32 1.442695, %v2123_v23  ;;  %v2122_v62 = vsub.f32 %v7627_v57, %v6000_v55  ;;  %v7628_v5 = vld [vmem:[#allocation88_spill] sm:$0xff]  ;;  %v7633_v23 = vld [vmem:[#allocation93_spill] sm:$0xff] }
 0x3bb   : > { %4431 = vpow2.f32 %v2193_v50  ;;  %v2199_v52 = vmul.f32 1.442695, %v2120_v56  ;;  %v2127_v24 = vsub.f32 %v7628_v5, %v6011_v46  ;;  %v7629_v50 = vld [vmem:[#allocation89_spill] sm:$0xff]  ;;  %v2133_v56 = vsub.f32 %v7634_v43, %v6057_v7 }
 0x3bc   : > { %2975 = vadd.xlane.f32.xlu1 %v4408_v19  ;;  %4433 = vpow2.f32 %v2871_v21  ;;  %v7626_v19 = vld [vmem:[#allocation86_spill] sm:$0xff]  ;;  %v2124_v47 = vsub.f32 %v7629_v50, %v6014_v26  ;;  %v7631_v21 = vld [vmem:[#allocation91_spill] sm:$0xff] }
 0x3bd   : > { %v2125_v11 = vsub.f32 %v7626_v19, %v5997_v32  ;;  %4435 = vpow2.f32 %v2195_v14  ;;  %v2213_v29 = vmul.f32 1.442695, %v2127_v24  ;;  %v2131_v14 = vsub.f32 %v7632_v63, %v6041_v16 }
 0x3be   : > { %v4412_v6 = vpop.eup %4411  ;;  %4437 = vpow2.f32 %v2197_v42  ;;  %v2207_v48 = vmul.f32 1.442695, %v2124_v47 }
 0x3bf   : > { %v4414_v9 = vpop.eup %4413  ;;  %2997 = vadd.xlane.f32.xlu0 %v4412_v6  ;;  %v2051_v6 = vld [vmem:[#allocation3 + $0x50] sm:$0xff]  ;;  %4439 = vpow2.f32 %v2201_v13  ;;  %v2209_v32 = vmul.f32 1.442695, %v2125_v11 }
 0x3c0   : > { %2979 = vadd.xlane.f32.xlu1 %v4414_v9  ;;  %v4416_v28 = vpop.eup %4415  ;;  %v7635_v13 = vld [vmem:[#allocation95_spill] sm:$0xff] }
 0x3c1   : > { %v2888_v25 = vpop.xlane.xlu1 %2887  ;;  %v4418_v8 = vpop.eup %4417  ;;  %v2305_v10 = vmul.f32 %v4416_v28, %v2049_v61  ;;  %v2203_v28 = vmul.f32 1.442695, %v2122_v62  ;;  %v2130_v19 = vsub.f32 %v7635_v13, %v6060_v27  ;;  %v2054_v62 = vld [vmem:[#allocation3 + $0x68] sm:$0xff] }
 0x3c2   : > { %v3008_v39 = vadd.f32 %v2888_v25, %v2304_v36  ;;  %v4420_v20 = vpop.eup %4419  ;;  %v7630_v25 = vld [vmem:[#allocation90_spill] sm:$0xff] }
 0x3c3   : > { %v4422_v53 = vpop.eup %4421  ;;  %v2306_v59 = vmul.f32 %v4420_v20, %v2050_v2  ;;  %v2129_v61 = vsub.f32 %v7630_v25, %v6026_v38  ;;  %v2053_v2 = vld [vmem:[#allocation3 + $0x60] sm:$0xff]  ;;  %v2219_v24 = vmul.f32 1.442695, %v2130_v19  ;;  %v7642_v19 = vld [vmem:[#allocation102_spill] sm:$0xff] }
 0x3c4   : > { %3072 = vst.msk [vmem:[#allocation3 + $0x38] sm:$0xff] %vm266_vm2, %v3008_v39  ;;  %2983 = vadd.xlane.f32.xlu1 %v4418_v8  ;;  %v4424_v40 = vpop.eup %4423  ;;  %v2126_v39 = vsub.f32 %v7631_v21, %v6029_v0 }
 0x3c5   : > { %v2890_v15 = vpop.xlane.xlu1 %2889  ;;  %v4426_v9 = vpop.eup %4425  ;;  %v2307_v55 = vmul.f32 %v4424_v40, %v2051_v6  ;;  %v2217_v33 = vmul.f32 1.442695, %v2129_v61  ;;  %v7637_v6 = vld [vmem:[#allocation97_spill] sm:$0xff] }
 0x3c6   : > { %v3009_v54 = vadd.f32 %v2890_v15, %v2305_v10  ;;  %v4428_v36 = vpop.eup %4427  ;;  %v2128_v15 = vsub.f32 %v7633_v23, %v6044_v35  ;;  %v2211_v42 = vmul.f32 1.442695, %v2126_v39  ;;  %v7640_v39 = vld [vmem:[#allocation100_spill] sm:$0xff] }
 0x3c7   : > { %v4430_v8 = vpop.eup %4429  ;;  %v2308_v38 = vmul.f32 %v4428_v36, %v2052_v41 }
 0x3c8   : > { %3073 = vst.msk [vmem:[#allocation3 + $0x40] sm:$0xff] %vm266_vm2, %v3009_v54  ;;  %2987 = vadd.xlane.f32.xlu1 %v4422_v53  ;;  %v4432_v20 = vpop.eup %4431  ;;  %v2221_v53 = vmul.f32 1.442695, %v2131_v14  ;;  %v2215_v40 = vmul.f32 1.442695, %v2128_v15 }
 0x3c9   : > { %v2892_v1 = vpop.xlane.xlu1 %2891  ;;  %v4434_v54 = vpop.eup %4433  ;;  %v2309_v35 = vmul.f32 %v4432_v20, %v2053_v2  ;;  %v3523_v20 = vld [vmem:[#allocation4 + $0x38] sm:$0xff] }
 0x3ca   : > { %v3010_v22 = vadd.f32 %v2892_v1, %v2306_v59  ;;  %v4436_v59 = vpop.eup %4435  ;;  %v2225_v1 = vmul.f32 1.442695, %v2133_v56 }
 0x3cb   : > { %v3267_v4 = vld [vmem:[#allocation3 + $0x38] sm:$0xff]  ;;  %v4438_v5 = vpop.eup %4437 }
 0x3cc   : > { %4441 = vlog2.f32 %v3267_v4  ;;  %3074 = vst.msk [vmem:[#allocation3 + $0x48] sm:$0xff] %vm266_vm2, %v3010_v22  ;;  %2991 = vadd.xlane.f32.xlu1 %v4426_v9  ;;  %v7638_v22 = vld [vmem:[#allocation98_spill] sm:$0xff]  ;;  %v6607_v50 = vpop.eup %4439 }
 0x3cd   : > { %4443 = vpow2.f32 %v2205_v18  ;;  %v2894_v46 = vpop.xlane.xlu1 %2893  ;;  %v7636_v18 = vld [vmem:[#allocation96_spill] sm:$0xff]  ;;  %v2137_v9 = vsub.f32 %v7638_v22, %v6089_v58 }
 0x3ce   : > { %4445 = vpow2.f32 %v2199_v52  ;;  %v3011_v26 = vadd.f32 %v2894_v46, %v2307_v55  ;;  %v2135_v57 = vsub.f32 %v7636_v18, %v6073_v34  ;;  %v2132_v52 = vsub.f32 %v7637_v6, %v6076_v60  ;;  %v7639_v55 = vld [vmem:[#allocation99_spill] sm:$0xff] }
 0x3cf   : > { %4447 = vpow2.f32 %v2209_v32  ;;  %v3268_v10 = vld [vmem:[#allocation3 + $0x40] sm:$0xff]  ;;  %v2310_v34 = vmul.f32 %v4436_v59, %v2054_v62  ;;  %v2134_v60 = vsub.f32 %v7639_v55, %v6092_v3  ;;  %v2233_v21 = vmul.f32 1.442695, %v2137_v9  ;;  %v4659_v3 = vld [vmem:[%s4801_s29 + $0x38] sm:$0xff] }
 0x3d0   : > { %4449 = vlog2.f32 %v3268_v10  ;;  %3075 = vst.msk [vmem:[#allocation3 + $0x50] sm:$0xff] %vm266_vm2, %v3011_v26  ;;  %2995 = vadd.xlane.f32.xlu1 %v4430_v8  ;;  %v2229_v4 = vmul.f32 1.442695, %v2135_v57  ;;  %v2223_v58 = vmul.f32 1.442695, %v2132_v52  ;;  %v2139_v26 = vsub.f32 %v7640_v39, %v6104_v12  ;;  %v7641_v12 = vld [vmem:[#allocation101_spill] sm:$0xff] }
 0x3d1   : > { %4451 = vpow2.f32 %v2203_v28  ;;  %v2896_v0 = vpop.xlane.xlu1 %2895  ;;  %v2055_v28 = vld [vmem:[#allocation3 + $0x70] sm:$0xff]  ;;  %vm3651_vm12 = vcmp.ge.s32.totalorder %v4659_v3, 0  ;;  %v2136_v23 = vsub.f32 %v7641_v12, %v6107_v44  ;;  %v7644_v55 = vld [vmem:[#allocation104_spill] sm:$0xff]  ;;  %v7645_v39 = vld [vmem:[#allocation105_spill] sm:$0xff] }
 0x3d2   : > { %4453 = vpow2.f32 %v2213_v29  ;;  %v3012_v16 = vadd.f32 %v2896_v0, %v2308_v38  ;;  %v3203_v29 = vld [vmem:[#allocation2 + $0x38] sm:$0xff]  ;;  %v2311_v14 = vmul.f32 %v4438_v5, %v2055_v28  ;;  %v6621_v38 = vld [vmem:[%s4801_s29 + $0x48] sm:$0xff]  ;;  %v2237_v13 = vmul.f32 1.442695, %v2139_v26 }
 0x3d3   : > { %4455 = vpow2.f32 %v2207_v48  ;;  %v3269_v11 = vld [vmem:[#allocation3 + $0x48] sm:$0xff]  ;;  %vm3653_vm13 = vcmp.ge.s32.totalorder %v6621_v38, 0  ;;  %v2056_v0 = vld [vmem:[#allocation3 + $0x78] sm:$0xff]  ;;  %v2231_v62 = vmul.f32 1.442695, %v2136_v23  ;;  %v2140_v26 = vsub.f32 %v7645_v39, %v6137_v45  ;;  %v3206_v23 = vld [vmem:[#allocation2 + $0x50] sm:$0xff] }
 0x3d4   : > { %4457 = vlog2.f32 %v3269_v11  ;;  %3076 = vst.msk [vmem:[#allocation3 + $0x58] sm:$0xff] %vm266_vm2, %v3012_v16  ;;  %2999 = vadd.xlane.f32.xlu1 %v4434_v54  ;;  %v4661_v54 = vld [vmem:[%s4801_s29 + $0x40] sm:$0xff]  ;;  %v2141_v11 = vsub.f32 %v7642_v19, %v6119_v37 }
 0x3d5   : > { %4459 = vpow2.f32 %v2217_v33  ;;  %v2898_v7 = vpop.xlane.xlu1 %2897  ;;  %v2227_v33 = vmul.f32 1.442695, %v2134_v60  ;;  %vm3652_vm14 = vcmp.ge.s32.totalorder %v4661_v54, 0  ;;  %v2143_v60 = vsub.f32 %v7644_v55, %v6134_v30 }
 0x3d6   : > { %4461 = vpow2.f32 %v2211_v42  ;;  %v3013_v27 = vadd.f32 %v2898_v7, %v2309_v35  ;;  %v3524_v7 = vld [vmem:[#allocation4 + $0x40] sm:$0xff] }
 0x3d7   : > { %4463 = vpow2.f32 %v2221_v53  ;;  %v3270_v32 = vld [vmem:[#allocation3 + $0x50] sm:$0xff]  ;;  %v3204_v53 = vld [vmem:[#allocation2 + $0x40] sm:$0xff] }
 0x3d8   : > { %4465 = vlog2.f32 %v3270_v32  ;;  %3077 = vst.msk [vmem:[#allocation3 + $0x60] sm:$0xff] %vm266_vm2, %v3013_v27  ;;  %v2057_v27 = vld [vmem:[#allocation3 + $0x80] sm:$0xff] }
 0x3d9   : > { %v4442_v47 = vpop.eup %4441  ;;  %4467 = vpow2.f32 %v2215_v40  ;;  %v2900_v36 = vpop.xlane.xlu1 %2899 }
 0x3da   : > { %v6612_v25 = vpop.eup %4443  ;;  %4469 = vpow2.f32 %v2225_v1  ;;  %v3339_v61 = vmul.f32 0.6931472, %v4442_v47  ;;  %v3014_v46 = vadd.f32 %v2900_v36, %v2310_v34  ;;  %v7643_v1 = vld [vmem:[#allocation103_spill] sm:$0xff] }
 0x3db   : > { %v4446_v41 = vpop.eup %4445  ;;  %4471 = vpow2.f32 %v2219_v24  ;;  %v3271_v8 = vld [vmem:[#allocation3 + $0x58] sm:$0xff]  ;;  %v2138_v6 = vsub.f32 %v7643_v1, %v6122_v31  ;;  %v6644_v47 = vld [vmem:[%s4801_s29 + $0x50] sm:$0xff]  ;;  %v2241_v31 = vmul.f32 1.442695, %v2141_v11  ;;  %v6674_v11 = vld [vmem:[%s4801_s29 + $0x60] sm:$0xff] }
 0x3dc   : > { %v6616_v48 = vpop.eup %4447  ;;  %v3459_v63 = vadd.f32 %v3339_v61, %v3203_v29  ;;  %4473 = vlog2.f32 %v3271_v8  ;;  %3078 = vst.msk [vmem:[#allocation3 + $0x68] sm:$0xff] %vm266_vm2, %v3014_v46  ;;  %v2312_v18 = vmul.f32 %v4446_v41, %v2056_v0  ;;  %vm3654_vm15 = vcmp.ge.s32.totalorder %v6644_v47, 0  ;;  %v2058_v46 = vld [vmem:[#allocation3 + $0x88] sm:$0xff]  ;;  %v6655_v29 = vld [vmem:[%s4801_s29 + $0x58] sm:$0xff] }
 0x3dd   : > { %v4450_v10 = vpop.eup %4449  ;;  %4475 = vpow2.f32 %v2229_v4  ;;  %v2902_v15 = vpop.xlane.xlu1 %2901  ;;  %v3205_v4 = vld [vmem:[#allocation2 + $0x48] sm:$0xff]  ;;  %v2313_v61 = vmul.f32 %v6607_v50, %v2057_v27  ;;  %vm3655_vm0 = vcmp.ge.s32.totalorder %v6655_v29, 0  ;;  %v2235_v30 = vmul.f32 1.442695, %v2138_v6 }
 0x3de   : > { %v6626_v2 = vpop.eup %4451  ;;  %4477 = vpow2.f32 %v2223_v58  ;;  %v3587_v42 = vsub.f32 %v3459_v63, %v3523_v20  ;;  %v3341_v43 = vmul.f32 0.6931472, %v4450_v10  ;;  %v3015_v56 = vadd.f32 %v2902_v15, %v2311_v14  ;;  %v2065_v63 = vld [vmem:[#allocation3 + $0xc0] sm:$0xff]  ;;  %v7646_v0 = vld [vmem:[#allocation106_spill] sm:$0xff] }
 0x3df   : > { %v6628_v16 = vpop.eup %4453  ;;  %4479 = vpow2.f32 %v2233_v21  ;;  %v3272_v35 = vld [vmem:[#allocation3 + $0x60] sm:$0xff]  ;;  %v3525_v21 = vld [vmem:[#allocation4 + $0x48] sm:$0xff]  ;;  %v2245_v15 = vmul.f32 1.442695, %v2143_v60  ;;  %vm3656_vm1 = vcmp.ge.s32.totalorder %v6674_v11, 0 }
 0x3e0   : > { %v6633_v44 = vpop.eup %4455  ;;  %v3715_v59 = vsel %vm3651_vm12, %v3587_v42, 0.0  ;;  %v3460_v40 = vadd.f32 %v3341_v43, %v3204_v53  ;;  %4481 = vlog2.f32 %v3272_v35  ;;  %3079 = vst.msk [vmem:[#allocation3 + $0x70] sm:$0xff] %vm266_vm2, %v3015_v56  ;;  %v2145_v42 = vsub.f32 %v7646_v0, %v6149_v17  ;;  %v3526_v35 = vld [vmem:[#allocation4 + $0x50] sm:$0xff] }
 0x3e1   : > { %v4458_v57 = vpop.eup %4457  ;;  %4483 = vpow2.f32 %v2227_v33  ;;  %v3785_v37 = vsel %vm266_vm2, %v3715_v59, 0.0  ;;  %v2904_v52 = vpop.xlane.xlu1 %2903  ;;  %v2314_v43 = vmul.f32 %v6626_v2, %v2058_v46  ;;  %v2239_v17 = vmul.f32 1.442695, %v2140_v26  ;;  %v7647_v59 = vld [vmem:[#allocation108_spill] sm:$0xff]  ;;  %v7648_v2 = vld [vmem:[#allocation107_spill] sm:$0xff] }
 0x3e2   : > { %v4460_v5 = vpop.eup %4459  ;;  %v3786_v24 = vadd.f32 %v3785_v37, %v6446_v51  ;;  %v3588_v22 = vsub.f32 %v3460_v40, %v3524_v7  ;;  %v3343_v9 = vmul.f32 0.6931472, %v4458_v57  ;;  %v3016_v32 = vadd.f32 %v2904_v52, %v2312_v18  ;;  %v2059_v7 = vld [vmem:[#allocation3 + $0x90] sm:$0xff]  ;;  %v3527_v46 = vld [vmem:[#allocation4 + $0x58] sm:$0xff] }
 0x3e3   : > { %v6641_v34 = vpop.eup %4461  ;;  %4485 = vpow2.f32 %v2237_v13  ;;  %v3273_v36 = vld [vmem:[#allocation3 + $0x68] sm:$0xff]  ;;  %v2321_v13 = vmul.f32 %v4460_v5, %v2065_v63  ;;  %v2142_v40 = vsub.f32 %v7648_v2, %v7647_v59  ;;  %v3207_v5 = vld [vmem:[#allocation2 + $0x58] sm:$0xff] }
 0x3e4   : > { %v6649_v28 = vpop.eup %4463  ;;  %v3716_v51 = vsel %vm3652_vm14, %v3588_v22, 0.0  ;;  %v3461_v58 = vadd.f32 %v3343_v9, %v3205_v4  ;;  %4487 = vlog2.f32 %v3273_v36  ;;  %3080 = vst.msk [vmem:[#allocation3 + $0x78] sm:$0xff] %vm266_vm2, %v3016_v32  ;;  %v7649_v22 = vld [vmem:[#allocation111_spill] sm:$0xff]  ;;  %v7650_v9 = vld [vmem:[#allocation109_spill] sm:$0xff] }
 0x3e5   : > { %v4466_v41 = vpop.eup %4465  ;;  %4489 = vpow2.f32 %v2231_v62  ;;  %v3787_v8 = vsel %vm266_vm2, %v3716_v51, 0.0  ;;  %v2906_v3 = vpop.xlane.xlu1 %2905  ;;  %v2147_v32 = vsub.f32 %v7650_v9, %v7649_v22  ;;  %v2315_v51 = vmul.f32 %v6612_v25, %v2059_v7 }
 0x3e6   : > { %v6661_v14 = vpop.eup %4467  ;;  %v3788_v10 = vadd.f32 %v3787_v8, %v3786_v24  ;;  %v3589_v50 = vsub.f32 %v3461_v58, %v3525_v21  ;;  %v3345_v20 = vmul.f32 0.6931472, %v4466_v41  ;;  %v3017_v33 = vadd.f32 %v2906_v3, %v2313_v61  ;;  %v2073_v58 = vld [vmem:[#allocation3 + $0x100] sm:$0xff]  ;;  %v7651_v21 = vld [vmem:[#allocation112_spill] sm:$0xff] }
 0x3e7   : > { %v6663_v12 = vpop.eup %4469  ;;  %4491 = vpow2.f32 %v2241_v31  ;;  %v3274_v45 = vld [vmem:[#allocation3 + $0x70] sm:$0xff]  ;;  %v2249_v24 = vmul.f32 1.442695, %v2145_v42  ;;  %v2243_v41 = vmul.f32 1.442695, %v2142_v40  ;;  %v2060_v8 = vld [vmem:[#allocation3 + $0x98] sm:$0xff] }
 0x3e8   : > { %v6668_v56 = vpop.eup %4471  ;;  %v3717_v54 = vsel %vm3653_vm13, %v3589_v50, 0.0  ;;  %v3462_v53 = vadd.f32 %v3345_v20, %v3206_v23  ;;  %4493 = vlog2.f32 %v3274_v45  ;;  %3081 = vst.msk [vmem:[#allocation3 + $0x80] sm:$0xff] %vm266_vm2, %v3017_v33  ;;  %v3208_v20 = vld [vmem:[#allocation2 + $0x60] sm:$0xff]  ;;  %v2253_v33 = vmul.f32 1.442695, %v2147_v32  ;;  %v7653_v23 = vld [vmem:[#allocation115_spill] sm:$0xff] }
 0x3e9   : > { %v4474_v19 = vpop.eup %4473  ;;  %4495 = vpow2.f32 %v2235_v30  ;;  %v3789_v18 = vsel %vm266_vm2, %v3717_v54, 0.0  ;;  %v2908_v38 = vpop.xlane.xlu1 %2907  ;;  %v7652_v30 = vld [vmem:[#allocation110_spill] sm:$0xff] }
 0x3ea   : > { %v2922_v57 = vpop.xlane.xlu0 %2921  ;;  %v6680_v62 = vpop.eup %4475  ;;  %v3790_v1 = vadd.f32 %v3789_v18, %v3788_v10  ;;  %v3590_v6 = vsub.f32 %v3462_v53, %v3526_v35  ;;  %v3347_v37 = vmul.f32 0.6931472, %v4474_v19  ;;  %v3018_v52 = vadd.f32 %v2908_v38, %v2314_v43  ;;  %v2061_v38 = vld [vmem:[#allocation3 + $0xa0] sm:$0xff] }
 0x3eb   : > { %v6682_v27 = vpop.eup %4477  ;;  %4497 = vpow2.f32 %v2245_v15  ;;  %v3275_v4 = vld [vmem:[#allocation3 + $0x78] sm:$0xff]  ;;  %v3025_v31 = vadd.f32 %v2922_v57, %v2321_v13  ;;  %v2144_v39 = vsub.f32 %v7652_v30, %v7651_v21  ;;  %v7654_v15 = vld [vmem:[#allocation113_spill] sm:$0xff]  ;;  %v2316_v19 = vmul.f32 %v6633_v44, %v2060_v8 }
 0x3ec   : > { %v4480_v55 = vpop.eup %4479  ;;  %v3718_v60 = vsel %vm3654_vm15, %v3590_v6, 0.0  ;;  %v3463_v36 = vadd.f32 %v3347_v37, %v3207_v5  ;;  %4499 = vlog2.f32 %v3275_v4  ;;  %3082 = vst.msk [vmem:[#allocation3 + $0x88] sm:$0xff] %vm266_vm2, %v3018_v52  ;;  %v2149_v0 = vsub.f32 %v7654_v15, %v7653_v23  ;;  %v4665_v37 = vld [vmem:[%s4801_s29 + $0x68] sm:$0xff]  ;;  %v7655_v5 = vld [vmem:[#allocation116_spill] sm:$0xff] }
 0x3ed   : > { %v4482_v61 = vpop.eup %4481  ;;  %4501 = vpow2.f32 %v2239_v17  ;;  %v3791_v26 = vsel %vm266_vm2, %v3718_v60, 0.0  ;;  %3089 = vst.msk [vmem:[#allocation3 + $0xc0] sm:$0xff] %vm266_vm2, %v3025_v31  ;;  %v2910_v47 = vpop.xlane.xlu1 %2909  ;;  %v2329_v45 = vmul.f32 %v4480_v55, %v2073_v58  ;;  %v3528_v17 = vld [vmem:[#allocation4 + $0x60] sm:$0xff]  ;;  %v2247_v59 = vmul.f32 1.442695, %v2144_v39  ;;  %v3209_v52 = vld [vmem:[#allocation2 + $0x68] sm:$0xff] }
 0x3ee   : > { %v6694_v3 = vpop.eup %4483  ;;  %v3792_v63 = vadd.f32 %v3791_v26, %v3790_v1  ;;  %v3591_v10 = vsub.f32 %v3463_v36, %v3527_v46  ;;  %v3349_v50 = vmul.f32 0.6931472, %v4482_v61  ;;  %v3019_v25 = vadd.f32 %v2910_v47, %v2315_v51  ;;  %v2075_v60 = vld [vmem:[#allocation3 + $0x110] sm:$0xff]  ;;  %v6714_v51 = vld [vmem:[%s4801_s29 + $0x78] sm:$0xff]  ;;  %v3529_v61 = vld [vmem:[#allocation4 + $0x68] sm:$0xff] }
 0x3ef   : > { %4503 = vpow2.f32 %v2249_v24  ;;  %v3276_v42 = vld [vmem:[#allocation3 + $0x80] sm:$0xff]  ;;  %vm3657_vm3 = vcmp.ge.s32.totalorder %v4665_v37, 0  ;;  %v2257_v44 = vmul.f32 1.442695, %v2149_v0  ;;  %v7656_v24 = vld [vmem:[#allocation114_spill] sm:$0xff]  ;;  %v2317_v55 = vmul.f32 %v6616_v48, %v2061_v38  ;;  %v4667_v58 = vld [vmem:[%s4801_s29 + $0x70] sm:$0xff] }
 0x3f0   : > { %v4486_v43 = vpop.eup %4485  ;;  %v3719_v54 = vsel %vm3655_vm0, %v3591_v10, 0.0  ;;  %v3464_v53 = vadd.f32 %v3349_v50, %v3208_v20  ;;  %4505 = vlog2.f32 %v3276_v42  ;;  %3083 = vst.msk [vmem:[#allocation3 + $0x90] sm:$0xff] %vm266_vm2, %v3019_v25  ;;  %v2938_v13 = vpop.xlane.xlu0 %2937  ;;  %v2146_v22 = vsub.f32 %v7656_v24, %v7655_v5  ;;  %v7657_v46 = vld [vmem:[#allocation119_spill] sm:$0xff]  ;;  %v2062_v39 = vld [vmem:[#allocation3 + $0xa8] sm:$0xff]  ;;  %v7659_v25 = vld [vmem:[#allocation120_spill] sm:$0xff] }
 0x3f1   : > { %v4488_v35 = vpop.eup %4487  ;;  %4507 = vpow2.f32 %v2243_v41  ;;  %v3793_v2 = vsel %vm266_vm2, %v3719_v54, 0.0  ;;  %v3033_v40 = vadd.f32 %v2938_v13, %v2329_v45  ;;  %v2912_v18 = vpop.xlane.xlu1 %2911  ;;  %vm3659_vm4 = vcmp.ge.s32.totalorder %v6714_v51, 0  ;;  %v7658_v41 = vld [vmem:[#allocation117_spill] sm:$0xff]  ;;  %v3210_v10 = vld [vmem:[#allocation2 + $0x70] sm:$0xff]  ;;  %v7660_v20 = vld [vmem:[#allocation118_spill] sm:$0xff] }
 0x3f2   : > { %v6703_v57 = vpop.eup %4489  ;;  %v3794_v29 = vadd.f32 %v3793_v2, %v3792_v63  ;;  %v3592_v7 = vsub.f32 %v3464_v53, %v3528_v17  ;;  %v3351_v1 = vmul.f32 0.6931472, %v4488_v35  ;;  %v3020_v6 = vadd.f32 %v2912_v18, %v2316_v19  ;;  %v2077_v13 = vld [vmem:[#allocation3 + $0x120] sm:$0xff]  ;;  %v2063_v19 = vld [vmem:[#allocation3 + $0xb0] sm:$0xff]  ;;  %v3211_v5 = vld [vmem:[#allocation2 + $0x78] sm:$0xff] }
 0x3f3   : > { %4509 = vpow2.f32 %v2253_v33  ;;  %v3277_v9 = vld [vmem:[#allocation3 + $0x88] sm:$0xff]  ;;  %3097 = vst.msk [vmem:[#allocation3 + $0x100] sm:$0xff] %vm266_vm2, %v3033_v40  ;;  %vm3658_vm5 = vcmp.ge.s32.totalorder %v4667_v58, 0  ;;  %v2151_v11 = vsub.f32 %v7658_v41, %v7657_v46  ;;  %v2251_v50 = vmul.f32 1.442695, %v2146_v22  ;;  %v6729_v17 = vld [vmem:[%s4801_s29 + $0x80] sm:$0xff] }
 0x3f4   : > { %v4492_v32 = vpop.eup %4491  ;;  %v3720_v4 = vsel %vm3656_vm1, %v3592_v7, 0.0  ;;  %v3465_v31 = vadd.f32 %v3351_v1, %v3209_v52  ;;  %4511 = vlog2.f32 %v3277_v9  ;;  %3084 = vst.msk [vmem:[#allocation3 + $0x98] sm:$0xff] %vm266_vm2, %v3020_v6  ;;  %v2148_v33 = vsub.f32 %v7660_v20, %v7659_v25  ;;  %v7662_v40 = vld [vmem:[#allocation121_spill] sm:$0xff]  ;;  %v2067_v1 = vld [vmem:[#allocation3 + $0xd0] sm:$0xff]  ;;  %v2064_v46 = vld [vmem:[#allocation3 + $0xb8] sm:$0xff] }
 0x3f5   : > { %v4494_v36 = vpop.eup %4493  ;;  %4513 = vpow2.f32 %v2247_v59  ;;  %v3795_v21 = vsel %vm266_vm2, %v3720_v4, 0.0  ;;  %v2914_v30 = vpop.xlane.xlu1 %2913  ;;  %v2331_v15 = vmul.f32 %v4486_v43, %v2075_v60  ;;  %v2318_v53 = vmul.f32 %v6641_v34, %v2062_v39  ;;  %v3530_v59 = vld [vmem:[#allocation4 + $0x70] sm:$0xff]  ;;  %v7664_v20 = vld [vmem:[#allocation125_spill] sm:$0xff]  ;;  %v7665_v51 = vld [vmem:[#allocation124_spill] sm:$0xff] }
 0x3f6   : > { %v6721_v26 = vpop.eup %4495  ;;  %v3796_v48 = vadd.f32 %v3795_v21, %v3794_v29  ;;  %v3593_v47 = vsub.f32 %v3465_v31, %v3529_v61  ;;  %v3353_v8 = vmul.f32 0.6931472, %v4494_v36  ;;  %v3021_v63 = vadd.f32 %v2914_v30, %v2317_v55  ;;  %v7661_v43 = vld [vmem:[#allocation123_spill] sm:$0xff]  ;;  %v6745_v21 = vld [vmem:[%s4801_s29 + $0x88] sm:$0xff] }
 0x3f7   : > { %4515 = vpow2.f32 %v2257_v44  ;;  %v3278_v23 = vld [vmem:[#allocation3 + $0x90] sm:$0xff]  ;;  %vm3660_vm6 = vcmp.ge.s32.totalorder %v6729_v17, 0  ;;  %v2261_v2 = vmul.f32 1.442695, %v2151_v11  ;;  %v2153_v18 = vsub.f32 %v7662_v40, %v7661_v43  ;;  %v7668_v17 = vld [vmem:[#allocation126_spill] sm:$0xff] }
 0x3f8   : > { %v4498_v0 = vpop.eup %4497  ;;  %v3721_v42 = vsel %vm3657_vm3, %v3593_v47, 0.0  ;;  %v3466_v45 = vadd.f32 %v3353_v8, %v3210_v10  ;;  %4517 = vlog2.f32 %v3278_v23  ;;  %3085 = vst.msk [vmem:[#allocation3 + $0xa0] sm:$0xff] %vm266_vm2, %v3021_v63  ;;  %v2942_v54 = vpop.xlane.xlu0 %2941  ;;  %v2255_v24 = vmul.f32 1.442695, %v2148_v33  ;;  %v2079_v61 = vld [vmem:[#allocation3 + $0x130] sm:$0xff] }
 0x3f9   : > { %v4500_v35 = vpop.eup %4499  ;;  %v3797_v38 = vsel %vm266_vm2, %v3721_v42, 0.0  ;;  %v3035_v29 = vadd.f32 %v2942_v54, %v2331_v15  ;;  %v2916_v7 = vpop.xlane.xlu1 %2915  ;;  %4519 = vpow2.f32 %v2251_v50  ;;  %v2333_v9 = vmul.f32 %v4492_v32, %v2077_v13  ;;  %v3531_v32 = vld [vmem:[#allocation4 + $0x78] sm:$0xff]  ;;  %v3212_v50 = vld [vmem:[#allocation2 + $0x80] sm:$0xff]  ;;  %v7663_v25 = vld [vmem:[#allocation127_spill] sm:$0xff] }
 0x3fa   : > { %v6735_v6 = vpop.eup %4501  ;;  %v3798_v34 = vadd.f32 %v3797_v38, %v3796_v48  ;;  %v3594_v37 = vsub.f32 %v3466_v45, %v3530_v59  ;;  %v3355_v52 = vmul.f32 0.6931472, %v4500_v35  ;;  %v3022_v44 = vadd.f32 %v2916_v7, %v2318_v53  ;;  %v2069_v48 = vld [vmem:[#allocation3 + $0xe0] sm:$0xff]  ;;  %v2066_v59 = vld [vmem:[#allocation3 + $0xc8] sm:$0xff]  ;;  %v6762_v40 = vld [vmem:[%s4801_s29 + $0x90] sm:$0xff] }
 0x3fb   : > { %v3279_v22 = vld [vmem:[#allocation3 + $0x98] sm:$0xff]  ;;  %3099 = vst.msk [vmem:[#allocation3 + $0x110] sm:$0xff] %vm266_vm2, %v3035_v29  ;;  %v2319_v4 = vmul.f32 %v6628_v16, %v2063_v19  ;;  %v6742_v41 = vmul.f32 %v6649_v28, %v2067_v1  ;;  %vm3661_vm7 = vcmp.ge.s32.totalorder %v6745_v21, 0  ;;  %v2265_v16 = vmul.f32 1.442695, %v2153_v18  ;;  %v3284_v13 = vld [vmem:[#allocation3 + $0xc0] sm:$0xff] }
 0x3fc   : > { %v4504_v31 = vpop.eup %4503  ;;  %v3722_v55 = vsel %vm3658_vm5, %v3594_v37, 0.0  ;;  %v3467_v60 = vadd.f32 %v3355_v52, %v3211_v5  ;;  %4521 = vlog2.f32 %v3279_v22  ;;  %3086 = vst.msk [vmem:[#allocation3 + $0xa8] sm:$0xff] %vm266_vm2, %v3022_v44  ;;  %v2946_v36 = vpop.xlane.xlu0 %2945  ;;  %v2155_v33 = vsub.f32 %v7664_v20, %v7663_v25  ;;  %v2081_v35 = vld [vmem:[#allocation3 + $0x140] sm:$0xff]  ;;  %v2071_v1 = vld [vmem:[#allocation3 + $0xf0] sm:$0xff]  ;;  %v3213_v5 = vld [vmem:[#allocation2 + $0x88] sm:$0xff] }
 0x3fd   : > { %v4506_v11 = vpop.eup %4505  ;;  %4523 = vpow2.f32 %v2261_v2  ;;  %v3799_v58 = vsel %vm266_vm2, %v3722_v55, 0.0  ;;  %v3037_v30 = vadd.f32 %v2946_v36, %v2333_v9  ;;  %v2918_v39 = vpop.xlane.xlu1 %2917  ;;  %v2335_v15 = vmul.f32 %v4498_v0, %v2079_v61  ;;  %v7666_v0 = vld [vmem:[#allocation122_spill] sm:$0xff]  ;;  %v3214_v20 = vld [vmem:[#allocation2 + $0x90] sm:$0xff] }
 0x3fe   : > { %v6749_v47 = vpop.eup %4507  ;;  %v3800_v8 = vadd.f32 %v3799_v58, %v3798_v34  ;;  %v3595_v63 = vsub.f32 %v3467_v60, %v3531_v32  ;;  %v3357_v10 = vmul.f32 0.6931472, %v4506_v11  ;;  %v3023_v28 = vadd.f32 %v2918_v39, %v2319_v4  ;;  %v2068_v11 = vld [vmem:[#allocation3 + $0xd8] sm:$0xff] }
 0x3ff   : > { %4525 = vpow2.f32 %v2255_v24  ;;  %v3280_v23 = vld [vmem:[#allocation3 + $0xa0] sm:$0xff]  ;;  %3101 = vst.msk [vmem:[#allocation3 + $0x120] sm:$0xff] %vm266_vm2, %v3037_v30  ;;  %v2320_v42 = vmul.f32 %v6661_v14, %v2064_v46  ;;  %v6759_v2 = vmul.f32 %v6663_v12, %v2069_v48  ;;  %vm3662_vm8 = vcmp.ge.s32.totalorder %v6762_v40, 0  ;;  %v2083_v46 = vld [vmem:[#allocation3 + $0x150] sm:$0xff]  ;;  %v6779_v58 = vld [vmem:[%s4801_s29 + $0x98] sm:$0xff] }
 0x400   : > { %v4510_v45 = vpop.eup %4509  ;;  %v3723_v54 = vsel %vm3659_vm4, %v3595_v63, 0.0  ;;  %v3468_v53 = vadd.f32 %v3357_v10, %v3212_v50  ;;  %4527 = vlog2.f32 %v3280_v23  ;;  %3087 = vst.msk [vmem:[#allocation3 + $0xb0] sm:$0xff] %vm266_vm2, %v3023_v28  ;;  %v2950_v19 = vpop.xlane.xlu0 %2949  ;;  %v3532_v14 = vld [vmem:[#allocation4 + $0x80] sm:$0xff]  ;;  %v2150_v18 = vsub.f32 %v7666_v0, %v7665_v51  ;;  %v7667_v30 = vld [vmem:[#allocation128_spill] sm:$0xff]  ;;  %v2070_v10 = vld [vmem:[#allocation3 + $0xe8] sm:$0xff] }
 0x401   : > { %v4512_v43 = vpop.eup %4511  ;;  %4529 = vpow2.f32 %v2265_v16  ;;  %v3801_v38 = vsel %vm266_vm2, %v3723_v54, 0.0  ;;  %v3039_v29 = vadd.f32 %v2950_v19, %v2335_v15  ;;  %v2920_v7 = vpop.xlane.xlu1 %2919  ;;  %v2269_v24 = vmul.f32 1.442695, %v2155_v33  ;;  %v7669_v33 = vld [vmem:[#allocation9_spill] sm:$0xff]  ;;  %v7670_v51 = vld [vmem:[#allocation7_spill] sm:$0xff] }
 0x402   : > { %v6768_v34 = vpop.eup %4513  ;;  %v3802_v37 = vadd.f32 %v3801_v38, %v3800_v8  ;;  %v3596_v12 = vsub.f32 %v3468_v53, %v3532_v14  ;;  %v3359_v52 = vmul.f32 0.6931472, %v4512_v43  ;;  %v3024_v44 = vadd.f32 %v2920_v7, %v2320_v42  ;;  %v6798_v14 = vld [vmem:[%s4801_s29 + $0xa0] sm:$0xff] }
 0x403   : > { %4531 = vlog2.f32 %v3284_v13  ;;  %v3281_v22 = vld [vmem:[#allocation3 + $0xa8] sm:$0xff]  ;;  %3103 = vst.msk [vmem:[#allocation3 + $0x130] sm:$0xff] %vm266_vm2, %v3039_v29  ;;  %v2337_v9 = vmul.f32 %v4504_v31, %v2081_v35  ;;  %v2322_v4 = vmul.f32 %v6668_v56, %v2066_v59  ;;  %v6776_v32 = vmul.f32 %v6680_v62, %v2071_v1  ;;  %v2085_v59 = vld [vmem:[#allocation3 + $0x160] sm:$0xff] }
 0x404   : > { %v4516_v55 = vpop.eup %4515  ;;  %v3724_v60 = vsel %vm3660_vm6, %v3596_v12, 0.0  ;;  %v3469_v36 = vadd.f32 %v3359_v52, %v3213_v5  ;;  %4533 = vlog2.f32 %v3281_v22  ;;  %3088 = vst.msk [vmem:[#allocation3 + $0xb8] sm:$0xff] %vm266_vm2, %v3024_v44  ;;  %v2954_v61 = vpop.xlane.xlu0 %2953  ;;  %vm3663_vm9 = vcmp.ge.s32.totalorder %v6779_v58, 0  ;;  %v3533_v56 = vld [vmem:[#allocation4 + $0x88] sm:$0xff]  ;;  %v7671_v0 = vld [vmem:[#allocation129_spill] sm:$0xff]  ;;  %v3215_v12 = vld [vmem:[#allocation2 + $0x98] sm:$0xff] }
 0x405   : > { %v4518_v16 = vpop.eup %4517  ;;  %v2259_v31 = vmul.f32 1.442695, %v2150_v18  ;;  %v2152_v39 = vsub.f32 %v7668_v17, %v7667_v30  ;;  %v3803_v48 = vsel %vm266_vm2, %v3724_v60, 0.0  ;;  %v3041_v8 = vadd.f32 %v2954_v61, %v2337_v9  ;;  %v2924_v63 = vpop.xlane.xlu1 %2923  ;;  %v7672_v52 = vld [vmem:[#allocation131_spill] sm:$0xff]  ;;  %v7673_v44 = vld [vmem:[#allocation130_spill] sm:$0xff]  ;;  %v7675_v61 = vld [vmem:[#allocation5_spill] sm:$0xff] }
 0x406   : > { %v3804_v28 = vadd.f32 %v3803_v48, %v3802_v37  ;;  %v3597_v50 = vsub.f32 %v3469_v36, %v3533_v56  ;;  %v3361_v25 = vmul.f32 0.6931472, %v4518_v16  ;;  %v3026_v62 = vadd.f32 %v2924_v63, %v2322_v4  ;;  %v6789_v53 = vpop.eup %4519  ;;  %v7674_v36 = vld [vmem:[#allocation10_spill] sm:$0xff] }
 0x407   : > { %4535 = vpow2.f32 %v2269_v24  ;;  %v2157_v23 = vsub.f32 %v7669_v33, %v6256_v49  ;;  %v3282_v15 = vld [vmem:[#allocation3 + $0xb0] sm:$0xff]  ;;  %3105 = vst.msk [vmem:[#allocation3 + $0x140] sm:$0xff] %vm266_vm2, %v3041_v8  ;;  %v2339_v42 = vmul.f32 %v4510_v45, %v2083_v46  ;;  %v2324_v54 = vmul.f32 %v6682_v27, %v2068_v11  ;;  %v6815_v17 = vld [vmem:[%s4801_s29 + $0xa8] sm:$0xff]  ;;  %v7677_v33 = vld [vmem:[#allocation136_spill] sm:$0xff] }
 0x408   : > { %v3725_v13 = vsel %vm3661_vm7, %v3597_v50, 0.0  ;;  %v3470_v19 = vadd.f32 %v3361_v25, %v3214_v20  ;;  %4537 = vlog2.f32 %v3282_v15  ;;  %3090 = vst.msk [vmem:[#allocation3 + $0xc8] sm:$0xff] %vm266_vm2, %v3026_v62  ;;  %v2958_v35 = vpop.xlane.xlu0 %2957  ;;  %v6795_v43 = vmul.f32 %v6694_v3, %v2070_v10  ;;  %v3534_v27 = vld [vmem:[#allocation4 + $0x90] sm:$0xff]  ;;  %v3216_v25 = vld [vmem:[#allocation2 + $0xa0] sm:$0xff] }
 0x409   : > { %v4522_v49 = vpop.eup %4521  ;;  %vm3664_vm10 = vcmp.ge.s32.totalorder %v6798_v14, 0  ;;  %v2263_v45 = vmul.f32 1.442695, %v2152_v39  ;;  %v2154_v21 = vsub.f32 %v7671_v0, %v7670_v51  ;;  %v3805_v18 = vsel %vm266_vm2, %v3725_v13, 0.0  ;;  %v2926_v29 = vpop.xlane.xlu1 %2925  ;;  %v3535_v39 = vld [vmem:[#allocation4 + $0x98] sm:$0xff]  ;;  %v7676_v20 = vld [vmem:[#allocation139_spill] sm:$0xff] }
 0x40a   : > { %v3043_v38 = vadd.f32 %v2958_v35, %v2339_v42  ;;  %v4524_v7 = vpop.eup %4523  ;;  %4539 = vpow2.f32 %v2259_v31  ;;  %v3806_v1 = vadd.f32 %v3805_v18, %v3804_v28  ;;  %v3598_v37 = vsub.f32 %v3470_v19, %v3534_v27  ;;  %v2087_v31 = vld [vmem:[#allocation3 + $0x170] sm:$0xff]  ;;  %v3536_v51 = vld [vmem:[#allocation4 + $0xa0] sm:$0xff] }
 0x40b   : > { %v3363_v3 = vmul.f32 0.6931472, %v4522_v49  ;;  %v2156_v5 = vsub.f32 %v7673_v44, %v7672_v52  ;;  %v2273_v24 = vmul.f32 1.442695, %v2157_v23  ;;  %v3283_v22 = vld [vmem:[#allocation3 + $0xb8] sm:$0xff]  ;;  %v3027_v9 = vadd.f32 %v2926_v29, %v6742_v41  ;;  %v2089_v49 = vld [vmem:[#allocation3 + $0x180] sm:$0xff] }
 0x40c   : > { %3107 = vst.msk [vmem:[#allocation3 + $0x150] sm:$0xff] %vm266_vm2, %v3043_v38  ;;  %v2341_v4 = vmul.f32 %v4516_v55, %v2085_v59  ;;  %v6808_v60 = vpop.eup %4525  ;;  %v2160_v46 = vsub.f32 %v7675_v61, %v7674_v36  ;;  %v3726_v11 = vsel %vm3662_vm8, %v3598_v37, 0.0  ;;  %4541 = vlog2.f32 %v3283_v22  ;;  %v2962_v56 = vpop.xlane.xlu0 %2961  ;;  %v7678_v0 = vld [vmem:[#allocation133_spill] sm:$0xff]  ;;  %v7680_v52 = vld [vmem:[#allocation135_spill] sm:$0xff]  ;;  %v7681_v44 = vld [vmem:[#allocation132_spill] sm:$0xff] }
 0x40d   : > { %v3471_v16 = vadd.f32 %v3363_v3, %v3215_v12  ;;  %v4528_v30 = vpop.eup %4527  ;;  %vm3665_vm11 = vcmp.ge.s32.totalorder %v6815_v17, 0  ;;  %4543 = vpow2.f32 %v2263_v45  ;;  %v2267_v41 = vmul.f32 1.442695, %v2154_v21  ;;  %3091 = vst.msk [vmem:[#allocation3 + $0xd0] sm:$0xff] %vm266_vm2, %v3027_v9  ;;  %v2928_v8 = vpop.xlane.xlu1 %2927  ;;  %v6827_v45 = vld [vmem:[%s4801_s29 + $0xb0] sm:$0xff]  ;;  %v7679_v21 = vld [vmem:[#allocation12_spill] sm:$0xff] }
 0x40e   : > { %v3807_v55 = vsel %vm266_vm2, %v3726_v11, 0.0  ;;  %v3045_v48 = vadd.f32 %v2962_v56, %v2341_v4  ;;  %v4530_v40 = vpop.eup %4529  ;;  %v3365_v28 = vmul.f32 0.6931472, %v4528_v30  ;;  %v3028_v50 = vadd.f32 %v2928_v8, %v2324_v54  ;;  %v3217_v12 = vld [vmem:[#allocation2 + $0xa8] sm:$0xff]  ;;  %v2091_v11 = vld [vmem:[#allocation3 + $0x190] sm:$0xff] }
 0x40f   : > { %v3808_v63 = vadd.f32 %v3807_v55, %v3806_v1  ;;  %v3599_v10 = vsub.f32 %v3471_v16, %v3535_v39  ;;  %v2271_v62 = vmul.f32 1.442695, %v2156_v5  ;;  %4545 = vpow2.f32 %v2273_v24  ;;  %v3285_v15 = vld [vmem:[#allocation3 + $0xc8] sm:$0xff]  ;;  %v7683_v39 = vld [vmem:[#allocation140_spill] sm:$0xff] }
 0x410   : > { %v2159_v23 = vsub.f32 %v7677_v33, %v7676_v20  ;;  %3109 = vst.msk [vmem:[#allocation3 + $0x160] sm:$0xff] %vm266_vm2, %v3045_v48  ;;  %v2343_v42 = vmul.f32 %v4524_v7, %v2087_v31  ;;  %v4532_v13 = vpop.eup %4531  ;;  %v2279_v19 = vmul.f32 1.442695, %v2160_v46  ;;  %v3472_v59 = vadd.f32 %v3365_v28, %v3216_v25  ;;  %3092 = vst.msk [vmem:[#allocation3 + $0xd8] sm:$0xff] %vm266_vm2, %v3028_v50  ;;  %v2966_v54 = vpop.xlane.xlu0 %2965  ;;  %v3537_v56 = vld [vmem:[#allocation4 + $0xa8] sm:$0xff]  ;;  %v3218_v28 = vld [vmem:[#allocation2 + $0xb0] sm:$0xff] }
 0x411   : > { %v3727_v35 = vsel %vm3663_vm9, %v3599_v10, 0.0  ;;  %4547 = vlog2.f32 %v3285_v15  ;;  %v4534_v27 = vpop.eup %4533  ;;  %vm3666_vm12 = vcmp.ge.s32.totalorder %v6827_v45, 0  ;;  %v2163_v18 = vsub.f32 %v7679_v21, %v7678_v0  ;;  %v2930_v29 = vpop.xlane.xlu1 %2929  ;;  %v7682_v30 = vld [vmem:[#allocation142_spill] sm:$0xff]  ;;  %v3220_v50 = vld [vmem:[#allocation2 + $0xc0] sm:$0xff] }
 0x412   : > { %4549 = vpow2.f32 %v2267_v41  ;;  %v3809_v38 = vsel %vm266_vm2, %v3727_v35, 0.0  ;;  %v3047_v58 = vadd.f32 %v2966_v54, %v2343_v42  ;;  %v3600_v1 = vsub.f32 %v3472_v59, %v3536_v51  ;;  %v3538_v59 = vld [vmem:[#allocation4 + $0xb0] sm:$0xff] }
 0x413   : > { %v3810_v7 = vadd.f32 %v3809_v38, %v3808_v63  ;;  %v3367_v37 = vmul.f32 0.6931472, %v4534_v27  ;;  %v3029_v3 = vadd.f32 %v2930_v29, %v6759_v2  ;;  %4551 = vpow2.f32 %v2271_v62  ;;  %v3540_v38 = vld [vmem:[#allocation4 + $0xc0] sm:$0xff] }
 0x414   : > { %v2158_v5 = vsub.f32 %v7681_v44, %v7680_v52  ;;  %v2277_v24 = vmul.f32 1.442695, %v2159_v23  ;;  %3111 = vst.msk [vmem:[#allocation3 + $0x170] sm:$0xff] %vm266_vm2, %v3047_v58  ;;  %v2345_v22 = vmul.f32 %v4530_v40, %v2089_v49  ;;  %v4536_v9 = vpop.eup %4535  ;;  %4553 = vpow2.f32 %v2279_v19  ;;  %v3286_v46 = vld [vmem:[#allocation3 + $0xd0] sm:$0xff]  ;;  %v2970_v2 = vpop.xlane.xlu0 %2969  ;;  %v2072_v19 = vld [vmem:[#allocation3 + $0xf8] sm:$0xff]  ;;  %v2074_v44 = vld [vmem:[#allocation3 + $0x108] sm:$0xff] }
 0x415   : > { %v3373_v4 = vmul.f32 0.6931472, %v4532_v13  ;;  %v3728_v36 = vsel %vm3664_vm10, %v3600_v1, 0.0  ;;  %v3473_v61 = vadd.f32 %v3367_v37, %v3217_v12  ;;  %3093 = vst.msk [vmem:[#allocation3 + $0xe0] sm:$0xff] %vm266_vm2, %v3029_v3  ;;  %v4538_v16 = vpop.eup %4537  ;;  %v2285_v31 = vmul.f32 1.442695, %v2163_v18  ;;  %v2932_v48 = vpop.xlane.xlu1 %2931 }
 0x416   : > { %v2161_v41 = vsub.f32 %v7683_v39, %v7682_v30  ;;  %v3811_v55 = vsel %vm266_vm2, %v3728_v36, 0.0  ;;  %4555 = vlog2.f32 %v3286_v46  ;;  %v3369_v14 = vmul.f32 0.6931472, %v4538_v16  ;;  %v3219_v58 = vld [vmem:[#allocation2 + $0xb8] sm:$0xff]  ;;  %v3292_v3 = vld [vmem:[#allocation3 + $0x100] sm:$0xff] }
 0x417   : > { %v3812_v8 = vadd.f32 %v3811_v55, %v3810_v7  ;;  %v3601_v40 = vsub.f32 %v3473_v61, %v3537_v56  ;;  %v3049_v63 = vadd.f32 %v2970_v2, %v2345_v22  ;;  %v6843_v10 = vpop.eup %4539  ;;  %v2275_v25 = vmul.f32 1.442695, %v2158_v5  ;;  %v3287_v62 = vld [vmem:[#allocation3 + $0xd8] sm:$0xff]  ;;  %v4676_v22 = vld [vmem:[%s4801_s29 + $0xc0] sm:$0xff]  ;;  %v4677_v56 = vld [vmem:[%s4801_s29 + $0xc8] sm:$0xff] }
 0x418   : > { %4557 = vpow2.f32 %v2277_v24  ;;  %v3030_v20 = vadd.f32 %v2932_v48, %v6795_v43  ;;  %v2347_v33 = vmul.f32 %v4536_v9, %v2091_v11  ;;  %v3476_v23 = vadd.f32 %v3373_v4, %v3220_v50  ;;  %v2974_v13 = vpop.xlane.xlu0 %2973  ;;  %v4675_v24 = vld [vmem:[%s4801_s29 + $0xb8] sm:$0xff]  ;;  %v3296_v48 = vld [vmem:[#allocation3 + $0x120] sm:$0xff] }
 0x419   : > { %v3729_v15 = vsel %vm3665_vm11, %v3601_v40, 0.0  ;;  %v3474_v42 = vadd.f32 %v3369_v14, %v3218_v28  ;;  %4559 = vlog2.f32 %v3287_v62  ;;  %3113 = vst.msk [vmem:[#allocation3 + $0x180] sm:$0xff] %vm266_vm2, %v3049_v63  ;;  %v4542_v35 = vpop.eup %4541  ;;  %v2281_v54 = vmul.f32 1.442695, %v2161_v41  ;;  %v2934_v27 = vpop.xlane.xlu1 %2933  ;;  %v3539_v9 = vld [vmem:[#allocation4 + $0xb8] sm:$0xff] }
 0x41a   : > { %4561 = vpow2.f32 %v2285_v31  ;;  %v3813_v49 = vsel %vm266_vm2, %v3729_v15, 0.0  ;;  %3094 = vst.msk [vmem:[#allocation3 + $0xe8] sm:$0xff] %vm266_vm2, %v3030_v20  ;;  %v3051_v43 = vadd.f32 %v2974_v13, %v2347_v33  ;;  %v6851_v51 = vpop.eup %4543  ;;  %v3371_v21 = vmul.f32 0.6931472, %v4542_v35  ;;  %v2076_v16 = vld [vmem:[#allocation3 + $0x118] sm:$0xff]  ;;  %v3221_v31 = vld [vmem:[#allocation2 + $0xc8] sm:$0xff] }
 0x41b   : > { %v3814_v17 = vadd.f32 %v3813_v49, %v3812_v8  ;;  %v3602_v0 = vsub.f32 %v3474_v42, %v3538_v59  ;;  %v3031_v18 = vadd.f32 %v2934_v27, %v6776_v32  ;;  %4563 = vpow2.f32 %v2275_v25  ;;  %v2093_v32 = vld [vmem:[#allocation3 + $0x1a0] sm:$0xff]  ;;  %v6874_v50 = vld [vmem:[%s4801_s29 + $0xd8] sm:$0xff]  ;;  %v3541_v25 = vld [vmem:[#allocation4 + $0xc8] sm:$0xff] }
 0x41c   : > { %v3288_v29 = vld [vmem:[#allocation3 + $0xe0] sm:$0xff]  ;;  %3115 = vst.msk [vmem:[#allocation3 + $0x190] sm:$0xff] %vm266_vm2, %v3051_v43  ;;  %v2328_v7 = vmul.f32 %v6703_v57, %v2072_v19  ;;  %v4546_v1 = vpop.eup %4545  ;;  %v3604_v37 = vsub.f32 %v3476_v23, %v3540_v38  ;;  %v3475_v52 = vadd.f32 %v3371_v21, %v3219_v58  ;;  %vm3667_vm13 = vcmp.ge.s32.totalorder %v4675_v24, 0  ;;  %v3294_v57 = vld [vmem:[#allocation3 + $0x110] sm:$0xff]  ;;  %v2078_v35 = vld [vmem:[#allocation3 + $0x128] sm:$0xff] }
 0x41d   : > { %v3730_v12 = vsel %vm3666_vm12, %v3602_v0, 0.0  ;;  %4565 = vlog2.f32 %v3288_v29  ;;  %3095 = vst.msk [vmem:[#allocation3 + $0xf0] sm:$0xff] %vm266_vm2, %v3031_v18  ;;  %vm3668_vm14 = vcmp.ge.s32.totalorder %v4676_v22, 0  ;;  %v2936_v36 = vpop.xlane.xlu1 %2935  ;;  %vm3669_vm15 = vcmp.ge.s32.totalorder %v4677_v56, 0  ;;  %v7684_v59 = vld [vmem:[#allocation137_spill] sm:$0xff]  ;;  %v2080_v0 = vld [vmem:[#allocation3 + $0x138] sm:$0xff] }
 0x41e   : > { %v4548_v5 = vpop.eup %4547  ;;  %4567 = vpow2.f32 %v2281_v54  ;;  %v3815_v4 = vsel %vm266_vm2, %v3730_v12, 0.0  ;;  %v3603_v46 = vsub.f32 %v3475_v52, %v3539_v9  ;;  %v3032_v11 = vadd.f32 %v2936_v36, %v2328_v7  ;;  %v7685_v54 = vld [vmem:[#allocation134_spill] sm:$0xff]  ;;  %v3222_v18 = vld [vmem:[#allocation2 + $0xd0] sm:$0xff]  ;;  %v7686_v38 = vld [vmem:[#allocation141_spill] sm:$0xff] }
 0x41f   : > { %v6862_v45 = vpop.eup %4549  ;;  %v3816_v61 = vadd.f32 %v3815_v4, %v3814_v17  ;;  %v3375_v2 = vmul.f32 0.6931472, %v4548_v5  ;;  %4569 = vlog2.f32 %v3292_v3  ;;  %v2349_v30 = vmul.f32 %v4546_v1, %v2093_v32  ;;  %v2095_v1 = vld [vmem:[#allocation3 + $0x1b0] sm:$0xff]  ;;  %v6892_v12 = vld [vmem:[%s4801_s29 + $0xe0] sm:$0xff]  ;;  %v7688_v52 = vld [vmem:[#allocation144_spill] sm:$0xff] }
 0x420   : > { %v2330_v39 = vmul.f32 %v6721_v26, %v2074_v44  ;;  %v6866_v41 = vpop.eup %4551  ;;  %v3732_v55 = vsel %vm3668_vm14, %v3604_v37, 0.0  ;;  %4571 = vlog2.f32 %v3294_v57  ;;  %v3731_v8 = vsel %vm3667_vm13, %v3603_v46, 0.0  ;;  %3096 = vst.msk [vmem:[#allocation3 + $0xf8] sm:$0xff] %vm266_vm2, %v3032_v11  ;;  %v2978_v63 = vpop.xlane.xlu0 %2977  ;;  %v6878_v26 = vld [vmem:[%s4801_s29 + $0xd0] sm:$0xff]  ;;  %v2082_v37 = vld [vmem:[#allocation3 + $0x148] sm:$0xff]  ;;  %v2084_v57 = vld [vmem:[#allocation3 + $0x158] sm:$0xff] }
 0x421   : > { %v3477_v40 = vadd.f32 %v3375_v2, %v3221_v31  ;;  %v3289_v14 = vld [vmem:[#allocation3 + $0xe8] sm:$0xff]  ;;  %v6871_v28 = vpop.eup %4553  ;;  %vm3671_vm0 = vcmp.ge.s32.totalorder %v6874_v50, 0  ;;  %vm3670_vm1 = vcmp.ge.s32.totalorder %v6878_v26, 0  ;;  %v3817_v62 = vsel %vm266_vm2, %v3731_v8, 0.0  ;;  %v2940_v20 = vpop.xlane.xlu1 %2939  ;;  %v7689_v32 = vld [vmem:[#allocation143_spill] sm:$0xff]  ;;  %v3223_v56 = vld [vmem:[#allocation2 + $0xd8] sm:$0xff] }
 0x422   : > { %4573 = vlog2.f32 %v3289_v14  ;;  %v2332_v33 = vmul.f32 %v6735_v6, %v2076_v16  ;;  %v3818_v15 = vadd.f32 %v3817_v62, %v3816_v61  ;;  %v3053_v13 = vadd.f32 %v2978_v63, %v2349_v30  ;;  %v7687_v6 = vld [vmem:[#allocation138_spill] sm:$0xff]  ;;  %v3542_v36 = vld [vmem:[#allocation4 + $0xd0] sm:$0xff] }
 0x423   : > { %v4556_v23 = vpop.eup %4555  ;;  %v3605_v42 = vsub.f32 %v3477_v40, %v3541_v25  ;;  %v3034_v19 = vadd.f32 %v2940_v20, %v2330_v39  ;;  %v2165_v49 = vsub.f32 %v7685_v54, %v7684_v59  ;;  %v3819_v43 = vsel %vm266_vm2, %v3732_v55, 0.0  ;;  %v3298_v61 = vld [vmem:[#allocation3 + $0x130] sm:$0xff]  ;;  %v2088_v25 = vld [vmem:[#allocation3 + $0x178] sm:$0xff]  ;;  %v2090_v54 = vld [vmem:[#allocation3 + $0x188] sm:$0xff] }
 0x424   : > { %4575 = vlog2.f32 %v3296_v48  ;;  %v3377_v27 = vmul.f32 0.6931472, %v4556_v23  ;;  %v3290_v17 = vld [vmem:[#allocation3 + $0xf0] sm:$0xff]  ;;  %v2167_v58 = vsub.f32 %v7687_v6, %v7686_v38  ;;  %v3820_v7 = vadd.f32 %v3819_v43, %v3818_v15  ;;  %3117 = vst.msk [vmem:[#allocation3 + $0x1a0] sm:$0xff] %vm266_vm2, %v3053_v13  ;;  %v3543_v20 = vld [vmem:[#allocation4 + $0xd8] sm:$0xff]  ;;  %v6914_v13 = vld [vmem:[%s4801_s29 + $0xe8] sm:$0xff] }
 0x425   : > { %v4558_v21 = vpop.eup %4557  ;;  %v3733_v29 = vsel %vm3669_vm15, %v3605_v42, 0.0  ;;  %4577 = vlog2.f32 %v3290_v17  ;;  %3098 = vst.msk [vmem:[#allocation3 + $0x108] sm:$0xff] %vm266_vm2, %v3034_v19  ;;  %vm3672_vm3 = vcmp.ge.s32.totalorder %v6892_v12, 0  ;;  %v2162_v44 = vsub.f32 %v7689_v32, %v7688_v52  ;;  %v2944_v22 = vpop.xlane.xlu1 %2943  ;;  %v3224_v43 = vld [vmem:[#allocation2 + $0xe0] sm:$0xff] }
 0x426   : > { %v4560_v3 = vpop.eup %4559  ;;  %v3821_v5 = vsel %vm266_vm2, %v3733_v29, 0.0  ;;  %v3478_v24 = vadd.f32 %v3377_v27, %v3222_v18  ;;  %v2334_v9 = vmul.f32 %v6749_v47, %v2078_v35  ;;  %v3036_v11 = vadd.f32 %v2944_v22, %v2332_v33  ;;  %v7690_v18 = vld [vmem:[#allocation146_spill] sm:$0xff]  ;;  %v7691_v38 = vld [vmem:[#allocation145_spill] sm:$0xff] }
 0x427   : > { %v6899_v4 = vpop.eup %4561  ;;  %v3822_v46 = vadd.f32 %v3821_v5, %v3820_v7  ;;  %v3379_v2 = vmul.f32 0.6931472, %v4560_v3  ;;  %v2336_v16 = vmul.f32 %v6768_v34, %v2080_v0  ;;  %v2289_v31 = vmul.f32 1.442695, %v2165_v49  ;;  %v3291_v39 = vld [vmem:[#allocation3 + $0xf8] sm:$0xff]  ;;  %v2086_v34 = vld [vmem:[#allocation3 + $0x168] sm:$0xff] }
 0x428   : > { %v3606_v30 = vsub.f32 %v3478_v24, %v3542_v36  ;;  %v2351_v55 = vmul.f32 %v4558_v21, %v2095_v1  ;;  %v6903_v48 = vmul.f32 %v6789_v53, %v2082_v37  ;;  %v6905_v8 = vpop.eup %4563  ;;  %v2293_v47 = vmul.f32 1.442695, %v2167_v58  ;;  %3100 = vst.msk [vmem:[#allocation3 + $0x118] sm:$0xff] %vm266_vm2, %v3036_v11  ;;  %v2982_v14 = vpop.xlane.xlu0 %2981  ;;  %v2092_v49 = vld [vmem:[#allocation3 + $0x198] sm:$0xff]  ;;  %v3300_v58 = vld [vmem:[#allocation3 + $0x140] sm:$0xff]  ;;  %v6931_v3 = vld [vmem:[%s4801_s29 + $0xf0] sm:$0xff] }
 0x429   : > { %v3479_v40 = vadd.f32 %v3379_v2, %v3223_v56  ;;  %4579 = vlog2.f32 %v3291_v39  ;;  %v6909_v63 = vmul.f32 %v6808_v60, %v2084_v57  ;;  %v2283_v33 = vmul.f32 1.442695, %v2162_v44  ;;  %v2948_v15 = vpop.xlane.xlu1 %2947  ;;  %v2097_v1 = vld [vmem:[#allocation3 + $0x1c0] sm:$0xff]  ;;  %v2096_v44 = vld [vmem:[#allocation3 + $0x1b8] sm:$0xff]  ;;  %v2099_v2 = vld [vmem:[#allocation3 + $0x1d0] sm:$0xff] }
 0x42a   : > { %v4566_v62 = vpop.eup %4565  ;;  %4581 = vlog2.f32 %v3298_v61  ;;  %v3734_v53 = vsel %vm3670_vm1, %v3606_v30, 0.0  ;;  %v3055_v23 = vadd.f32 %v2982_v14, %v2351_v55  ;;  %vm3673_vm4 = vcmp.ge.s32.totalorder %v6914_v13, 0  ;;  %v6948_v55 = vld [vmem:[%s4801_s29 + $0xf8] sm:$0xff]  ;;  %v7693_v14 = vld [vmem:[#allocation147_spill] sm:$0xff] }
 0x42b   : > { %v4568_v42 = vpop.eup %4567  ;;  %v3823_v19 = vsel %vm266_vm2, %v3734_v53, 0.0  ;;  %v3607_v60 = vsub.f32 %v3479_v40, %v3543_v20  ;;  %v3381_v35 = vmul.f32 0.6931472, %v4566_v62  ;;  %v3038_v59 = vadd.f32 %v2948_v15, %v2334_v9  ;;  %v7692_v40 = vld [vmem:[#allocation148_spill] sm:$0xff]  ;;  %v3228_v53 = vld [vmem:[#allocation2 + $0x100] sm:$0xff] }
 0x42c   : > { %4583 = vpow2.f32 %v2289_v31  ;;  %v3824_v27 = vadd.f32 %v3823_v19, %v3822_v46  ;;  %v3293_v26 = vld [vmem:[#allocation3 + $0x108] sm:$0xff]  ;;  %3119 = vst.msk [vmem:[#allocation3 + $0x1b0] sm:$0xff] %vm266_vm2, %v3055_v23  ;;  %v6920_v17 = vmul.f32 %v6843_v10, %v2086_v34  ;;  %v6923_v0 = vmul.f32 %v6851_v51, %v2088_v25  ;;  %v4570_v21 = vpop.eup %4569  ;;  %v3544_v10 = vld [vmem:[#allocation4 + $0xe0] sm:$0xff]  ;;  %v3302_v31 = vld [vmem:[#allocation3 + $0x150] sm:$0xff] }
 0x42d   : > { %v2164_v6 = vsub.f32 %v7691_v38, %v7690_v18  ;;  %v3735_v29 = vsel %vm3671_vm0, %v3607_v60, 0.0  ;;  %v3480_v7 = vadd.f32 %v3381_v35, %v3224_v43  ;;  %4585 = vlog2.f32 %v3293_v26  ;;  %3102 = vst.msk [vmem:[#allocation3 + $0x128] sm:$0xff] %vm266_vm2, %v3038_v59  ;;  %v4572_v37 = vpop.eup %4571  ;;  %v2952_v52 = vpop.xlane.xlu1 %2951  ;;  %v3226_v60 = vld [vmem:[#allocation2 + $0xf0] sm:$0xff]  ;;  %v3304_v26 = vld [vmem:[#allocation3 + $0x160] sm:$0xff]  ;;  %v6972_v18 = vld [vmem:[%s4801_s29 + $0x108] sm:$0xff] }
 0x42e   : > { %vm3674_vm5 = vcmp.ge.s32.totalorder %v6931_v3, 0  ;;  %4587 = vpow2.f32 %v2293_v47  ;;  %v3825_v51 = vsel %vm266_vm2, %v3735_v29, 0.0  ;;  %v6936_v32 = vmul.f32 %v6862_v45, %v2090_v54  ;;  %v3225_v45 = vld [vmem:[#allocation2 + $0xe8] sm:$0xff]  ;;  %v6952_v47 = vld [vmem:[%s4801_s29 + $0x100] sm:$0xff]  ;;  %v6964_v43 = vld [vmem:[%s4801_s29 + $0x110] sm:$0xff] }
 0x42f   : > { %v6939_v50 = vmul.f32 %v6866_v41, %v2092_v49  ;;  %v4574_v5 = vpop.eup %4573  ;;  %4589 = vpow2.f32 %v2283_v33  ;;  %v3826_v24 = vadd.f32 %v3825_v51, %v3824_v27  ;;  %v3608_v22 = vsub.f32 %v3480_v7, %v3544_v10  ;;  %v3295_v61 = vld [vmem:[#allocation3 + $0x118] sm:$0xff]  ;;  %v3545_v33 = vld [vmem:[#allocation4 + $0xe8] sm:$0xff]  ;;  %v3546_v38 = vld [vmem:[#allocation4 + $0xf0] sm:$0xff] }
 0x430   : > { %v3040_v9 = vadd.f32 %v2952_v52, %v2336_v16  ;;  %v3389_v57 = vmul.f32 0.6931472, %v4570_v21  ;;  %4591 = vlog2.f32 %v3300_v58  ;;  %v3383_v36 = vmul.f32 0.6931472, %v4574_v5  ;;  %v2986_v30 = vpop.xlane.xlu0 %2985  ;;  %v7694_v58 = vld [vmem:[#allocation150_spill] sm:$0xff]  ;;  %v7695_v29 = vld [vmem:[#allocation149_spill] sm:$0xff] }
 0x431   : > { %v2353_v46 = vmul.f32 %v4568_v42, %v2097_v1  ;;  %v4576_v11 = vpop.eup %4575  ;;  %v2287_v56 = vmul.f32 1.442695, %v2164_v6  ;;  %v3736_v41 = vsel %vm3672_vm3, %v3608_v22, 0.0  ;;  %4593 = vlog2.f32 %v3295_v61  ;;  %v2956_v20 = vpop.xlane.xlu1 %2955  ;;  %v6980_v51 = vld [vmem:[%s4801_s29 + $0x120] sm:$0xff]  ;;  %v3230_v52 = vld [vmem:[#allocation2 + $0x110] sm:$0xff] }
 0x432   : > { %3104 = vst.msk [vmem:[#allocation3 + $0x138] sm:$0xff] %vm266_vm2, %v3040_v9  ;;  %v6945_v16 = vmul.f32 %v6871_v28, %v2096_v44  ;;  %v4578_v39 = vpop.eup %4577  ;;  %vm3675_vm6 = vcmp.ge.s32.totalorder %v6948_v55, 0  ;;  %vm3676_vm7 = vcmp.ge.s32.totalorder %v6952_v47, 0  ;;  %v2166_v12 = vsub.f32 %v7693_v14, %v7692_v40  ;;  %v2094_v28 = vld [vmem:[#allocation3 + $0x1a8] sm:$0xff]  ;;  %v3306_v44 = vld [vmem:[#allocation3 + $0x170] sm:$0xff]  ;;  %v3547_v40 = vld [vmem:[#allocation4 + $0xf8] sm:$0xff] }
 0x433   : > { %v3827_v34 = vsel %vm266_vm2, %v3736_v41, 0.0  ;;  %v3481_v25 = vadd.f32 %v3383_v36, %v3225_v45  ;;  %v3057_v62 = vadd.f32 %v2986_v30, %v2353_v46  ;;  %v3385_v15 = vmul.f32 0.6931472, %v4578_v39  ;;  %v3232_v36 = vld [vmem:[#allocation2 + $0x120] sm:$0xff]  ;;  %v6994_v39 = vld [vmem:[%s4801_s29 + $0x118] sm:$0xff] }
 0x434   : > { %v3828_v23 = vadd.f32 %v3827_v34, %v3826_v24  ;;  %v3042_v42 = vadd.f32 %v2956_v20, %v6903_v48  ;;  %v2355_v19 = vmul.f32 %v6899_v4, %v2099_v2  ;;  %v6960_v35 = vadd.f32 %v3389_v57, %v3228_v53  ;;  %v3297_v49 = vld [vmem:[#allocation3 + $0x128] sm:$0xff]  ;;  %v3227_v57 = vld [vmem:[#allocation2 + $0xf8] sm:$0xff]  ;;  %v2101_v41 = vld [vmem:[#allocation3 + $0x1e0] sm:$0xff] }
 0x435   : > { %v3393_v59 = vmul.f32 0.6931472, %v4572_v37  ;;  %4595 = vlog2.f32 %v3302_v31  ;;  %v3609_v54 = vsub.f32 %v3481_v25, %v3545_v33  ;;  %3121 = vst.msk [vmem:[#allocation3 + $0x1c0] sm:$0xff] %vm266_vm2, %v3057_v62  ;;  %vm3678_vm8 = vcmp.ge.s32.totalorder %v6964_v43, 0  ;;  %v2960_v37 = vpop.xlane.xlu1 %2959  ;;  %v6999_v62 = vld [vmem:[%s4801_s29 + $0x130] sm:$0xff] }
 0x436   : > { %v3397_v27 = vmul.f32 0.6931472, %v4576_v11  ;;  %v3482_v48 = vadd.f32 %v3385_v15, %v3226_v60  ;;  %4597 = vlog2.f32 %v3297_v49  ;;  %3106 = vst.msk [vmem:[#allocation3 + $0x148] sm:$0xff] %vm266_vm2, %v3042_v42  ;;  %v6969_v4 = vmul.f32 %v6905_v8, %v2094_v28  ;;  %v4580_v21 = vpop.eup %4579  ;;  %v3548_v8 = vld [vmem:[#allocation4 + $0x100] sm:$0xff]  ;;  %v3550_v20 = vld [vmem:[#allocation4 + $0x110] sm:$0xff]  ;;  %v3229_v60 = vld [vmem:[#allocation2 + $0x108] sm:$0xff] }
 0x437   : > { %vm3677_vm9 = vcmp.ge.s32.totalorder %v6972_v18, 0  ;;  %4599 = vpow2.f32 %v2287_v56  ;;  %v2291_v6 = vmul.f32 1.442695, %v2166_v12  ;;  %v2168_v7 = vsub.f32 %v7695_v29, %v7694_v58  ;;  %v4582_v10 = vpop.eup %4581  ;;  %v3308_v28 = vld [vmem:[#allocation3 + $0x180] sm:$0xff]  ;;  %v7015_v58 = vld [vmem:[%s4801_s29 + $0x128] sm:$0xff] }
 0x438   : > { %v3737_v1 = vsel %vm3673_vm4, %v3609_v54, 0.0  ;;  %vm3680_vm10 = vcmp.ge.s32.totalorder %v6980_v51, 0  ;;  %v3610_v24 = vsub.f32 %v3482_v48, %v3546_v38  ;;  %v3387_v22 = vmul.f32 0.6931472, %v4580_v21  ;;  %v2103_v38 = vld [vmem:[#allocation3 + $0x1f0] sm:$0xff]  ;;  %v3549_v29 = vld [vmem:[#allocation4 + $0x108] sm:$0xff] }
 0x439   : > { %v3829_v5 = vsel %vm266_vm2, %v3737_v1, 0.0  ;;  %v3044_v9 = vadd.f32 %v2960_v37, %v6909_v63  ;;  %v3612_v13 = vsub.f32 %v6960_v35, %v3548_v8  ;;  %v6986_v61 = vadd.f32 %v3393_v59, %v3230_v52  ;;  %v3299_v2 = vld [vmem:[#allocation3 + $0x138] sm:$0xff]  ;;  %v4584_v11 = vpop.eup %4583  ;;  %v2990_v63 = vpop.xlane.xlu0 %2989 }
 0x43a   : > { %4601 = vlog2.f32 %v3304_v26  ;;  %v3830_v46 = vadd.f32 %v3829_v5, %v3828_v23  ;;  %v6988_v45 = vadd.f32 %v3397_v27, %v3232_v36  ;;  %v3738_v56 = vsel %vm3674_vm5, %v3610_v24, 0.0  ;;  %v4586_v30 = vpop.eup %4585  ;;  %v2964_v3 = vpop.xlane.xlu1 %2963  ;;  %v3552_v27 = vld [vmem:[#allocation4 + $0x120] sm:$0xff]  ;;  %v3234_v26 = vld [vmem:[#allocation2 + $0x130] sm:$0xff] }
 0x43b   : > { %v3483_v31 = vadd.f32 %v3387_v22, %v3227_v57  ;;  %4603 = vlog2.f32 %v3299_v2  ;;  %3108 = vst.msk [vmem:[#allocation3 + $0x158] sm:$0xff] %vm266_vm2, %v3044_v9  ;;  %vm3679_vm11 = vcmp.ge.s32.totalorder %v6994_v39, 0  ;;  %v3401_v14 = vmul.f32 0.6931472, %v4582_v10  ;;  %v4588_v25 = vpop.eup %4587 }
 0x43c   : > { %4605 = vlog2.f32 %v3306_v44  ;;  %v3831_v12 = vsel %vm266_vm2, %v3738_v56, 0.0  ;;  %v3059_v34 = vadd.f32 %v2990_v63, %v2355_v19  ;;  %vm3682_vm12 = vcmp.ge.s32.totalorder %v6999_v62, 0  ;;  %v7003_v42 = vpop.eup %4589  ;;  %v3231_v44 = vld [vmem:[#allocation2 + $0x118] sm:$0xff] }
 0x43d   : > { %v3832_v33 = vadd.f32 %v3831_v12, %v3830_v46  ;;  %v3611_v53 = vsub.f32 %v3483_v31, %v3547_v40  ;;  %v3391_v23 = vmul.f32 0.6931472, %v4586_v30  ;;  %v3046_v15 = vadd.f32 %v2964_v3, %v6920_v17  ;;  %v3301_v59 = vld [vmem:[#allocation3 + $0x148] sm:$0xff]  ;;  %v4592_v49 = vpop.eup %4591  ;;  %v3310_v46 = vld [vmem:[#allocation3 + $0x190] sm:$0xff]  ;;  %v7036_v56 = vld [vmem:[%s4801_s29 + $0x138] sm:$0xff] }
 0x43e   : > { %4607 = vpow2.f32 %v2291_v6  ;;  %v7005_v35 = vmul.f32 1.442695, %v2168_v7  ;;  %v3614_v19 = vsub.f32 %v6986_v61, %v3550_v20  ;;  %3123 = vst.msk [vmem:[#allocation3 + $0x1d0] sm:$0xff] %vm266_vm2, %v3059_v34  ;;  %v2357_v54 = vmul.f32 %v4584_v11, %v2101_v41  ;;  %v4594_v6 = vpop.eup %4593  ;;  %v2968_v47 = vpop.xlane.xlu1 %2967  ;;  %v3554_v61 = vld [vmem:[#allocation4 + $0x130] sm:$0xff]  ;;  %v3551_v31 = vld [vmem:[#allocation4 + $0x118] sm:$0xff]  ;;  %v3236_v12 = vld [vmem:[#allocation2 + $0x140] sm:$0xff] }
 0x43f   : > { %v3740_v48 = vsel %vm3676_vm7, %v3612_v13, 0.0  ;;  %v3739_v17 = vsel %vm3675_vm6, %v3611_v53, 0.0  ;;  %v3485_v21 = vadd.f32 %v3391_v23, %v3229_v60  ;;  %4609 = vlog2.f32 %v3301_v59  ;;  %3110 = vst.msk [vmem:[#allocation3 + $0x168] sm:$0xff] %vm266_vm2, %v3046_v15  ;;  %v7029_v13 = vld [vmem:[%s4801_s29 + $0x140] sm:$0xff]  ;;  %v7051_v60 = vld [vmem:[%s4801_s29 + $0x150] sm:$0xff] }
 0x440   : > { %vm3681_vm13 = vcmp.ge.s32.totalorder %v7015_v58, 0  ;;  %v3616_v7 = vsub.f32 %v6988_v45, %v3552_v27  ;;  %v7019_v1 = vadd.f32 %v3401_v14, %v3234_v26  ;;  %4611 = vlog2.f32 %v3308_v28  ;;  %v2994_v43 = vpop.xlane.xlu0 %2993  ;;  %v3233_v28 = vld [vmem:[#allocation2 + $0x128] sm:$0xff] }
 0x441   : > { %v3833_v55 = vsel %vm266_vm2, %v3739_v17, 0.0  ;;  %v3613_v10 = vsub.f32 %v3485_v21, %v3549_v29  ;;  %v3395_v8 = vmul.f32 0.6931472, %v4594_v6  ;;  %v3048_v52 = vadd.f32 %v2968_v47, %v6923_v0  ;;  %v7058_v27 = vld [vmem:[%s4801_s29 + $0x148] sm:$0xff]  ;;  %v3556_v6 = vld [vmem:[#allocation4 + $0x140] sm:$0xff]  ;;  %v3238_v29 = vld [vmem:[#allocation2 + $0x150] sm:$0xff] }
 0x442   : > { %v3834_v37 = vadd.f32 %v3833_v55, %v3832_v33  ;;  %v3835_v5 = vsel %vm266_vm2, %v3740_v48, 0.0  ;;  %v3742_v24 = vsel %vm3678_vm8, %v3614_v19, 0.0  ;;  %v3405_v22 = vmul.f32 0.6931472, %v4592_v49  ;;  %v3303_v9 = vld [vmem:[#allocation3 + $0x158] sm:$0xff]  ;;  %v4596_v36 = vpop.eup %4595  ;;  %v2972_v40 = vpop.xlane.xlu1 %2971  ;;  %v3553_v26 = vld [vmem:[#allocation4 + $0x128] sm:$0xff] }
 0x443   : > { %v7026_v57 = vmul.f32 %v4588_v25, %v2103_v38  ;;  %vm3684_vm14 = vcmp.ge.s32.totalorder %v7029_v13, 0  ;;  %v3741_v0 = vsel %vm3677_vm9, %v3613_v10, 0.0  ;;  %v3487_v11 = vadd.f32 %v3395_v8, %v3231_v44  ;;  %3112 = vst.msk [vmem:[#allocation3 + $0x178] sm:$0xff] %vm266_vm2, %v3048_v52  ;;  %v4598_v45 = vpop.eup %4597  ;;  %v7073_v44 = vld [vmem:[%s4801_s29 + $0x160] sm:$0xff] }
 0x444   : > { %v3836_v2 = vadd.f32 %v3835_v5, %v3834_v37  ;;  %4613 = vlog2.f32 %v3303_v9  ;;  %vm3683_vm15 = vcmp.ge.s32.totalorder %v7036_v56, 0  ;;  %v3744_v63 = vsel %vm3680_vm10, %v3616_v7, 0.0  ;;  %v7043_v14 = vpop.eup %4599  ;;  %v3235_v37 = vld [vmem:[#allocation2 + $0x138] sm:$0xff]  ;;  %v3314_v9 = vld [vmem:[#allocation3 + $0x1b0] sm:$0xff]  ;;  %v3316_v13 = vld [vmem:[#allocation3 + $0x1c0] sm:$0xff] }
 0x445   : > { %v3618_v41 = vsub.f32 %v7019_v1, %v3554_v61  ;;  %v3837_v18 = vsel %vm266_vm2, %v3741_v0, 0.0  ;;  %v3061_v30 = vadd.f32 %v2994_v43, %v2357_v54  ;;  %v3615_v3 = vsub.f32 %v3487_v11, %v3551_v31  ;;  %v3312_v54 = vld [vmem:[#allocation3 + $0x1a0] sm:$0xff]  ;;  %v7080_v61 = vld [vmem:[%s4801_s29 + $0x158] sm:$0xff]  ;;  %v7087_v31 = vld [vmem:[%s4801_s29 + $0x170] sm:$0xff] }
 0x446   : > { %v3838_v34 = vadd.f32 %v3837_v18, %v3836_v2  ;;  %v3399_v25 = vmul.f32 0.6931472, %v4598_v45  ;;  %v3050_v20 = vadd.f32 %v2972_v40, %v6936_v32  ;;  %v3839_v33 = vsel %vm266_vm2, %v3742_v24, 0.0  ;;  %v3305_v23 = vld [vmem:[#allocation3 + $0x168] sm:$0xff]  ;;  %v2976_v21 = vpop.xlane.xlu1 %2975 }
 0x447   : > { %v7047_v51 = vadd.f32 %v3405_v22, %v3236_v12  ;;  %v3409_v53 = vmul.f32 0.6931472, %v4596_v36  ;;  %4615 = vlog2.f32 %v3310_v46  ;;  %3125 = vst.msk [vmem:[#allocation3 + $0x1e0] sm:$0xff] %vm266_vm2, %v3061_v30  ;;  %v4602_v15 = vpop.eup %4601  ;;  %vm3686_vm0 = vcmp.ge.s32.totalorder %v7051_v60, 0  ;;  %v3555_v46 = vld [vmem:[#allocation4 + $0x138] sm:$0xff] }
 0x448   : > { %v3743_v19 = vsel %vm3679_vm11, %v3615_v3, 0.0  ;;  %v3840_v32 = vadd.f32 %v3839_v33, %v3838_v34  ;;  %v3489_v59 = vadd.f32 %v3399_v25, %v3233_v28  ;;  %4617 = vlog2.f32 %v3305_v23  ;;  %3114 = vst.msk [vmem:[#allocation3 + $0x188] sm:$0xff] %vm266_vm2, %v3050_v20  ;;  %v4604_v49 = vpop.eup %4603  ;;  %v2998_v22 = vpop.xlane.xlu0 %2997  ;;  %v2098_v34 = vld [vmem:[#allocation3 + $0x1c8] sm:$0xff]  ;;  %v3242_v33 = vld [vmem:[#allocation2 + $0x170] sm:$0xff] }
 0x449   : > { %vm3685_vm1 = vcmp.ge.s32.totalorder %v7058_v27, 0  ;;  %4619 = vpow2.f32 %v7005_v35  ;;  %v3843_v48 = vsel %vm266_vm2, %v3744_v63, 0.0  ;;  %v3746_v39 = vsel %vm3682_vm12, %v3618_v41, 0.0  ;;  %v4606_v38 = vpop.eup %4605  ;;  %v3558_v63 = vld [vmem:[#allocation4 + $0x150] sm:$0xff]  ;;  %v3240_v41 = vld [vmem:[#allocation2 + $0x160] sm:$0xff]  ;;  %v3237_v3 = vld [vmem:[#allocation2 + $0x148] sm:$0xff] }
 0x44a   : > { %v3841_v17 = vsel %vm266_vm2, %v3743_v19, 0.0  ;;  %v3617_v1 = vsub.f32 %v3489_v59, %v3553_v26  ;;  %v3403_v55 = vmul.f32 0.6931472, %v4604_v49  ;;  %v3052_v47 = vadd.f32 %v2976_v21, %v6939_v50  ;;  %v3307_v8 = vld [vmem:[#allocation3 + $0x178] sm:$0xff]  ;;  %v2980_v43 = vpop.xlane.xlu1 %2979  ;;  %v3557_v19 = vld [vmem:[#allocation4 + $0x148] sm:$0xff]  ;;  %v7107_v26 = vld [vmem:[%s4801_s29 + $0x180] sm:$0xff] }
 0x44b   : > { %v3842_v7 = vadd.f32 %v3841_v17, %v3840_v32  ;;  %v3620_v35 = vsub.f32 %v7047_v51, %v3556_v6  ;;  %v7068_v10 = vadd.f32 %v3409_v53, %v3238_v29  ;;  %v3413_v62 = vmul.f32 0.6931472, %v4602_v15  ;;  %v7070_v52 = vpop.eup %4607  ;;  %v7101_v15 = vld [vmem:[%s4801_s29 + $0x168] sm:$0xff]  ;;  %v2100_v6 = vld [vmem:[#allocation3 + $0x1d8] sm:$0xff] }
 0x44c   : > { %4621 = vlog2.f32 %v3312_v54  ;;  %vm3688_vm3 = vcmp.ge.s32.totalorder %v7073_v44, 0  ;;  %v3745_v5 = vsel %vm3681_vm13, %v3617_v1, 0.0  ;;  %v3491_v50 = vadd.f32 %v3403_v55, %v3235_v37  ;;  %3116 = vst.msk [vmem:[#allocation3 + $0x198] sm:$0xff] %vm266_vm2, %v3052_v47  ;;  %v4610_v36 = vpop.eup %4609  ;;  %v3239_v29 = vld [vmem:[#allocation2 + $0x158] sm:$0xff]  ;;  %v3562_v37 = vld [vmem:[#allocation4 + $0x170] sm:$0xff]  ;;  %v3561_v44 = vld [vmem:[#allocation4 + $0x168] sm:$0xff] }
 0x44d   : > { %v3844_v24 = vadd.f32 %v3843_v48, %v3842_v7  ;;  %4623 = vlog2.f32 %v3307_v8  ;;  %vm3687_vm4 = vcmp.ge.s32.totalorder %v7080_v61, 0  ;;  %v3847_v0 = vsel %vm266_vm2, %v3746_v39, 0.0  ;;  %v4612_v45 = vpop.eup %4611  ;;  %v3560_v48 = vld [vmem:[#allocation4 + $0x160] sm:$0xff]  ;;  %v3243_v61 = vld [vmem:[#allocation2 + $0x178] sm:$0xff] }
 0x44e   : > { %v3417_v2 = vmul.f32 0.6931472, %v4606_v38  ;;  %v3845_v58 = vsel %vm266_vm2, %v3745_v5, 0.0  ;;  %v3063_v11 = vadd.f32 %v2998_v22, %v7026_v57  ;;  %vm3690_vm5 = vcmp.ge.s32.totalorder %v7087_v31, 0  ;;  %v2984_v59 = vpop.xlane.xlu1 %2983 }
 0x44f   : > { %v3846_v18 = vadd.f32 %v3845_v58, %v3844_v24  ;;  %v3619_v30 = vsub.f32 %v3491_v50, %v3555_v46  ;;  %v3407_v40 = vmul.f32 0.6931472, %v4610_v36  ;;  %v3054_v12 = vadd.f32 %v2980_v43, %v6969_v4  ;;  %v3309_v28 = vld [vmem:[#allocation3 + $0x188] sm:$0xff]  ;;  %v7119_v24 = vld [vmem:[%s4801_s29 + $0x178] sm:$0xff] }
 0x450   : > { %v3748_v25 = vsel %vm3684_vm14, %v3620_v35, 0.0  ;;  %v3622_v57 = vsub.f32 %v7068_v10, %v3558_v63  ;;  %v7094_v20 = vadd.f32 %v3413_v62, %v3240_v41  ;;  %3127 = vst.msk [vmem:[#allocation3 + $0x1f0] sm:$0xff] %vm266_vm2, %v3063_v11  ;;  %4625 = vlog2.f32 %v3314_v9  ;;  %v3244_v35 = vld [vmem:[#allocation2 + $0x180] sm:$0xff]  ;;  %v3559_v50 = vld [vmem:[#allocation4 + $0x158] sm:$0xff]  ;;  %v2102_v11 = vld [vmem:[#allocation3 + $0x1e8] sm:$0xff] }
 0x451   : > { %v3747_v51 = vsel %vm3683_vm15, %v3619_v30, 0.0  ;;  %v3848_v4 = vadd.f32 %v3847_v0, %v3846_v18  ;;  %v3493_v53 = vadd.f32 %v3407_v40, %v3237_v3  ;;  %4627 = vlog2.f32 %v3309_v28  ;;  %3118 = vst.msk [vmem:[#allocation3 + $0x1a8] sm:$0xff] %vm266_vm2, %v3054_v12  ;;  %v4614_v23 = vpop.eup %4613  ;;  %v7128_v40 = vld [vmem:[%s4801_s29 + $0x190] sm:$0xff]  ;;  %v3564_v12 = vld [vmem:[#allocation4 + $0x180] sm:$0xff] }
 0x452   : > { %vm3689_vm6 = vcmp.ge.s32.totalorder %v7101_v15, 0  ;;  %v3849_v32 = vsel %vm266_vm2, %v3747_v51, 0.0  ;;  %v2354_v54 = vmul.f32 %v7003_v42, %v2098_v34  ;;  %v3421_v56 = vmul.f32 0.6931472, %v4612_v45  ;;  %v2988_v60 = vpop.xlane.xlu1 %2987  ;;  %v3241_v45 = vld [vmem:[#allocation2 + $0x168] sm:$0xff]  ;;  %v3320_v3 = vld [vmem:[#allocation3 + $0x1e0] sm:$0xff] }
 0x453   : > { %v3498_v49 = vadd.f32 %v3417_v2, %v3242_v33  ;;  %vm3692_vm7 = vcmp.ge.s32.totalorder %v7107_v26, 0  ;;  %v3850_v39 = vadd.f32 %v3849_v32, %v3848_v4  ;;  %v3621_v17 = vsub.f32 %v3493_v53, %v3557_v19  ;;  %v3311_v1 = vld [vmem:[#allocation3 + $0x198] sm:$0xff]  ;;  %v3246_v32 = vld [vmem:[#allocation2 + $0x190] sm:$0xff] }
 0x454   : > { %v3411_v21 = vmul.f32 0.6931472, %v4614_v23  ;;  %v3056_v38 = vadd.f32 %v2984_v59, %v6945_v16  ;;  %v3851_v7 = vsel %vm266_vm2, %v3748_v25, 0.0  ;;  %4629 = vlog2.f32 %v3316_v13  ;;  %v4616_v47 = vpop.eup %4615  ;;  %v3318_v16 = vld [vmem:[#allocation3 + $0x1d0] sm:$0xff]  ;;  %v2104_v19 = vld [vmem:[#allocation3 + $0x1f8] sm:$0xff] }
 0x455   : > { %v3624_v42 = vsub.f32 %v7094_v20, %v3560_v48  ;;  %v3750_v55 = vsel %vm3686_vm0, %v3622_v57, 0.0  ;;  %v3749_v10 = vsel %vm3685_vm1, %v3621_v17, 0.0  ;;  %4631 = vlog2.f32 %v3311_v1  ;;  %v4618_v5 = vpop.eup %4617 }
 0x456   : > { %v3495_v62 = vadd.f32 %v3411_v21, %v3239_v29  ;;  %3120 = vst.msk [vmem:[#allocation3 + $0x1b8] sm:$0xff] %vm266_vm2, %v3056_v38  ;;  %v3852_v8 = vadd.f32 %v3851_v7, %v3850_v39  ;;  %vm3691_vm8 = vcmp.ge.s32.totalorder %v7119_v24, 0  ;;  %v2356_v22 = vmul.f32 %v7043_v14, %v2100_v6  ;;  %v4620_v46 = vpop.eup %4619  ;;  %v2992_v28 = vpop.xlane.xlu1 %2991  ;;  %v3563_v29 = vld [vmem:[#allocation4 + $0x178] sm:$0xff] }
 0x457   : > { %v3500_v9 = vadd.f32 %v3421_v56, %v3244_v35  ;;  %v3626_v36 = vsub.f32 %v3498_v49, %v3562_v37  ;;  %v3853_v27 = vsel %vm266_vm2, %v3749_v10, 0.0  ;;  %v3415_v2 = vmul.f32 0.6931472, %v4618_v5  ;;  %v3322_v31 = vld [vmem:[#allocation3 + $0x1f0] sm:$0xff]  ;;  %v3248_v35 = vld [vmem:[#allocation2 + $0x1a0] sm:$0xff] }
 0x458   : > { %v3623_v0 = vsub.f32 %v3495_v62, %v3559_v50  ;;  %v3058_v58 = vadd.f32 %v2988_v60, %v2354_v54  ;;  %v3854_v43 = vadd.f32 %v3853_v27, %v3852_v8  ;;  %v3313_v63 = vld [vmem:[#allocation3 + $0x1a8] sm:$0xff]  ;;  %v3425_v41 = vmul.f32 0.6931472, %v4616_v47  ;;  %v3566_v62 = vld [vmem:[#allocation4 + $0x190] sm:$0xff] }
 0x459   : > { %4633 = vlog2.f32 %v3318_v16  ;;  %v3752_v18 = vsel %vm3688_vm3, %v3624_v42, 0.0  ;;  %v3855_v14 = vsel %vm266_vm2, %v3750_v55, 0.0  ;;  %v4622_v30 = vpop.eup %4621  ;;  %vm3694_vm9 = vcmp.ge.s32.totalorder %v7128_v40, 0  ;;  %v3245_v8 = vld [vmem:[#allocation2 + $0x188] sm:$0xff]  ;;  %v3570_v40 = vld [vmem:[#allocation4 + $0x1b0] sm:$0xff] }
 0x45a   : > { %v3497_v34 = vadd.f32 %v3415_v2, %v3241_v45  ;;  %3122 = vst.msk [vmem:[#allocation3 + $0x1c8] sm:$0xff] %vm266_vm2, %v3058_v58  ;;  %4635 = vlog2.f32 %v3313_v63  ;;  %v3751_v25 = vsel %vm3687_vm4, %v3623_v0, 0.0  ;;  %v3856_v57 = vadd.f32 %v3855_v14, %v3854_v43  ;;  %v4624_v20 = vpop.eup %4623  ;;  %v2996_v7 = vpop.xlane.xlu1 %2995  ;;  %v4702_v0 = vld [vmem:[%s4801_s29 + $0x188] sm:$0xff]  ;;  %v4703_v2 = vld [vmem:[%s4801_s29 + $0x1a0] sm:$0xff] }
 0x45b   : > { %v2358_v33 = vmul.f32 %v7070_v52, %v2102_v11  ;;  %v3628_v51 = vsub.f32 %v3500_v9, %v3564_v12  ;;  %v3754_v4 = vsel %vm3690_vm5, %v3626_v36, 0.0  ;;  %v3857_v53 = vsel %vm266_vm2, %v3751_v25, 0.0  ;;  %v3565_v11 = vld [vmem:[#allocation4 + $0x188] sm:$0xff]  ;;  %v3568_v14 = vld [vmem:[#allocation4 + $0x1a0] sm:$0xff]  ;;  %v3247_v12 = vld [vmem:[#allocation2 + $0x198] sm:$0xff] }
 0x45c   : > { %v3419_v13 = vmul.f32 0.6931472, %v4624_v20  ;;  %v3060_v23 = vadd.f32 %v2992_v28, %v2356_v22  ;;  %v3625_v59 = vsub.f32 %v3497_v34, %v3561_v44  ;;  %v3858_v54 = vadd.f32 %v3857_v53, %v3856_v57  ;;  %v4704_v53 = vld [vmem:[%s4801_s29 + $0x198] sm:$0xff] }
 0x45d   : > { %v3315_v56 = vld [vmem:[#allocation3 + $0x1b8] sm:$0xff]  ;;  %v3429_v49 = vmul.f32 0.6931472, %v4622_v30  ;;  %4637 = vlog2.f32 %v3320_v3  ;;  %v3502_v48 = vadd.f32 %v3425_v41, %v3246_v32  ;;  %v3859_v39 = vsel %vm266_vm2, %v3752_v18, 0.0  ;;  %v4626_v52 = vpop.eup %4625  ;;  %v3250_v41 = vld [vmem:[#allocation2 + $0x1b0] sm:$0xff]  ;;  %v3252_v32 = vld [vmem:[#allocation2 + $0x1c0] sm:$0xff] }
 0x45e   : > { %3124 = vst.msk [vmem:[#allocation3 + $0x1d8] sm:$0xff] %vm266_vm2, %v3060_v23  ;;  %4639 = vlog2.f32 %v3315_v56  ;;  %v3499_v17 = vadd.f32 %v3419_v13, %v3243_v61  ;;  %v3753_v21 = vsel %vm3689_vm6, %v3625_v59, 0.0  ;;  %v3860_v38 = vadd.f32 %v3859_v39, %v3858_v54  ;;  %v4628_v6 = vpop.eup %4627  ;;  %v3000_v58 = vpop.xlane.xlu1 %2999  ;;  %v4705_v13 = vld [vmem:[%s4801_s29 + $0x1b0] sm:$0xff]  ;;  %v3567_v23 = vld [vmem:[#allocation4 + $0x198] sm:$0xff] }
 0x45f   : > { %v2360_v1 = vmul.f32 %v4620_v46, %v2104_v19  ;;  %v3756_v42 = vsel %vm3692_vm7, %v3628_v51, 0.0  ;;  %v3861_v55 = vsel %vm266_vm2, %v3753_v21, 0.0  ;;  %v3863_v47 = vsel %vm266_vm2, %v3754_v4, 0.0 }
 0x460   : > { %v3062_v37 = vadd.f32 %v2996_v7, %v2358_v33  ;;  %v3423_v10 = vmul.f32 0.6931472, %v4628_v6  ;;  %v3627_v16 = vsub.f32 %v3499_v17, %v3563_v29  ;;  %v3862_v15 = vadd.f32 %v3861_v55, %v3860_v38  ;;  %v3569_v55 = vld [vmem:[#allocation4 + $0x1a8] sm:$0xff] }
 0x461   : > { %v3317_v5 = vld [vmem:[#allocation3 + $0x1c8] sm:$0xff]  ;;  %v3433_v50 = vmul.f32 0.6931472, %v4626_v52  ;;  %4641 = vlog2.f32 %v3322_v31  ;;  %v3504_v60 = vadd.f32 %v3429_v49, %v3248_v35  ;;  %v3630_v22 = vsub.f32 %v3502_v48, %v3566_v62  ;;  %v4630_v26 = vpop.eup %4629 }
 0x462   : > { %3126 = vst.msk [vmem:[#allocation3 + $0x1e8] sm:$0xff] %vm266_vm2, %v3062_v37  ;;  %4643 = vlog2.f32 %v3317_v5  ;;  %v3501_v9 = vadd.f32 %v3423_v10, %v3245_v8  ;;  %v3755_v36 = vsel %vm3691_vm8, %v3627_v16, 0.0  ;;  %v3864_v27 = vadd.f32 %v3863_v47, %v3862_v15  ;;  %v4632_v46 = vpop.eup %4631  ;;  %v3249_v49 = vld [vmem:[#allocation2 + $0x1a8] sm:$0xff]  ;;  %v3254_v37 = vld [vmem:[#allocation2 + $0x1d0] sm:$0xff]  ;;  %v3572_v10 = vld [vmem:[#allocation4 + $0x1c0] sm:$0xff] }
 0x463   : > { %vm3693_vm10 = vcmp.ge.s32.totalorder %v4702_v0, 0  ;;  %vm3696_vm11 = vcmp.ge.s32.totalorder %v4703_v2, 0  ;;  %v3865_v43 = vsel %vm266_vm2, %v3755_v36, 0.0  ;;  %v3867_v45 = vsel %vm266_vm2, %v3756_v42, 0.0  ;;  %v4707_v42 = vld [vmem:[%s4801_s29 + $0x1c0] sm:$0xff]  ;;  %v3251_v8 = vld [vmem:[#allocation2 + $0x1b8] sm:$0xff] }
 0x464   : > { %v3064_v63 = vadd.f32 %v3000_v58, %v2360_v1  ;;  %v3427_v18 = vmul.f32 0.6931472, %v4632_v46  ;;  %v3629_v30 = vsub.f32 %v3501_v9, %v3565_v11  ;;  %v3866_v24 = vadd.f32 %v3865_v43, %v3864_v27  ;;  %v4706_v1 = vld [vmem:[%s4801_s29 + $0x1a8] sm:$0xff]  ;;  %v4708_v2 = vld [vmem:[%s4801_s29 + $0x1b8] sm:$0xff]  ;;  %v4709_v43 = vld [vmem:[%s4801_s29 + $0x1d0] sm:$0xff] }
 0x465   : > { %v3319_v34 = vld [vmem:[#allocation3 + $0x1d8] sm:$0xff]  ;;  %v3437_v3 = vmul.f32 0.6931472, %v4630_v26  ;;  %v3506_v25 = vadd.f32 %v3433_v50, %v3250_v41  ;;  %v3632_v57 = vsub.f32 %v3504_v60, %v3568_v14  ;;  %v3758_v20 = vsel %vm3694_vm9, %v3630_v22, 0.0  ;;  %v3574_v41 = vld [vmem:[#allocation4 + $0x1d0] sm:$0xff] }
 0x466   : > { %v4634_v44 = vpop.eup %4633  ;;  %3128 = vst.msk [vmem:[#allocation3 + $0x1f8] sm:$0xff] %vm266_vm2, %v3064_v63  ;;  %4645 = vlog2.f32 %v3319_v34  ;;  %v3503_v28 = vadd.f32 %v3427_v18, %v3247_v12  ;;  %v3757_v33 = vsel %vm3693_vm10, %v3629_v30, 0.0  ;;  %v3868_v51 = vadd.f32 %v3867_v45, %v3866_v24  ;;  %v3571_v58 = vld [vmem:[#allocation4 + $0x1b8] sm:$0xff]  ;;  %v3256_v45 = vld [vmem:[#allocation2 + $0x1e0] sm:$0xff]  ;;  %v3253_v30 = vld [vmem:[#allocation2 + $0x1c8] sm:$0xff] }
 0x467   : > { %v4636_v4 = vpop.eup %4635  ;;  %vm3695_vm12 = vcmp.ge.s32.totalorder %v4704_v53, 0  ;;  %vm3698_vm13 = vcmp.ge.s32.totalorder %v4705_v13, 0  ;;  %v3869_v19 = vsel %vm266_vm2, %v3757_v33, 0.0  ;;  %v3871_v56 = vsel %vm266_vm2, %v3758_v20, 0.0  ;;  %v4710_v33 = vld [vmem:[%s4801_s29 + $0x1c8] sm:$0xff]  ;;  %v3576_v13 = vld [vmem:[#allocation4 + $0x1e0] sm:$0xff] }
 0x468   : > { %v3431_v59 = vmul.f32 0.6931472, %v4636_v4  ;;  %v3631_v54 = vsub.f32 %v3503_v28, %v3567_v23  ;;  %v3870_v61 = vadd.f32 %v3869_v19, %v3868_v51  ;;  %v3441_v39 = vmul.f32 0.6931472, %v4634_v44  ;;  %v3573_v51 = vld [vmem:[#allocation4 + $0x1c8] sm:$0xff] }
 0x469   : > { %v3321_v48 = vld [vmem:[#allocation3 + $0x1e8] sm:$0xff]  ;;  %v3508_v52 = vadd.f32 %v3437_v3, %v3252_v32  ;;  %v3634_v31 = vsub.f32 %v3506_v25, %v3570_v40  ;;  %v3760_v17 = vsel %vm3696_vm11, %v3632_v57, 0.0  ;;  %vm3697_vm14 = vcmp.ge.s32.totalorder %v4706_v1, 0  ;;  %v4711_v32 = vld [vmem:[%s4801_s29 + $0x1e0] sm:$0xff]  ;;  %v3258_v40 = vld [vmem:[#allocation2 + $0x1f0] sm:$0xff] }
 0x46a   : > { %v4638_v21 = vpop.eup %4637  ;;  %4647 = vlog2.f32 %v3321_v48  ;;  %v3505_v38 = vadd.f32 %v3431_v59, %v3249_v49  ;;  %v3759_v6 = vsel %vm3695_vm12, %v3631_v54, 0.0  ;;  %v3872_v29 = vadd.f32 %v3871_v56, %v3870_v61  ;;  %v3255_v59 = vld [vmem:[#allocation2 + $0x1d8] sm:$0xff]  ;;  %v3257_v1 = vld [vmem:[#allocation2 + $0x1e8] sm:$0xff] }
 0x46b   : > { %v4640_v7 = vpop.eup %4639  ;;  %vm3700_vm15 = vcmp.ge.s32.totalorder %v4707_v42, 0  ;;  %v3873_v47 = vsel %vm266_vm2, %v3759_v6, 0.0  ;;  %v3875_v15 = vsel %vm266_vm2, %v3760_v17, 0.0  ;;  %v3445_v50 = vmul.f32 0.6931472, %v4638_v21  ;;  %v4712_v17 = vld [vmem:[%s4801_s29 + $0x1d8] sm:$0xff] }
 0x46c   : > { %v3435_v35 = vmul.f32 0.6931472, %v4640_v7  ;;  %v3633_v62 = vsub.f32 %v3505_v38, %v3569_v55  ;;  %v3874_v16 = vadd.f32 %v3873_v47, %v3872_v29  ;;  %v3510_v60 = vadd.f32 %v3441_v39, %v3254_v37  ;;  %v3575_v21 = vld [vmem:[#allocation4 + $0x1d8] sm:$0xff]  ;;  %v3578_v42 = vld [vmem:[#allocation4 + $0x1f0] sm:$0xff] }
 0x46d   : > { %v3323_v5 = vld [vmem:[#allocation3 + $0x1f8] sm:$0xff]  ;;  %v3636_v22 = vsub.f32 %v3508_v52, %v3572_v10  ;;  %v3762_v26 = vsel %vm3698_vm13, %v3634_v31, 0.0  ;;  %vm3699_vm0 = vcmp.ge.s32.totalorder %v4708_v2, 0  ;;  %vm3702_vm1 = vcmp.ge.s32.totalorder %v4709_v43, 0 }
 0x46e   : > { %v4642_v9 = vpop.eup %4641  ;;  %4649 = vlog2.f32 %v3323_v5  ;;  %v3507_v36 = vadd.f32 %v3435_v35, %v3251_v8  ;;  %v3761_v27 = vsel %vm3697_vm14, %v3633_v62, 0.0  ;;  %v3876_v46 = vadd.f32 %v3875_v15, %v3874_v16  ;;  %v4713_v15 = vld [vmem:[%s4801_s29 + $0x1e8] sm:$0xff]  ;;  %v4714_v8 = vld [vmem:[%s4801_s29 + $0x1f0] sm:$0xff] }
 0x46f   : > { %v4644_v0 = vpop.eup %4643  ;;  %v3877_v11 = vsel %vm266_vm2, %v3761_v27, 0.0  ;;  %v3512_v24 = vadd.f32 %v3445_v50, %v3256_v45  ;;  %v3638_v12 = vsub.f32 %v3510_v60, %v3574_v41  ;;  %v3764_v34 = vsel %vm3700_vm15, %v3636_v22, 0.0  ;;  %v3577_v5 = vld [vmem:[#allocation4 + $0x1e8] sm:$0xff] }
 0x470   : > { %v3439_v63 = vmul.f32 0.6931472, %v4644_v0  ;;  %v3635_v18 = vsub.f32 %v3507_v36, %v3571_v58  ;;  %v3878_v14 = vadd.f32 %v3877_v11, %v3876_v46  ;;  %v3879_v3 = vsel %vm266_vm2, %v3762_v26, 0.0  ;;  %v4715_v58 = vld [vmem:[%s4801_s29 + $0x1f8] sm:$0xff] }
 0x471   : > { %v3449_v25 = vmul.f32 0.6931472, %v4642_v9  ;;  %vm3701_vm3 = vcmp.ge.s32.totalorder %v4710_v33, 0  ;;  %vm3704_vm4 = vcmp.ge.s32.totalorder %v4711_v32, 0  ;;  %v3640_v54 = vsub.f32 %v3512_v24, %v3576_v13  ;;  %v3259_v9 = vld [vmem:[#allocation2 + $0x1f8] sm:$0xff] }
 0x472   : > { %v3509_v57 = vadd.f32 %v3439_v63, %v3253_v30  ;;  %v3763_v20 = vsel %vm3699_vm0, %v3635_v18, 0.0  ;;  %v3880_v44 = vadd.f32 %v3879_v3, %v3878_v14  ;;  %v3766_v61 = vsel %vm3702_vm1, %v3638_v12, 0.0  ;;  %v3579_v11 = vld [vmem:[#allocation4 + $0x1f8] sm:$0xff] }
 0x473   : > { %v4646_v28 = vpop.eup %4645  ;;  %v3881_v4 = vsel %vm266_vm2, %v3763_v20, 0.0  ;;  %v3883_v56 = vsel %vm266_vm2, %v3764_v34, 0.0  ;;  %v3514_v48 = vadd.f32 %v3449_v25, %v3258_v40  ;;  %vm3703_vm5 = vcmp.ge.s32.totalorder %v4712_v17, 0 }
 0x474   : > { %v3443_v53 = vmul.f32 0.6931472, %v4646_v28  ;;  %v3637_v23 = vsub.f32 %v3509_v57, %v3573_v51  ;;  %v3882_v19 = vadd.f32 %v3881_v4, %v3880_v44  ;;  %v3768_v55 = vsel %vm3704_vm4, %v3640_v54, 0.0 }
 0x475   : > { %v3887_v47 = vsel %vm266_vm2, %v3766_v61, 0.0  ;;  %v3642_v35 = vsub.f32 %v3514_v48, %v3578_v42  ;;  %vm3705_vm6 = vcmp.ge.s32.totalorder %v4713_v15, 0  ;;  %vm3706_vm7 = vcmp.ge.s32.totalorder %v4714_v8, 0 }
 0x476   : > { %v3511_v49 = vadd.f32 %v3443_v53, %v3255_v59  ;;  %v3765_v39 = vsel %vm3701_vm3, %v3637_v23, 0.0  ;;  %v3884_v52 = vadd.f32 %v3883_v56, %v3882_v19  ;;  %v3891_v36 = vsel %vm266_vm2, %v3768_v55, 0.0 }
 0x477   : > { %v4648_v31 = vpop.eup %4647  ;;  %v3885_v38 = vsel %vm266_vm2, %v3765_v39, 0.0  ;;  %v3770_v0 = vsel %vm3706_vm7, %v3642_v35, 0.0  ;;  %vm3707_vm8 = vcmp.ge.s32.totalorder %v4715_v58, 0 }
 0x478   : > { %v3447_v6 = vmul.f32 0.6931472, %v4648_v31  ;;  %v3639_v29 = vsub.f32 %v3511_v49, %v3575_v21  ;;  %v3886_v7 = vadd.f32 %v3885_v38, %v3884_v52  ;;  %v3895_v41 = vsel %vm266_vm2, %v3770_v0, 0.0 }
 0x47a   : > { %v3513_v37 = vadd.f32 %v3447_v6, %v3257_v1  ;;  %v3767_v10 = vsel %vm3703_vm5, %v3639_v29, 0.0  ;;  %v3888_v62 = vadd.f32 %v3887_v47, %v3886_v7 }
 0x47b   : > { %v4650_v16 = vpop.eup %4649  ;;  %v3889_v50 = vsel %vm266_vm2, %v3767_v10, 0.0 }
 0x47c   : > { %v3451_v60 = vmul.f32 0.6931472, %v4650_v16  ;;  %v3641_v22 = vsub.f32 %v3513_v37, %v3577_v5  ;;  %v3890_v26 = vadd.f32 %v3889_v50, %v3888_v62 }
 0x47e   : > { %v3515_v27 = vadd.f32 %v3451_v60, %v3259_v9  ;;  %v3769_v46 = vsel %vm3705_vm6, %v3641_v22, 0.0  ;;  %v3892_v2 = vadd.f32 %v3891_v36, %v3890_v26 }
 0x47f   : > { %v3893_v43 = vsel %vm266_vm2, %v3769_v46, 0.0 }
 0x480   : > { %v3643_v45 = vsub.f32 %v3515_v27, %v3579_v11  ;;  %v3894_v63 = vadd.f32 %v3893_v43, %v3892_v2 }
 0x482   : > { %v3771_v18 = vsel %vm3707_vm8, %v3643_v45, 0.0  ;;  %v3896_v14 = vadd.f32 %v3895_v41, %v3894_v63 }
 0x483   : > { %v3897_v30 = vsel %vm266_vm2, %v3771_v18, 0.0 }
 0x484   : > { %v3898_v24 = vadd.f32 %v3897_v30, %v3896_v14 }
 0x486   : > { %3899 = vadd.xlane.f32.xlu0 %v3898_v24 }
 0x50f   : > { %v3900_v12 = vpop.xlane.xlu0 %3899 }
 0x510   : > { %v3901_v34 = vrot.slane %v3900_v12, 4 }
 0x512   : > { %v3902_v3 = vadd.f32 %v3901_v34, %v3900_v12 }
 0x514   : > { %v3903_v25 = vrot.slane %v3902_v3, 2 }
 0x516   : > { %v3904_v57 = vadd.f32 %v3903_v25, %v3902_v3 }
 0x518   : > { %v3905_v20 = vrot.slane %v3904_v57, 1 }
 0x51a   : > { %v3906_v44 = vadd.f32 %v3905_v20, %v3904_v57 }
 0x51c   : > { %4196 = vpush %v3906_v44 }
 0x54d   : > { %s4197_s29 = spop %4196 }
 0x54e   : > { %v3908_v28 = vstv %s4197_s29 }
 0x54f   : > { %3910 = vst [vmem:[%s260_s28] sm:$0x1] %v3908_v28 }
 0x550 PF: > { %s14_s17 = sadd.s32 1, %s4738_s17   ;;  %s7696_s15 = smov %s4734_s16 }
 0x551   : > { %p11_p6 = scmp.ge.s32.totalorder %s14_s17, 4   ;;  %s7697_s16 = smov %s7699_s18 }
 0x553   :  { %13 = sbr.rel (!%p11_p6) target bundleno = 2 (0x2), region = 83 }

</bundles_post_ra>
